<compile_context>
chip_gen: v6e
topology: v6e:2x2x1
jax: 0.10.0
libtpu: 0.0.40
codegen_flags: <defaults>
</compile_context>

<pallas_src>
import functools

import jax
import jax.numpy as jnp
from jax import lax
from jax.experimental import pallas as pl
from jax.experimental.pallas import tpu as pltpu


# ----------------------------------------------------------------------------- dropout mask
def _dropout_keep(idx, seed):
    """Deterministic Bernoulli(1/2) keep-mask from a flat int32 element index.

    Murmur3-style finalizer; only int32 multiplies / xors / logical shifts /
    compares, so it lowers on TPU (Mosaic) and in interpret mode alike.
    """
    h = idx * jnp.int32(-1640531527) + jnp.int32(seed)            # 0x9E3779B9
    h = h ^ lax.shift_right_logical(h, jnp.full_like(h, 16))
    h = h * jnp.int32(-2048144789)                                 # 0x85EBCA6B
    h = h ^ lax.shift_right_logical(h, jnp.full_like(h, 13))
    h = h * jnp.int32(-1028477387)                                 # 0xC2B2AE35
    h = h ^ lax.shift_right_logical(h, jnp.full_like(h, 16))
    return h >= 0                                                  # top bit clear -> keep (p=0.5)


# ----------------------------------------------------------------------------- kernel
def _mlp_kernel(x_ref, w1_ref, b1_ref, w3_ref, b3_ref, w4t_ref, b4_ref,
                o_ref, h1_ref, acc_ref, *, tile_n, n_cols, seed, training):
    j = pl.program_id(0)

    # ---- step 0: linear1 + ReLU into resident scratch, zero the accumulator ----
    @pl.when(j == 0)
    def _():
        h1 = jnp.dot(x_ref[...].astype(jnp.bfloat16), w1_ref[...],
                     preferred_element_type=jnp.float32)
        h1 = jnp.maximum(h1 + b1_ref[...], 0.0)
        h1_ref[...] = h1.astype(jnp.bfloat16)
        acc_ref[...] = jnp.zeros_like(acc_ref)

    # ---- linear3 tile: (64, 1000) @ (1000, tile_n) ----
    h3 = jnp.dot(h1_ref[...], w3_ref[...], preferred_element_type=jnp.float32)
    h3 = h3 + b3_ref[...]

    # ---- dropout(p=0.5), training mode ----
    # TODO(synk): torch's dropout RNG stream cannot be reproduced; this is a
    # deterministic hash-based Bernoulli(0.5) mask with 1/(1-p) scaling.
    if training:
        row = lax.broadcasted_iota(jnp.int32, h3.shape, 0)
        col = lax.broadcasted_iota(jnp.int32, h3.shape, 1) + j * tile_n
        keep = _dropout_keep(row * n_cols + col, seed)
        h3 = jnp.where(keep, h3 * 2.0, 0.0)

    # ---- linear4 partial: contract (64, tile_n) with w4^T tile (10, tile_n) ----
    partial_out = lax.dot_general(
        h3.astype(jnp.bfloat16), w4t_ref[...],
        dimension_numbers=(((1,), (1,)), ((), ())),
        preferred_element_type=jnp.float32)
    acc_ref[...] += partial_out

    # ---- last step: add bias, write output ----
    @pl.when(j == pl.num_programs(0) - 1)
    def _():
        o_ref[...] = (acc_ref[...] + b4_ref[...]).astype(o_ref.dtype)


# ----------------------------------------------------------------------------- wrapper
def mynet_forward(x, params, *, seed=0, training=True, tile_n=512):
    """Fused MLP forward. x: (N, 20) float32. Returns (N, 10) float32."""
    w1, b1, w3, b3, w4t, b4 = params
    n, k_in = x.shape                 # (64, 20)
    h1_dim = w1.shape[1]              # 1000
    n_pad = w3.shape[1]               # 2048 (2000 zero-padded to a multiple of 128)
    n_out = w4t.shape[0]              # 10
    assert n_pad % tile_n == 0 and n % 8 == 0

    kernel = functools.partial(_mlp_kernel, tile_n=tile_n, n_cols=n_pad,
                               seed=int(seed), training=training)

    return pl.pallas_call(
        kernel,
        out_shape=jax.ShapeDtypeStruct((n, n_out), jnp.float32),
        grid=(n_pad // tile_n,),
        in_specs=[
            pl.BlockSpec((n, k_in), lambda j: (0, 0)),            # x (resident)
            pl.BlockSpec((k_in, h1_dim), lambda j: (0, 0)),       # w1 (resident)
            pl.BlockSpec((1, h1_dim), lambda j: (0, 0)),          # b1 (resident)
            pl.BlockSpec((h1_dim, tile_n), lambda j: (0, j)),     # w3 tile (streamed)
            pl.BlockSpec((1, tile_n), lambda j: (0, j)),          # b3 tile (streamed)
            pl.BlockSpec((n_out, tile_n), lambda j: (0, j)),      # w4^T tile (lane-dense)
            pl.BlockSpec((1, n_out), lambda j: (0, 0)),           # b4 (resident)
        ],
        out_specs=pl.BlockSpec((n, n_out), lambda j: (0, 0)),
        scratch_shapes=[
            pltpu.VMEM((n, h1_dim), jnp.bfloat16),                # h1 activations
            pltpu.VMEM((n, n_out), jnp.float32),                  # linear4 accumulator
        ],
        compiler_params=pltpu.CompilerParams(
            dimension_semantics=("arbitrary",),
            vmem_limit_bytes=32 * 1024 * 1024),
    )(x, w1, b1, w3, b3, w4t, b4)


# ----------------------------------------------------------------------------- params / reference
def init_params(key, *, hidden=2000, hidden_pad=2048):
    """Torch-like Linear init (uniform +/- 1/sqrt(fan_in)).

    Weights for matmuls are stored (in, out) except w4, kept in the torch
    (out, in) layout so the streamed tile is lane-dense.  The 2000-wide hidden
    dim is zero-padded to 2048 for 128-lane-aligned tiles (padding is exact:
    zero weights/bias contribute nothing)."""
    def uniform(k, shape, fan_in):
        bound = 1.0 / float(fan_in) ** 0.5
        return jax.random.uniform(k, shape, jnp.float32, -bound, bound)

    k1w, k1b, k3w, k3b, k4w, k4b = jax.random.split(key, 6)
    w1 = uniform(k1w, (20, 1000), 20).astype(jnp.bfloat16)      # linear1
    b1 = uniform(k1b, (1, 1000), 20)
    w3 = uniform(k3w, (1000, hidden), 1000)                     # linear3
    b3 = uniform(k3b, (1, hidden), 1000)
    w4t = uniform(k4w, (10, hidden), hidden)                    # linear4, torch (out, in) layout
    b4 = uniform(k4b, (1, 10), hidden)

    pad = hidden_pad - hidden
    w3 = jnp.pad(w3, ((0, 0), (0, pad))).astype(jnp.bfloat16)
    b3 = jnp.pad(b3, ((0, 0), (0, pad)))
    w4t = jnp.pad(w4t, ((0, 0), (0, pad))).astype(jnp.bfloat16)
    # linear2 (1000->1000) and linear5 (2->2) are unused in forward; not materialized.
    return (w1, b1, w3, b3, w4t, b4)


def mynet_reference(x, params, *, seed=0, training=True):
    """Pure-JAX reference with the same bf16 casts and the same dropout mask."""
    w1, b1, w3, b3, w4t, b4 = params
    h1 = jnp.dot(x.astype(jnp.bfloat16), w1, preferred_element_type=jnp.float32)
    h1 = jnp.maximum(h1 + b1, 0.0).astype(jnp.bfloat16)
    h3 = jnp.dot(h1, w3, preferred_element_type=jnp.float32) + b3
    if training:
        rows, cols = h3.shape
        row = lax.broadcasted_iota(jnp.int32, (rows, cols), 0)
        col = lax.broadcasted_iota(jnp.int32, (rows, cols), 1)
        keep = _dropout_keep(row * cols + col, seed)
        h3 = jnp.where(keep, h3 * 2.0, 0.0)
    out = lax.dot_general(h3.astype(jnp.bfloat16), w4t,
                          dimension_numbers=(((1,), (1,)), ((), ())),
                          preferred_element_type=jnp.float32)
    return out + b4


# ----------------------------------------------------------------------------- main
if __name__ == "__main__":
    key = jax.random.PRNGKey(0)
    kx, kp = jax.random.split(key)

    x = jax.random.normal(kx, (64, 20), dtype=jnp.float32)   # matches torch.randn(64, 20)
    params = init_params(kp)

    # training mode (dropout active) — matches PyTorch's default module mode
    out = jax.block_until_ready(mynet_forward(x, params, seed=0, training=True))
    assert out.shape == (64, 10) and out.dtype == jnp.float32
    assert bool(jnp.all(jnp.isfinite(out)))
    ref_train = mynet_reference(x, params, seed=0, training=True)
    assert bool(jnp.allclose(out, ref_train, atol=5e-3, rtol=5e-3))

    # eval mode (dropout disabled) sanity check
    out_eval = jax.block_until_ready(mynet_forward(x, params, seed=0, training=False))
    ref_eval = mynet_reference(x, params, seed=0, training=False)
    assert bool(jnp.allclose(out_eval, ref_eval, atol=5e-3, rtol=5e-3))

    print("KERNEL_OK")
</pallas_src>

<mosaic_0001>
module attributes {stable_mosaic.version = 11 : i64} {
  func.func @_mlp_kernel(%arg0: i32, %arg1: memref<64x20xf32, #tpu.memory_space<vmem>>, %arg2: memref<20x1000xbf16, #tpu.memory_space<vmem>>, %arg3: memref<1x1000xf32, #tpu.memory_space<vmem>>, %arg4: memref<1000x512xbf16, #tpu.memory_space<vmem>>, %arg5: memref<1x512xf32, #tpu.memory_space<vmem>>, %arg6: memref<10x512xbf16, #tpu.memory_space<vmem>>, %arg7: memref<1x10xf32, #tpu.memory_space<vmem>>, %arg8: memref<64x10xf32, #tpu.memory_space<vmem>>, %arg9: memref<64x1000xbf16, #tpu.memory_space<vmem>>, %arg10: memref<64x10xf32, #tpu.memory_space<vmem>>) attributes {dimension_semantics = [#tpu.dimension_semantics<arbitrary>], iteration_bounds = array<i64: 4>, scalar_prefetch = 0 : i64, scratch_operands = 2 : i64, tpu.core_type = #tpu.core_type<tc>, window_params = [{pipeline_mode = #tpu.pipeline_mode<synchronous>, transform_indices = @transform_0, window_bounds = array<i64: 64, 20>}, {pipeline_mode = #tpu.pipeline_mode<synchronous>, transform_indices = @transform_1, window_bounds = array<i64: 20, 1000>}, {pipeline_mode = #tpu.pipeline_mode<synchronous>, transform_indices = @transform_2, window_bounds = array<i64: 1, 1000>}, {transform_indices = @transform_3, window_bounds = array<i64: 1000, 512>}, {transform_indices = @transform_4, window_bounds = array<i64: 1, 512>}, {transform_indices = @transform_5, window_bounds = array<i64: 10, 512>}, {pipeline_mode = #tpu.pipeline_mode<synchronous>, transform_indices = @transform_6, window_bounds = array<i64: 1, 10>}, {pipeline_mode = #tpu.pipeline_mode<synchronous>, transform_indices = @transform_7, window_bounds = array<i64: 64, 10>}]} {
    %c0_i32 = arith.constant 0 : i32
    %0 = arith.cmpi eq, %arg0, %c0_i32 : i32
    %1 = arith.extui %0 : i1 to i32
    %c0_i32_0 = arith.constant 0 : i32
    %2 = arith.cmpi ne, %1, %c0_i32_0 : i32
    scf.if %2 {
      %c0_19 = arith.constant 0 : index
      %c0_20 = arith.constant 0 : index
      %49 = vector.load %arg1[%c0_19, %c0_20] : memref<64x20xf32, #tpu.memory_space<vmem>>, vector<64x20xf32>
      %50 = arith.truncf %49 : vector<64x20xf32> to vector<64x20xbf16>
      %c0_21 = arith.constant 0 : index
      %c0_22 = arith.constant 0 : index
      %51 = vector.load %arg2[%c0_21, %c0_22] : memref<20x1000xbf16, #tpu.memory_space<vmem>>, vector<20x1000xbf16>
      %cst_23 = arith.constant dense<0.000000e+00> : vector<64x1000xf32>
      %52 = tpu.matmul %50, %51, %cst_23 {dimension_numbers = #tpu.dot_dimension_numbers<[1], [0], [0], [1], [0, 0, 1, 1], [], []>} : vector<64x20xbf16>, vector<20x1000xbf16>, vector<64x1000xf32> -> vector<64x1000xf32>
      %c0_24 = arith.constant 0 : index
      %c0_25 = arith.constant 0 : index
      %53 = vector.load %arg3[%c0_24, %c0_25] : memref<1x1000xf32, #tpu.memory_space<vmem>>, vector<1x1000xf32>
      %54 = vector.broadcast %53 : vector<1x1000xf32> to vector<64x1000xf32>
      %55 = arith.addf %52, %54 : vector<64x1000xf32>
      %cst_26 = arith.constant 0.000000e+00 : f32
      %56 = vector.broadcast %cst_26 : f32 to vector<64x1000xf32>
      %57 = arith.maximumf %55, %56 : vector<64x1000xf32>
      %58 = arith.truncf %57 : vector<64x1000xf32> to vector<64x1000xbf16>
      %c0_27 = arith.constant 0 : index
      %c0_28 = arith.constant 0 : index
      %59 = vector.load %arg9[%c0_27, %c0_28] : memref<64x1000xbf16, #tpu.memory_space<vmem>>, vector<64x1000xbf16>
      tpu.vector_store %arg9[%c0_27, %c0_28], %58 {strides = array<i32>} : memref<64x1000xbf16, #tpu.memory_space<vmem>>, vector<64x1000xbf16>,
      %cst_29 = arith.constant 0.000000e+00 : f32
      %60 = vector.broadcast %cst_29 : f32 to vector<64x10xf32>
      %c0_30 = arith.constant 0 : index
      %c0_31 = arith.constant 0 : index
      %61 = vector.load %arg10[%c0_30, %c0_31] : memref<64x10xf32, #tpu.memory_space<vmem>>, vector<64x10xf32>
      tpu.vector_store %arg10[%c0_30, %c0_31], %60 {strides = array<i32>} : memref<64x10xf32, #tpu.memory_space<vmem>>, vector<64x10xf32>,
    } else {
    }
    %c0 = arith.constant 0 : index
    %c0_1 = arith.constant 0 : index
    %3 = vector.load %arg9[%c0, %c0_1] : memref<64x1000xbf16, #tpu.memory_space<vmem>>, vector<64x1000xbf16>
    %c0_2 = arith.constant 0 : index
    %c0_3 = arith.constant 0 : index
    %4 = vector.load %arg4[%c0_2, %c0_3] : memref<1000x512xbf16, #tpu.memory_space<vmem>>, vector<1000x512xbf16>
    %cst = arith.constant dense<0.000000e+00> : vector<64x512xf32>
    %5 = tpu.matmul %3, %4, %cst {dimension_numbers = #tpu.dot_dimension_numbers<[1], [0], [0], [1], [0, 0, 1, 1], [], []>} : vector<64x1000xbf16>, vector<1000x512xbf16>, vector<64x512xf32> -> vector<64x512xf32>
    %c0_4 = arith.constant 0 : index
    %c0_5 = arith.constant 0 : index
    %6 = vector.load %arg5[%c0_4, %c0_5] : memref<1x512xf32, #tpu.memory_space<vmem>>, vector<1x512xf32>
    %7 = vector.broadcast %6 : vector<1x512xf32> to vector<64x512xf32>
    %8 = arith.addf %5, %7 : vector<64x512xf32>
    %9 = tpu.iota {dimensions = array<i32: 0>} : vector<64x512xi32>
    %10 = tpu.iota {dimensions = array<i32: 1>} : vector<64x512xi32>
    %c512_i32 = arith.constant 512 : i32
    %11 = arith.muli %arg0, %c512_i32 : i32
    %12 = vector.broadcast %11 : i32 to vector<64x512xi32>
    %13 = arith.addi %10, %12 : vector<64x512xi32>
    %c2048_i32 = arith.constant 2048 : i32
    %14 = vector.broadcast %c2048_i32 : i32 to vector<64x512xi32>
    %15 = arith.muli %9, %14 : vector<64x512xi32>
    %16 = arith.addi %15, %13 : vector<64x512xi32>
    %c-1640531527_i32 = arith.constant -1640531527 : i32
    %17 = vector.broadcast %c-1640531527_i32 : i32 to vector<64x512xi32>
    %18 = arith.muli %16, %17 : vector<64x512xi32>
    %c0_i32_6 = arith.constant 0 : i32
    %19 = vector.broadcast %c0_i32_6 : i32 to vector<64x512xi32>
    %20 = arith.addi %18, %19 : vector<64x512xi32>
    %c16_i32 = arith.constant 16 : i32
    %21 = vector.broadcast %c16_i32 : i32 to vector<64x512xi32>
    %22 = arith.shrui %20, %21 : vector<64x512xi32>
    %23 = arith.xori %20, %22 : vector<64x512xi32>
    %c-2048144789_i32 = arith.constant -2048144789 : i32
    %24 = vector.broadcast %c-2048144789_i32 : i32 to vector<64x512xi32>
    %25 = arith.muli %23, %24 : vector<64x512xi32>
    %c13_i32 = arith.constant 13 : i32
    %26 = vector.broadcast %c13_i32 : i32 to vector<64x512xi32>
    %27 = arith.shrui %25, %26 : vector<64x512xi32>
    %28 = arith.xori %25, %27 : vector<64x512xi32>
    %c-1028477387_i32 = arith.constant -1028477387 : i32
    %29 = vector.broadcast %c-1028477387_i32 : i32 to vector<64x512xi32>
    %30 = arith.muli %28, %29 : vector<64x512xi32>
    %c16_i32_7 = arith.constant 16 : i32
    %31 = vector.broadcast %c16_i32_7 : i32 to vector<64x512xi32>
    %32 = arith.shrui %30, %31 : vector<64x512xi32>
    %33 = arith.xori %30, %32 : vector<64x512xi32>
    %c0_i32_8 = arith.constant 0 : i32
    %34 = vector.broadcast %c0_i32_8 : i32 to vector<64x512xi32>
    %35 = arith.cmpi sge, %33, %34 : vector<64x512xi32>
    %cst_9 = arith.constant 2.000000e+00 : f32
    %36 = vector.broadcast %cst_9 : f32 to vector<64x512xf32>
    %37 = arith.mulf %8, %36 : vector<64x512xf32>
    %cst_10 = arith.constant 0.000000e+00 : f32
    %38 = vector.broadcast %cst_10 : f32 to vector<64x512xf32>
    %39 = arith.select %35, %37, %38 : vector<64x512xi1>, vector<64x512xf32>
    %40 = arith.truncf %39 : vector<64x512xf32> to vector<64x512xbf16>
    %c0_11 = arith.constant 0 : index
    %c0_12 = arith.constant 0 : index
    %41 = vector.load %arg6[%c0_11, %c0_12] : memref<10x512xbf16, #tpu.memory_space<vmem>>, vector<10x512xbf16>
    %cst_13 = arith.constant dense<0.000000e+00> : vector<64x10xf32>
    %42 = tpu.matmul %40, %41, %cst_13 {dimension_numbers = #tpu.dot_dimension_numbers<[1], [1], [0], [0], [0, 0, 1, 0], [], []>} : vector<64x512xbf16>, vector<10x512xbf16>, vector<64x10xf32> -> vector<64x10xf32>
    %c0_14 = arith.constant 0 : index
    %c0_15 = arith.constant 0 : index
    %43 = vector.load %arg10[%c0_14, %c0_15] : memref<64x10xf32, #tpu.memory_space<vmem>>, vector<64x10xf32>
    %44 = arith.addf %43, %42 : vector<64x10xf32>
    %c0_16 = arith.constant 0 : index
    %c0_17 = arith.constant 0 : index
    %45 = vector.load %arg10[%c0_16, %c0_17] : memref<64x10xf32, #tpu.memory_space<vmem>>, vector<64x10xf32>
    tpu.vector_store %arg10[%c0_16, %c0_17], %44 {strides = array<i32>} : memref<64x10xf32, #tpu.memory_space<vmem>>, vector<64x10xf32>,
    %c3_i32 = arith.constant 3 : i32
    %46 = arith.cmpi eq, %arg0, %c3_i32 : i32
    %47 = arith.extui %46 : i1 to i32
    %c0_i32_18 = arith.constant 0 : i32
    %48 = arith.cmpi ne, %47, %c0_i32_18 : i32
    scf.if %48 {
      %c0_19 = arith.constant 0 : index
      %c0_20 = arith.constant 0 : index
      %49 = vector.load %arg10[%c0_19, %c0_20] : memref<64x10xf32, #tpu.memory_space<vmem>>, vector<64x10xf32>
      %c0_21 = arith.constant 0 : index
      %c0_22 = arith.constant 0 : index
      %50 = vector.load %arg7[%c0_21, %c0_22] : memref<1x10xf32, #tpu.memory_space<vmem>>, vector<1x10xf32>
      %51 = vector.broadcast %50 : vector<1x10xf32> to vector<64x10xf32>
      %52 = arith.addf %49, %51 : vector<64x10xf32>
      %c0_23 = arith.constant 0 : index
      %c0_24 = arith.constant 0 : index
      %53 = vector.load %arg8[%c0_23, %c0_24] : memref<64x10xf32, #tpu.memory_space<vmem>>, vector<64x10xf32>
      tpu.vector_store %arg8[%c0_23, %c0_24], %52 {strides = array<i32>} : memref<64x10xf32, #tpu.memory_space<vmem>>, vector<64x10xf32>,
    } else {
    }
    return
  }
  func.func @transform_0(%arg0: i32) -> (i32, i32) {
    %c0_i32 = arith.constant 0 : i32
    %c0_i32_0 = arith.constant 0 : i32
    %c0_i32_1 = arith.constant 0 : i32
    return %c0_i32, %c0_i32_0 : i32, i32
  }
  func.func @transform_1(%arg0: i32) -> (i32, i32) {
    %c0_i32 = arith.constant 0 : i32
    %c0_i32_0 = arith.constant 0 : i32
    %c0_i32_1 = arith.constant 0 : i32
    return %c0_i32, %c0_i32_0 : i32, i32
  }
  func.func @transform_2(%arg0: i32) -> (i32, i32) {
    %c0_i32 = arith.constant 0 : i32
    %c0_i32_0 = arith.constant 0 : i32
    %c0_i32_1 = arith.constant 0 : i32
    return %c0_i32, %c0_i32_0 : i32, i32
  }
  func.func @transform_3(%arg0: i32) -> (i32, i32) {
    %c0_i32 = arith.constant 0 : i32
    %c0_i32_0 = arith.constant 0 : i32
    return %c0_i32, %arg0 : i32, i32
  }
  func.func @transform_4(%arg0: i32) -> (i32, i32) {
    %c0_i32 = arith.constant 0 : i32
    %c0_i32_0 = arith.constant 0 : i32
    return %c0_i32, %arg0 : i32, i32
  }
  func.func @transform_5(%arg0: i32) -> (i32, i32) {
    %c0_i32 = arith.constant 0 : i32
    %c0_i32_0 = arith.constant 0 : i32
    return %c0_i32, %arg0 : i32, i32
  }
  func.func @transform_6(%arg0: i32) -> (i32, i32) {
    %c0_i32 = arith.constant 0 : i32
    %c0_i32_0 = arith.constant 0 : i32
    %c0_i32_1 = arith.constant 0 : i32
    return %c0_i32, %c0_i32_0 : i32, i32
  }
  func.func @transform_7(%arg0: i32) -> (i32, i32) {
    %c0_i32 = arith.constant 0 : i32
    %c0_i32_0 = arith.constant 0 : i32
    %c0_i32_1 = arith.constant 0 : i32
    return %c0_i32, %c0_i32_0 : i32, i32
  }
}

</mosaic_0001>

<bundles_post_ra>
// kernel: tpu_custom_call.1
= control target key start
LH: loop header
LB: loop body
LE: loop exit
PB: predicated region body
PF: predicated region fallthrough
CT: control target
= control target key end

     0   :  { %s6935_s0 = inlined_call_operand.vmem [shape: f32[64,20], index: 0, kind: input, shape index: {}]   ;;  %s6936_s1 = inlined_call_operand.hbm [shape: bf16[20,1000], index: 1, kind: input, shape index: {}]   ;;  %s6937_s2 = inlined_call_operand.hbm [shape: f32[1,1000], index: 2, kind: input, shape index: {}]   ;;  %s6938_s3 = inlined_call_operand.hbm [shape: bf16[1000,2048], index: 3, kind: input, shape index: {}]   ;;  %s6939_s4 = inlined_call_operand.hbm [shape: f32[1,2048], index: 4, kind: input, shape index: {}]   ;;  %s6940_s5 = inlined_call_operand.hbm [shape: bf16[10,2048], index: 5, kind: input, shape index: {}]   ;;  %s6941_s6 = inlined_call_operand.hbm [shape: f32[1,10], index: 6, kind: input, shape index: {}]   ;;  %s6942_s7 = inlined_call_operand.vmem [shape: f32[64,10], index: 7, kind: output, shape index: {}]  }
   0x1   :  { %6981 = sst [smem:[#allocation38_spill]] %s6936_s1 }
   0x2   :  { %12 = vsyncpa [#allocation5], 0 }
   0x3   :  { %13 = vsyncpa [#allocation7], 0  ;;  %s5475_s24 = smov 0   ;;  %s5477_s25 = smov 0  }
   0x4   :  { %s5479_s26 = smov 0   ;;  %s5481_s27 = smov 0  }
   0x5 LB: > { %6982 = sst [smem:[#allocation16_spill]] %s5416_s26  ;;  %s5494_s28 = sadd.s32 4294967295, %s5420_s27   ;;  %s5420_s27 = sphi %s5481_s27, %s7069_s27   ;;  %s5416_s26 = sphi %s5479_s26, %s7071_s26   ;;  %s5412_s25 = sphi %s5477_s25, %s7073_s25   ;;  %s5408_s24 = sphi %s5475_s24, %s7072_s24  }
   0x6   : > { %s5497_s29 = sadd.s32 1, %s5420_s27   ;;  %s89_s8 = sadd.s32 1, %s5416_s26 }
   0x7   : > { %6983 = sst [smem:[#allocation17_spill]] %s5497_s29  ;;  %s86_s30 = ssub.s32 %s5420_s27, %s5497_s29 }
   0x8   : > { %p87_p0 = scmp.eq.s32.totalorder %s86_s30, 0  ;;  %p96_p1 = scmp.ne.s32.totalorder %s5416_s26, %s5412_s25 }
   0x9   : > { %p97_p2 = scmp.eq.s32.totalorder %s5420_s27, 0  ;;  %p102_p3 = scmp.ne.s32.totalorder %s5412_s25, %s5408_s24 }
   0xa   : > { %s5507_s9 = scalar_select %p87_p0, %s5416_s26, %s89_s8  }
   0xb   : > { %p5509_p4 = por %p97_p2, %p96_p1  ;;  %p6943_p5 = scmp.eq.s32.totalorder %s5494_s28, 0 }
   0xc   : > { %6984 = sst [smem:[#allocation18_spill]] %s5507_s9  ;;  %p4259_p6 = scmp.ge.s32.totalorder %s5420_s27, 1 }
   0xd   : > { %p207_p7 = scmp.lt.s32.totalorder %s5420_s27, 5  ;;  %p5518_p8 = por %p6943_p5, %p102_p3 }
   0xe   : > { %s5422_s13 = smov [#allocation4]   ;;  %p4776_p13 = scmp.lt.s32.totalorder %s5420_s27, 4 }
   0xf   : > { %s6986_s11 = scalar_select %p5518_p8, 1, 0 }
  0x10   : > { %p5523_p10 = pnand %p4259_p6, %p207_p7  ;;  %s222_s14 = sshll.u32 %s5422_s13, 4  ;;  %s223_s14 = int_to_ptr.vmem [resolvable:$true] %s222_s14 }
  0x11   : > { %s258_s16 = sand.u32 1, %s5420_s27   ;;  %s5538_s17 = sand.u32 1, %s5416_s26  }
  0x12   : > { %s6987_s12 = scalar_select %p5523_p10, 1, 0 }
  0x13   : > { %p4753_p11 = pneg %p5523_p10  ;;  %p5542_p0 = pnand %p4776_p13, %p5509_p4 }
  0x14   : > { %s5223_s19 = scalar_lea.vmem %s223_s14, 1536  ;;  %p5231_p7 = scmp.lt.s32.totalorder %s223_s14, %s223_s14 }
  0x15   : > { %p5531_p12 = pnand %p4753_p11, %p6943_p5  ;;  %p5224_p2 = scmp.ne.s32.totalorder %s223_s14, %s5223_s19 }
  0x16   : > { %p5232_p11 = scmp.lt.s32.totalorder %s5223_s19, %s5223_s19 }
  0x17   : > { %s6988_s15 = scalar_select %p5531_p12, 1, 0 }
  0x18   : > { %p6947_p1 = pneg %p5531_p12  ;;  %p5233_p9 = por %p5232_p11, %p5231_p7 }
  0x1a   : > { %p5226_p3 = pnand %p5224_p2, %p6947_p1 }
  0x1c   : > { %p5227_p6 = pneg %p5226_p3 }
  0x1e   : > { %p5234_p5 = pnand %p5233_p9, %p5227_p6 }
  0x20   : > { %5237 = shalt.err (!%p5234_p5)
}
  0x21   : > { %s5423_s20 = smov 512   ;;  %s5424_s21 = smov 32  }
  0x22   : > { %s6990_s1 = sld [smem:[#allocation38_spill]]  ;;  %s4733_s24 = smul.u32 2000, %s5538_s17 }
  0x23   : > { %s6955_s30 = sshll.u32 %s5420_s27, 8  ;;  %s5567_s26 = scalar_lea.sflag [#allocation5], %s258_s16 }
  0x24   : > { %s5563_s13 = scalar_lea.hbm %s6938_s3, %s6955_s30  ;;  %s262_s19 = scalar_lea.vmem [#allocation8], %s4733_s24 }
  0x25   : > { %s269_s9 = sshll.u32 %s262_s19, 4  ;;  %s5238_s29 = scalar_lea.hbm %s5563_s13, 32000  ;;  %s5565_s9 = int_to_ptr.vmem [resolvable:$true] %s269_s9 }
  0x26   : > { %p5239_p4 = scmp.ne.s32.totalorder %s5563_s13, %s5238_s29  ;;  %p5573_p5 = pneg %p5542_p0 }
  0x27   : > { %s5243_s22 = scalar_lea.hbm %s6938_s3, 128000  ;;  %p5244_p2 = scmp.lt.s32.totalorder %s5563_s13, %s6938_s3 }
  0x28   : > { %4756 = dma.hbm_to_vmem [thread:$0]  (!%p5531_p12), %s6990_s1, 1536, %s223_s14, [#allocation5], %s5423_s20, %s5423_s20, %s5424_s21  }
  0x29   : > { %p5241_p9 = pnand %p5573_p5, %p5239_p4  ;;  %p5245_p3 = scmp.lt.s32.totalorder %s5243_s22, %s5238_s29 }
  0x2b   : > { %p5242_p13 = pneg %p5241_p9  ;;  %p5246_p6 = por %p5245_p3, %p5244_p2 }
  0x2d   : > { %p5247_p7 = pnand %p5246_p6, %p5242_p13 }
  0x2f   : > { %5250 = shalt.err (!%p5247_p7)
}
  0x30   : > { %s5251_s16 = scalar_lea.vmem %s5565_s9, 32000  ;;  %s5425_s8 = smov [#allocation8]  }
  0x31   : > { %p5252_p11 = scmp.ne.s32.totalorder %s5565_s9, %s5251_s16  ;;  %s5256_s10 = sshll.u32 %s5425_s8, 4  ;;  %s5257_s10 = int_to_ptr.vmem [resolvable:$false] %s5256_s10 }
  0x32   : > { %s5258_s19 = scalar_lea.vmem %s5257_s10, 64000  ;;  %p5259_p1 = scmp.lt.s32.totalorder %s5565_s9, %s5257_s10 }
  0x33   : > { %p5254_p4 = pnand %p5252_p11, %p5573_p5  ;;  %p5260_p8 = scmp.lt.s32.totalorder %s5258_s19, %s5251_s16 }
  0x35   : > { %p5255_p9 = pneg %p5254_p4  ;;  %p5261_p10 = por %p5260_p8, %p5259_p1 }
  0x37   : > { %p5262_p12 = pnand %p5261_p10, %p5255_p9 }
  0x39   : > { %5265 = shalt.err (!%p5262_p12)
}
  0x3a   : > { %s6952_s29 = smov 1024   ;;  %s6953_s20 = smov 256  }
  0x3b   : > { %s6954_s21 = smov 16   ;;  %s5429_s22 = smov [#allocation6]  }
  0x3c   : > { %4766 = dma.hbm_to_vmem [thread:$0]  (!%p5542_p0), %s5563_s13, 32000, %s5565_s9, %s5567_s26, %s6952_s29, %s6953_s20, %s6954_s21  }
  0x3d   : > { %s236_s23 = sshll.u32 %s5429_s22, 4  ;;  %s4266_s24 = sshll.u32 %s5538_s17, 2  ;;  %s237_s23 = int_to_ptr.vmem [resolvable:$true] %s236_s23 }
  0x3e   : > { %s5277_s16 = scalar_lea.vmem %s237_s23, 128  ;;  %p6992_p10 = scmp.ne.s32.totalorder %s6988_s15, 0 }
  0x3f   : > { %p5278_p8 = scmp.ne.s32.totalorder %s237_s23, %s5277_s16  ;;  %p5285_p2 = scmp.lt.s32.totalorder %s237_s23, %s237_s23 }
  0x40   : > { %p6993_p12 = pneg %p6992_p10  ;;  %p5286_p3 = scmp.lt.s32.totalorder %s5277_s16, %s5277_s16 }
  0x42   : > { %p5280_p1 = pnand %p5278_p8, %p6993_p12  ;;  %p5287_p6 = por %p5286_p3, %p5285_p2 }
  0x44   : > { %p5281_p13 = pneg %p5280_p1 }
  0x46   : > { %p5288_p7 = pnand %p5287_p6, %p5281_p13 }
  0x48   : > { %5291 = shalt.err (!%p5288_p7)
}
  0x49   : > { %4759 = dma.hbm_to_vmem [thread:$0]  (!%p6992_p10), %s6937_s2, 128, %s237_s23, [#allocation7]  }
  0x4a   : > { %s4699_s9 = sshll.u32 %s5420_s27, 6  ;;  %s283_s13 = scalar_lea.vmem [#allocation9], %s4266_s24 }
  0x4b   : > { %s291_s19 = sshll.u32 %s283_s13, 4  ;;  %s289_s20 = scalar_lea.hbm %s6939_s4, %s4699_s9  ;;  %s292_s19 = int_to_ptr.vmem [resolvable:$true] %s291_s19 }
  0x4c   : > { %s5292_s16 = scalar_lea.hbm %s289_s20, 64  ;;  %s5297_s8 = scalar_lea.hbm %s6939_s4, 256 }
  0x4d   : > { %p5293_p11 = scmp.ne.s32.totalorder %s289_s20, %s5292_s16  ;;  %p5298_p8 = scmp.lt.s32.totalorder %s289_s20, %s6939_s4 }
  0x4e   : > { %p5299_p12 = scmp.lt.s32.totalorder %s5297_s8, %s5292_s16 }
  0x4f   : > { %p5295_p4 = pnand %p5293_p11, %p5573_p5 }
  0x50   : > { %p5300_p1 = por %p5299_p12, %p5298_p8 }
  0x51   : > { %p5296_p9 = pneg %p5295_p4 }
  0x53   : > { %p5301_p13 = pnand %p5300_p1, %p5296_p9 }
  0x55   : > { %5304 = shalt.err (!%p5301_p13)
}
  0x56   : > { %s5305_s29 = scalar_lea.vmem %s292_s19, 64  ;;  %s5430_s23 = smov [#allocation9]  }
  0x57   : > { %p5306_p2 = scmp.ne.s32.totalorder %s292_s19, %s5305_s29  ;;  %s5310_s24 = sshll.u32 %s5430_s23, 4  ;;  %s5311_s24 = int_to_ptr.vmem [resolvable:$false] %s5310_s24 }
  0x58   : > { %s5312_s9 = scalar_lea.vmem %s5311_s24, 128  ;;  %p5313_p7 = scmp.lt.s32.totalorder %s292_s19, %s5311_s24 }
  0x59   : > { %p5308_p3 = pnand %p5306_p2, %p5573_p5  ;;  %p5314_p11 = scmp.lt.s32.totalorder %s5312_s9, %s5305_s29 }
  0x5b   : > { %p5309_p6 = pneg %p5308_p3  ;;  %p5315_p4 = por %p5314_p11, %p5313_p7 }
  0x5d   : > { %p5316_p10 = pnand %p5315_p4, %p5309_p6 }
  0x5f   : > { %5319 = shalt.err (!%p5316_p10)
}
  0x60   : > { %4769 = dma.hbm_to_vmem [thread:$0]  (!%p5542_p0), %s289_s20, 64, %s292_s19, %s5567_s26  }
  0x61   : > { %s4269_s1 = sshll.u32 %s5538_s17, 5  ;;  %s5431_s30 = smov [#allocation11]  }
  0x62   : > { %s247_s21 = sshll.u32 %s5431_s30, 4  ;;  %s6994_s13 = sshll.u32 %s5420_s27, 8  ;;  %s248_s21 = int_to_ptr.vmem [resolvable:$true] %s247_s21 }
  0x63   : > { %s5631_s8 = scalar_lea.hbm %s6940_s5, %s6994_s13  ;;  %s5331_s10 = scalar_lea.vmem %s248_s21, 16 }
  0x64   : > { %p5332_p9 = scmp.ne.s32.totalorder %s248_s21, %s5331_s10  ;;  %p6995_p10 = scmp.ne.s32.totalorder %s6988_s15, 0 }
  0x65   : > { %s5338_s29 = scalar_lea.vmem %s248_s21, 32  ;;  %p5339_p13 = scmp.lt.s32.totalorder %s248_s21, %s248_s21 }
  0x66   : > { %p6996_p8 = pneg %p6995_p10  ;;  %p5340_p2 = scmp.lt.s32.totalorder %s5338_s29, %s5331_s10 }
  0x68   : > { %p5334_p12 = pnand %p5332_p9, %p6996_p8  ;;  %p5341_p3 = por %p5340_p2, %p5339_p13 }
  0x6a   : > { %p5335_p1 = pneg %p5334_p12 }
  0x6c   : > { %p5342_p6 = pnand %p5341_p3, %p5335_p1 }
  0x6e   : > { %5345 = shalt.err (!%p5342_p6)
}
  0x6f   : > { %4762 = dma.hbm_to_vmem [thread:$0]  (!%p6995_p10), %s6941_s6, 16, %s248_s21, [#allocation7]  }
  0x70   : > { %s302_s20 = scalar_lea.vmem [#allocation10], %s4269_s1  ;;  %s5346_s23 = scalar_lea.hbm %s5631_s8, 512 }
  0x71   : > { %s309_s19 = sshll.u32 %s302_s20, 4  ;;  %p5347_p7 = scmp.ne.s32.totalorder %s5631_s8, %s5346_s23  ;;  %s310_s19 = int_to_ptr.vmem [resolvable:$true] %s309_s19 }
  0x72   : > { %s5351_s15 = scalar_lea.hbm %s6940_s5, 2048  ;;  %p5352_p9 = scmp.lt.s32.totalorder %s5631_s8, %s6940_s5 }
  0x73   : > { %p5349_p11 = pnand %p5347_p7, %p5573_p5  ;;  %p5353_p8 = scmp.lt.s32.totalorder %s5351_s15, %s5346_s23 }
  0x75   : > { %p5350_p4 = pneg %p5349_p11  ;;  %p5354_p12 = por %p5353_p8, %p5352_p9 }
  0x77   : > { %p5355_p1 = pnand %p5354_p12, %p5350_p4 }
  0x79   : > { %5358 = shalt.err (!%p5355_p1)
}
  0x7a   : > { %s5359_s1 = scalar_lea.vmem %s310_s19, 512  ;;  %s5432_s21 = smov [#allocation10]  }
  0x7b   : > { %p5360_p10 = scmp.ne.s32.totalorder %s310_s19, %s5359_s1  ;;  %s5364_s22 = sshll.u32 %s5432_s21, 4  ;;  %s5365_s22 = int_to_ptr.vmem [resolvable:$false] %s5364_s22 }
  0x7c   : > { %s5366_s16 = scalar_lea.vmem %s5365_s22, 1024  ;;  %p5367_p3 = scmp.lt.s32.totalorder %s310_s19, %s5365_s22 }
  0x7d   : > { %p5362_p13 = pnand %p5360_p10, %p5573_p5  ;;  %p5368_p6 = scmp.lt.s32.totalorder %s5366_s16, %s5359_s1 }
  0x7f   : > { %p5363_p2 = pneg %p5362_p13  ;;  %p5369_p7 = por %p5368_p6, %p5367_p3 }
  0x81   : > { %p5370_p11 = pnand %p5369_p7, %p5363_p2 }
  0x83   : > { %5373 = shalt.err (!%p5370_p11)
}
  0x84   : > { %s6997_s10 = smov 16   ;;  %s6998_s29 = smov 256  }
  0x85   : > { %s6999_s27 = smov 1024   ;;  %p7000_p5 = scmp.ne.s32.totalorder %s6987_s12, 0 }
  0x86   : > { %4772 = dma.hbm_to_vmem [thread:$0]  (!%p5542_p0), %s5631_s8, 512, %s310_s19, %s5567_s26, %s6999_s27, %s6998_s29, %s6997_s10  }
  0x87   : > { %321 = sbr.rel (%p7000_p5) target bundleno = 1134 (0x46e), region = 48 }
  0x8c   : > { %p7001_p4 = scmp.eq.s32.totalorder %s5494_s28, 0 }
  0x8e   : > { %5391 = dma.done.wait (%p7001_p4), [#allocation5], 1536   ;;  %p7002_p9 = pmov %p7001_p4 }
  0x8f   : > { %p7003_p8 = pmov %p7001_p4 }
  0x90   : > { %5393 = vsyncadd (%p7002_p9), [#allocation5], 4294965760 }
  0x91   : > { %5395 = dma.done.wait (%p7003_p8), [#allocation7], 128   ;;  %p7004_p12 = pmov %p7001_p4 }
  0x92   : > { %s331_s18 = sand.u32 1, %s5494_s28   ;;  %s333_s26 = sand.u32 1, %s5412_s25  }
  0x93   : > { %5397 = vsyncadd (%p7004_p12), [#allocation7], 4294967168  ;;  %s4734_s14 = smul.u32 2000, %s333_s26  ;;  %s332_s12 = scalar_lea.sflag [#allocation5], %s331_s18 }
  0x94   : > { %p7005_p0 = scmp.ne.s32.totalorder %s6986_s11, 0 }
  0x95   : > { %s5673_s8 = scalar_lea.vmem [#allocation8], %s4734_s14 }
  0x96   : > { %5399 = dma.done.wait (%p7005_p0), %s332_s12, 32576  }
  0x97   : > { %5401 = vsyncadd (%p7005_p0), %s332_s12, 4294934720  ;;  %s4275_s17 = sshll.u32 %s333_s26, 2  ;;  %s4276_s20 = sshll.u32 %s333_s26, 5 }
  0x98   : > { %s5679_s19 = scalar_lea.vmem [#allocation9], %s4275_s17  ;;  %s5681_s23 = scalar_lea.vmem [#allocation10], %s4276_s20 }
  0x99   : > { %p7006_p1 = pmov %p7001_p4 }
  0x9b   : > { %5403 = dma.done.wait (%p7006_p1), [#allocation7], 16   ;;  %p7007_p10 = pmov %p7006_p1 }
  0x9c   : > { %p7008_p13 = scmp.ne.s32.totalorder %s5494_s28, 0 }
  0x9d   : > { %5405 = vsyncadd (%p7007_p10), [#allocation7], 4294967280 }
  0x9e   : > { %400 = sbr.rel (%p7008_p13) target bundleno = 436 (0x1b4), region = 76 }
  0xa3   : > { %v421_v0 = vld [vmem:[#allocation4 + $0x40] sm:$0x33]  ;;  %vm540_vm0 = vcmask 1041408   ;;  %v422_v1 = vld [vmem:[#allocation4 + $0x48] sm:$0x33]  ;;  %v5433_v24 = vmov 0   ;;  %v427_v46 = vlaneseq }
  0xa4   : > { %v413_v2 = vld [vmem:[#allocation4] sm:$0xff]  ;;  %v4288_v3 = vcombine.high %v421_v0, %v421_v0  ;;  %v4290_v4 = vcombine.high %v422_v1, %v422_v1  ;;  %v4287_v5 = vcombine.low %v421_v0, %v421_v0  ;;  %v4289_v6 = vcombine.low %v422_v1, %v422_v1  ;;  %v414_v8 = vld [vmem:[#allocation4 + $0x8] sm:$0xff]  ;;  %v423_v12 = vld [vmem:[#allocation4 + $0x50] sm:$0x33]  ;;  %597 = vmatprep.mubr.bf16.mxu0 %v5433_v24 }
  0xa5   : > { %v417_v7 = vld [vmem:[#allocation4 + $0x20] sm:$0xff]  ;;  %v418_v9 = vld [vmem:[#allocation4 + $0x28] sm:$0xff]  ;;  %v424_v15 = vld [vmem:[#allocation4 + $0x58] sm:$0x33]  ;;  %v4292_v20 = vcombine.high %v423_v12, %v423_v12  ;;  %v4291_v22 = vcombine.low %v423_v12, %v423_v12  ;;  %670 = vmatprep.mubr.bf16.mxu1 %v5433_v24  ;;  %vm527_vm1 = vcmask 162816   ;;  %vm1148_vm2 = vcmask 80896  }
  0xa6   : > { %v4280_v10 = vcombine.high %v413_v2, %v417_v7  ;;  %v4282_v11 = vcombine.high %v414_v8, %v418_v9  ;;  %4295 = vmatprep.subr.msk.bf16.mxu0 %vm540_vm0, %v4288_v3  ;;  %4300 = vmatprep.subr.msk.bf16.mxu1 %vm540_vm0, %v4290_v4  ;;  %v542_v13 = vsel %vm540_vm0, %v4287_v5, 0  ;;  %v548_v14 = vsel %vm540_vm0, %v4289_v6, 0  ;;  %v401_v18 = vld [vmem:[%s6935_s0] sm:$0xff]  ;;  %v402_v19 = vld [vmem:[%s6935_s0 + $0x8] sm:$0xff]  ;;  %v415_v25 = vld [vmem:[#allocation4 + $0x10] sm:$0xff] }
  0xa7   : > { %578 = vmatpush1.bf16.msra.mxu0 %v542_v13  ;;  %651 = vmatpush1.bf16.msra.mxu1 %v548_v14  ;;  %v4279_v16 = vcombine.low %v413_v2, %v417_v7  ;;  %v4281_v17 = vcombine.low %v414_v8, %v418_v9  ;;  %v4294_v21 = vcombine.high %v424_v15, %v424_v15  ;;  %v419_v27 = vld [vmem:[#allocation4 + $0x30] sm:$0xff]  ;;  %v416_v28 = vld [vmem:[#allocation4 + $0x18] sm:$0xff]  ;;  %v554_v30 = vsel %vm540_vm0, %v4291_v22, 0  ;;  %v405_v39 = vld [vmem:[%s6935_s0 + $0x20] sm:$0xff] }
  0xa8   : > { %579 = vmatprep.subr.bf16.mxu0 %v4280_v10  ;;  %652 = vmatprep.subr.bf16.mxu1 %v4282_v11  ;;  %v4293_v23 = vcombine.low %v424_v15, %v424_v15  ;;  %v409_v26 = vpack.c.bf16 %v402_v19, %v401_v18  ;;  %v420_v29 = vld [vmem:[#allocation4 + $0x38] sm:$0xff]  ;;  %v4284_v32 = vcombine.high %v415_v25, %v419_v27  ;;  %v403_v34 = vld [vmem:[%s6935_s0 + $0x10] sm:$0xff]  ;;  %v406_v40 = vld [vmem:[%s6935_s0 + $0x28] sm:$0xff]  ;;  %v5434_v45 = vmov 0.0  }
  0xa9   : > { %v4286_v33 = vcombine.high %v416_v28, %v420_v29  ;;  %v404_v35 = vld [vmem:[%s6935_s0 + $0x18] sm:$0xff]  ;;  %v4283_v36 = vcombine.low %v415_v25, %v419_v27  ;;  %v4285_v37 = vcombine.low %v416_v28, %v420_v29  ;;  %v411_v41 = vpack.c.bf16 %v406_v40, %v405_v39  ;;  %v407_v42 = vld [vmem:[%s6935_s0 + $0x30] sm:$0xff]  ;;  %1149 = vst.msk [vmem:[#allocation3] sm:$0xff] %vm1148_vm2, %v5434_v45  ;;  %v5741_v50 = vld [vmem:[#allocation6] sm:$0xff] }
  0xaa   : > { %v560_v31 = vsel %vm540_vm0, %v4293_v23, 0  ;;  %v410_v38 = vpack.c.bf16 %v404_v35, %v403_v34  ;;  %v408_v43 = vld [vmem:[%s6935_s0 + $0x38] sm:$0xff]  ;;  %1150 = vst.msk [vmem:[#allocation3 + $0x8] sm:$0xff] %vm1148_vm2, %v5434_v45  ;;  %1151 = vst.msk [vmem:[#allocation3 + $0x10] sm:$0xff] %vm1148_vm2, %v5434_v45  ;;  %v5737_v47 = vshrl.u32 %v427_v46, 7  ;;  %vm1116_vm3 = vcmask 1043456  }
  0xab   : > { %580 = vmatpush1.bf16.msra.mxu0 %v4279_v16  ;;  %653 = vmatpush1.bf16.msra.mxu1 %v4281_v17  ;;  %v412_v44 = vpack.c.bf16 %v408_v43, %v407_v42  ;;  %1152 = vst.msk [vmem:[#allocation3 + $0x18] sm:$0xff] %vm1148_vm2, %v5434_v45  ;;  %1153 = vst.msk [vmem:[#allocation3 + $0x20] sm:$0xff] %vm1148_vm2, %v5434_v45  ;;  %vm1117_vm4 = vcmask 850948  }
  0xac   : > { %4305 = vmatprep.subr.msk.bf16.mxu0 %vm540_vm0, %v4292_v20  ;;  %4310 = vmatprep.subr.msk.bf16.mxu1 %vm540_vm0, %v4294_v21  ;;  %1154 = vst.msk [vmem:[#allocation3 + $0x28] sm:$0xff] %vm1148_vm2, %v5434_v45  ;;  %1155 = vst.msk [vmem:[#allocation3 + $0x30] sm:$0xff] %vm1148_vm2, %v5434_v45  ;;  %v429_v48 = vsub.s32 0, %v5737_v47  ;;  %v437_v49 = vsub.s32 2, %v5737_v47  ;;  %v433_v51 = vsub.s32 1, %v5737_v47  ;;  %v441_v52 = vsub.s32 3, %v5737_v47 }
  0xad   : > { %1156 = vst.msk [vmem:[#allocation3 + $0x38] sm:$0xff] %vm1148_vm2, %v5434_v45  ;;  %vm5809_vm5 = vmor %vm1117_vm4, %vm1116_vm3 }
  0xae   : > { %4296 = vmatmul.mubr.msk.bf16.vlgmr.msra.gmra.mxu0 %vm527_vm1, %v409_v26  ;;  %4301 = vmatmul.mubr.msk.bf16.vlgmr.msra.gmra.mxu1 %vm527_vm1, %v409_v26  ;;  %v5746_v53 = vrot.slane %v5741_v50, %v429_v48  ;;  %v5749_v54 = vrot.slane %v5741_v50, %v437_v49  ;;  %v5752_v55 = vrot.slane %v5741_v50, %v433_v51 }
  0xaf   : > { %724 = vmatpush1.bf16.msra.mxu0 %v554_v30  ;;  %797 = vmatpush1.bf16.msra.mxu1 %v560_v31  ;;  %v5755_v56 = vrot.slane %v5741_v50, %v441_v52 }
  0xb0   : > { %607 = vmatprep.mubr.bf16.mxu0 %v5433_v24  ;;  %680 = vmatprep.mubr.bf16.mxu1 %v5433_v24 }
  0xb1   : > { %725 = vmatprep.subr.bf16.mxu0 %v4284_v32  ;;  %798 = vmatprep.subr.bf16.mxu1 %v4286_v33 }
  0xb3   : > { %726 = vmatpush1.bf16.msra.mxu0 %v4283_v36  ;;  %799 = vmatpush1.bf16.msra.mxu1 %v4285_v37 }
  0xb6   : > { %4297 = vmatmul.mubr.msk.bf16.gmra.mxu0 %vm527_vm1, %v410_v38  ;;  %4302 = vmatmul.mubr.msk.bf16.gmra.mxu1 %vm527_vm1, %v410_v38 }
  0xb7   : > { %617 = vmatprep.mubr.bf16.mxu0 %v5433_v24  ;;  %690 = vmatprep.mubr.bf16.mxu1 %v5433_v24 }
  0xbe   : > { %4298 = vmatmul.mubr.msk.bf16.gmra.mxu0 %vm527_vm1, %v411_v41  ;;  %4303 = vmatmul.mubr.msk.bf16.gmra.mxu1 %vm527_vm1, %v411_v41 }
  0xbf   : > { %627 = vmatprep.mubr.bf16.mxu0 %v5433_v24  ;;  %700 = vmatprep.mubr.bf16.mxu1 %v5433_v24 }
  0xc6   : > { %4299 = vmatmul.mubr.msk.bf16.gmra.mxu0 %vm527_vm1, %v412_v44  ;;  %4304 = vmatmul.mubr.msk.bf16.gmra.mxu1 %vm527_vm1, %v412_v44 }
  0xc7   : > { %743 = vmatprep.mubr.bf16.mxu0 %v5433_v24  ;;  %816 = vmatprep.mubr.bf16.mxu1 %v5433_v24 }
  0xce   : > { %4306 = vmatmul.mubr.msk.bf16.vlgmr.msra.gmra.mxu0 %vm527_vm1, %v409_v26  ;;  %4311 = vmatmul.mubr.msk.bf16.vlgmr.msra.gmra.mxu1 %vm527_vm1, %v409_v26 }
  0xcf   : > { %753 = vmatprep.mubr.bf16.mxu0 %v5433_v24  ;;  %826 = vmatprep.mubr.bf16.mxu1 %v5433_v24 }
  0xd6   : > { %4307 = vmatmul.mubr.msk.bf16.gmra.mxu0 %vm527_vm1, %v410_v38  ;;  %4312 = vmatmul.mubr.msk.bf16.gmra.mxu1 %vm527_vm1, %v410_v38 }
  0xd7   : > { %763 = vmatprep.mubr.bf16.mxu0 %v5433_v24  ;;  %836 = vmatprep.mubr.bf16.mxu1 %v5433_v24 }
  0xde   : > { %4308 = vmatmul.mubr.msk.bf16.gmra.mxu0 %vm527_vm1, %v411_v41  ;;  %4313 = vmatmul.mubr.msk.bf16.gmra.mxu1 %vm527_vm1, %v411_v41 }
  0xdf   : > { %773 = vmatprep.mubr.bf16.mxu0 %v5433_v24  ;;  %846 = vmatprep.mubr.bf16.mxu1 %v5433_v24 }
  0xe6   : > { %4309 = vmatmul.mubr.msk.bf16.gmra.mxu0 %vm527_vm1, %v412_v44  ;;  %4314 = vmatmul.mubr.msk.bf16.gmra.mxu1 %vm527_vm1, %v412_v44 }
 0x16e   : > { %v599_v57 = vpop.f32.mrf.mxu0  ;;  %v672_v58 = vpop.f32.mrf.mxu1 }
 0x16f   : > { %v600_v59 = vadd.f32 %v599_v57, %v5746_v53  ;;  %v673_v60 = vadd.f32 %v672_v58, %v5749_v54 }
 0x170   : > { %v601_v61 = vpop.f32.mrf.mxu0  ;;  %v674_v62 = vpop.f32.mrf.mxu1 }
 0x171   : > { %v602_v63 = vadd.f32 %v601_v61, %v5752_v55  ;;  %v675_v0 = vadd.f32 %v674_v62, %v5755_v56  ;;  %v857_v3 = vmax.f32 %v600_v59, 0.0  ;;  %v859_v4 = vmax.f32 %v673_v60, 0.0 }
 0x172   : > { %v603_v1 = vpop.f32.mrf.mxu0  ;;  %v676_v2 = vpop.f32.mrf.mxu1 }
 0x173   : > { %v858_v5 = vmax.f32 %v602_v63, 0.0  ;;  %v860_v6 = vmax.f32 %v675_v0, 0.0  ;;  %v604_v7 = vadd.f32 %v603_v1, %v5746_v53  ;;  %v677_v8 = vadd.f32 %v676_v2, %v5749_v54 }
 0x174   : > { %v605_v9 = vpop.f32.mrf.mxu0  ;;  %v678_v10 = vpop.f32.mrf.mxu1 }
 0x175   : > { %v4701_v11 = vpack.c.bf16 %v858_v5, %v857_v3  ;;  %v4702_v12 = vpack.c.bf16 %v860_v6, %v859_v4  ;;  %v606_v13 = vadd.f32 %v605_v9, %v5752_v55  ;;  %v679_v14 = vadd.f32 %v678_v10, %v5755_v56 }
 0x176   : > { %v609_v15 = vpop.f32.mrf.mxu0  ;;  %v682_v16 = vpop.f32.mrf.mxu1  ;;  %v865_v19 = vmax.f32 %v604_v7, 0.0  ;;  %v867_v20 = vmax.f32 %v677_v8, 0.0 }
 0x177   : > { %1113 = vst [vmem:[#allocation2] sm:$0xff] %v4701_v11  ;;  %1114 = vst [vmem:[#allocation2 + $0x8] sm:$0xff] %v4702_v12  ;;  %v610_v17 = vadd.f32 %v609_v15, %v5746_v53  ;;  %v683_v18 = vadd.f32 %v682_v16, %v5749_v54  ;;  %v866_v21 = vmax.f32 %v606_v13, 0.0  ;;  %v868_v22 = vmax.f32 %v679_v14, 0.0 }
 0x178   : > { %v611_v23 = vpop.f32.mrf.mxu0  ;;  %v684_v24 = vpop.f32.mrf.mxu1  ;;  %v445_v15 = vsub.s32 4, %v5737_v47  ;;  %v453_v16 = vsub.s32 6, %v5737_v47 }
 0x179   : > { %v612_v25 = vadd.f32 %v611_v23, %v5752_v55  ;;  %v685_v26 = vadd.f32 %v684_v24, %v5755_v56  ;;  %v4705_v27 = vpack.c.bf16 %v866_v21, %v865_v19  ;;  %v4706_v28 = vpack.c.bf16 %v868_v22, %v867_v20 }
 0x17a   : > { %v613_v29 = vpop.f32.mrf.mxu0  ;;  %v686_v30 = vpop.f32.mrf.mxu1  ;;  %v873_v31 = vmax.f32 %v610_v17, 0.0  ;;  %v875_v32 = vmax.f32 %v683_v18, 0.0 }
 0x17b   : > { %v874_v33 = vmax.f32 %v612_v25, 0.0  ;;  %v876_v34 = vmax.f32 %v685_v26, 0.0  ;;  %1120 = vst [vmem:[#allocation2 + $0x20] sm:$0xff] %v4705_v27  ;;  %1121 = vst [vmem:[#allocation2 + $0x28] sm:$0xff] %v4706_v28  ;;  %v614_v35 = vadd.f32 %v613_v29, %v5746_v53  ;;  %v687_v36 = vadd.f32 %v686_v30, %v5749_v54 }
 0x17c   : > { %v615_v37 = vpop.f32.mrf.mxu0  ;;  %v688_v38 = vpop.f32.mrf.mxu1  ;;  %v449_v27 = vsub.s32 5, %v5737_v47  ;;  %v457_v28 = vsub.s32 7, %v5737_v47 }
 0x17d   : > { %v4709_v39 = vpack.c.bf16 %v874_v33, %v873_v31  ;;  %v4710_v40 = vpack.c.bf16 %v876_v34, %v875_v32  ;;  %v616_v41 = vadd.f32 %v615_v37, %v5752_v55  ;;  %v689_v42 = vadd.f32 %v688_v38, %v5755_v56 }
 0x17e   : > { %v619_v43 = vpop.f32.mrf.mxu0  ;;  %v692_v44 = vpop.f32.mrf.mxu1  ;;  %v881_v48 = vmax.f32 %v614_v35, 0.0  ;;  %v883_v49 = vmax.f32 %v687_v36, 0.0  ;;  %v5790_v33 = vrot.slane %v5741_v50, %v445_v15  ;;  %v5793_v34 = vrot.slane %v5741_v50, %v453_v16 }
 0x17f   : > { %1124 = vst [vmem:[#allocation2 + $0x40] sm:$0xff] %v4709_v39  ;;  %1125 = vst [vmem:[#allocation2 + $0x48] sm:$0xff] %v4710_v40  ;;  %v620_v45 = vadd.f32 %v619_v43, %v5746_v53  ;;  %v693_v46 = vadd.f32 %v692_v44, %v5749_v54  ;;  %v882_v51 = vmax.f32 %v616_v41, 0.0  ;;  %v884_v52 = vmax.f32 %v689_v42, 0.0 }
 0x180   : > { %v621_v57 = vpop.f32.mrf.mxu0  ;;  %v694_v58 = vpop.f32.mrf.mxu1  ;;  %v5798_v44 = vrot.slane %v5741_v50, %v449_v27 }
 0x181   : > { %v622_v59 = vadd.f32 %v621_v57, %v5752_v55  ;;  %v695_v60 = vadd.f32 %v694_v58, %v5755_v56  ;;  %v4713_v61 = vpack.c.bf16 %v882_v51, %v881_v48  ;;  %v4714_v62 = vpack.c.bf16 %v884_v52, %v883_v49 }
 0x182   : > { %v623_v63 = vpop.f32.mrf.mxu0  ;;  %v696_v0 = vpop.f32.mrf.mxu1  ;;  %v889_v1 = vmax.f32 %v620_v45, 0.0  ;;  %v891_v2 = vmax.f32 %v693_v46, 0.0  ;;  %v5801_v45 = vrot.slane %v5741_v50, %v457_v28 }
 0x183   : > { %v890_v3 = vmax.f32 %v622_v59, 0.0  ;;  %v892_v4 = vmax.f32 %v695_v60, 0.0  ;;  %1128 = vst [vmem:[#allocation2 + $0x60] sm:$0xff] %v4713_v61  ;;  %1129 = vst [vmem:[#allocation2 + $0x68] sm:$0xff] %v4714_v62  ;;  %v624_v5 = vadd.f32 %v623_v63, %v5746_v53  ;;  %v697_v6 = vadd.f32 %v696_v0, %v5749_v54 }
 0x184   : > { %v625_v7 = vpop.f32.mrf.mxu0  ;;  %v698_v8 = vpop.f32.mrf.mxu1 }
 0x185   : > { %v4717_v9 = vpack.c.bf16 %v890_v3, %v889_v1  ;;  %v4718_v10 = vpack.c.bf16 %v892_v4, %v891_v2  ;;  %v626_v11 = vadd.f32 %v625_v7, %v5752_v55  ;;  %v699_v12 = vadd.f32 %v698_v8, %v5755_v56 }
 0x186   : > { %v629_v13 = vpop.f32.mrf.mxu0  ;;  %v702_v14 = vpop.f32.mrf.mxu1  ;;  %v897_v19 = vmax.f32 %v624_v5, 0.0  ;;  %v899_v20 = vmax.f32 %v697_v6, 0.0 }
 0x187   : > { %1132 = vst [vmem:[#allocation2 + $0x80] sm:$0xff] %v4717_v9  ;;  %1133 = vst [vmem:[#allocation2 + $0x88] sm:$0xff] %v4718_v10  ;;  %v630_v17 = vadd.f32 %v629_v13, %v5746_v53  ;;  %v703_v18 = vadd.f32 %v702_v14, %v5749_v54  ;;  %v898_v21 = vmax.f32 %v626_v11, 0.0  ;;  %v900_v22 = vmax.f32 %v699_v12, 0.0 }
 0x188   : > { %v631_v23 = vpop.f32.mrf.mxu0  ;;  %v704_v24 = vpop.f32.mrf.mxu1 }
 0x189   : > { %v632_v25 = vadd.f32 %v631_v23, %v5752_v55  ;;  %v705_v26 = vadd.f32 %v704_v24, %v5755_v56  ;;  %v4721_v29 = vpack.c.bf16 %v898_v21, %v897_v19  ;;  %v4722_v30 = vpack.c.bf16 %v900_v22, %v899_v20 }
 0x18a   : > { %v633_v31 = vpop.f32.mrf.mxu0  ;;  %v706_v32 = vpop.f32.mrf.mxu1  ;;  %v905_v35 = vmax.f32 %v630_v17, 0.0  ;;  %v907_v36 = vmax.f32 %v703_v18, 0.0 }
 0x18b   : > { %v906_v37 = vmax.f32 %v632_v25, 0.0  ;;  %v908_v38 = vmax.f32 %v705_v26, 0.0  ;;  %1136 = vst [vmem:[#allocation2 + $0xa0] sm:$0xff] %v4721_v29  ;;  %1137 = vst [vmem:[#allocation2 + $0xa8] sm:$0xff] %v4722_v30  ;;  %v634_v39 = vadd.f32 %v633_v31, %v5746_v53  ;;  %v707_v47 = vadd.f32 %v706_v32, %v5749_v54 }
 0x18c   : > { %v635_v40 = vpop.f32.mrf.mxu0  ;;  %v708_v41 = vpop.f32.mrf.mxu1 }
 0x18d   : > { %v4725_v42 = vpack.c.bf16 %v906_v37, %v905_v35  ;;  %v4726_v43 = vpack.c.bf16 %v908_v38, %v907_v36  ;;  %v636_v46 = vadd.f32 %v635_v40, %v5752_v55  ;;  %v709_v48 = vadd.f32 %v708_v41, %v5755_v56 }
 0x18e   : > { %v745_v49 = vpop.f32.mrf.mxu0  ;;  %v818_v51 = vpop.f32.mrf.mxu1  ;;  %v913_v52 = vmax.f32 %v634_v39, 0.0  ;;  %v915_v57 = vmax.f32 %v707_v47, 0.0 }
 0x18f   : > { %1140 = vst [vmem:[#allocation2 + $0xc0] sm:$0xff] %v4725_v42  ;;  %1141 = vst [vmem:[#allocation2 + $0xc8] sm:$0xff] %v4726_v43  ;;  %v746_v53 = vadd.f32 %v745_v49, %v5790_v33  ;;  %v819_v54 = vadd.f32 %v818_v51, %v5793_v34  ;;  %v914_v58 = vmax.f32 %v636_v46, 0.0  ;;  %v916_v59 = vmax.f32 %v709_v48, 0.0 }
 0x190   : > { %v747_v60 = vpop.f32.mrf.mxu0  ;;  %v820_v61 = vpop.f32.mrf.mxu1 }
 0x191   : > { %v748_v50 = vadd.f32 %v747_v60, %v5798_v44  ;;  %v821_v55 = vadd.f32 %v820_v61, %v5801_v45  ;;  %v4729_v56 = vpack.c.bf16 %v914_v58, %v913_v52  ;;  %v4730_v62 = vpack.c.bf16 %v916_v59, %v915_v57 }
 0x192   : > { %v749_v63 = vpop.f32.mrf.mxu0  ;;  %v822_v0 = vpop.f32.mrf.mxu1  ;;  %v861_v1 = vmax.f32 %v746_v53, 0.0  ;;  %v863_v2 = vmax.f32 %v819_v54, 0.0 }
 0x193   : > { %v862_v3 = vmax.f32 %v748_v50, 0.0  ;;  %v864_v4 = vmax.f32 %v821_v55, 0.0  ;;  %1144 = vst [vmem:[#allocation2 + $0xe0] sm:$0xff] %v4729_v56  ;;  %1145 = vst [vmem:[#allocation2 + $0xe8] sm:$0xff] %v4730_v62  ;;  %v750_v6 = vadd.f32 %v749_v63, %v5790_v33  ;;  %v823_v7 = vadd.f32 %v822_v0, %v5793_v34 }
 0x194   : > { %v751_v8 = vpop.f32.mrf.mxu0  ;;  %v824_v9 = vpop.f32.mrf.mxu1 }
 0x195   : > { %v4703_v10 = vpack.c.bf16 %v862_v3, %v861_v1  ;;  %v4704_v11 = vpack.c.bf16 %v864_v4, %v863_v2  ;;  %v752_v12 = vadd.f32 %v751_v8, %v5798_v44  ;;  %v825_v13 = vadd.f32 %v824_v9, %v5801_v45 }
 0x196   : > { %v755_v14 = vpop.f32.mrf.mxu0  ;;  %v828_v15 = vpop.f32.mrf.mxu1  ;;  %v869_v18 = vmax.f32 %v750_v6, 0.0  ;;  %v871_v19 = vmax.f32 %v823_v7, 0.0 }
 0x197   : > { %1115 = vst [vmem:[#allocation2 + $0x10] sm:$0xff] %v4703_v10  ;;  %1119 = vst.msk [vmem:[#allocation2 + $0x18] sm:$0xff] %vm5809_vm5, %v4704_v11  ;;  %v756_v16 = vadd.f32 %v755_v14, %v5790_v33  ;;  %v829_v17 = vadd.f32 %v828_v15, %v5793_v34  ;;  %v870_v20 = vmax.f32 %v752_v12, 0.0  ;;  %v872_v21 = vmax.f32 %v825_v13, 0.0 }
 0x198   : > { %v757_v22 = vpop.f32.mrf.mxu0  ;;  %v830_v23 = vpop.f32.mrf.mxu1 }
 0x199   : > { %v758_v24 = vadd.f32 %v757_v22, %v5798_v44  ;;  %v831_v25 = vadd.f32 %v830_v23, %v5801_v45  ;;  %v4707_v26 = vpack.c.bf16 %v870_v20, %v869_v18  ;;  %v4708_v27 = vpack.c.bf16 %v872_v21, %v871_v19 }
 0x19a   : > { %v759_v28 = vpop.f32.mrf.mxu0  ;;  %v832_v29 = vpop.f32.mrf.mxu1  ;;  %v877_v30 = vmax.f32 %v756_v16, 0.0  ;;  %v879_v31 = vmax.f32 %v829_v17, 0.0 }
 0x19b   : > { %v878_v32 = vmax.f32 %v758_v24, 0.0  ;;  %v880_v35 = vmax.f32 %v831_v25, 0.0  ;;  %1122 = vst [vmem:[#allocation2 + $0x30] sm:$0xff] %v4707_v26  ;;  %1123 = vst.msk [vmem:[#allocation2 + $0x38] sm:$0xff] %vm5809_vm5, %v4708_v27  ;;  %v760_v36 = vadd.f32 %v759_v28, %v5790_v33  ;;  %v833_v37 = vadd.f32 %v832_v29, %v5793_v34 }
 0x19c   : > { %v761_v38 = vpop.f32.mrf.mxu0  ;;  %v834_v39 = vpop.f32.mrf.mxu1 }
 0x19d   : > { %v4711_v47 = vpack.c.bf16 %v878_v32, %v877_v30  ;;  %v4712_v40 = vpack.c.bf16 %v880_v35, %v879_v31  ;;  %v762_v41 = vadd.f32 %v761_v38, %v5798_v44  ;;  %v835_v42 = vadd.f32 %v834_v39, %v5801_v45 }
 0x19e   : > { %v765_v43 = vpop.f32.mrf.mxu0  ;;  %v838_v46 = vpop.f32.mrf.mxu1  ;;  %v885_v51 = vmax.f32 %v760_v36, 0.0  ;;  %v887_v53 = vmax.f32 %v833_v37, 0.0 }
 0x19f   : > { %1126 = vst [vmem:[#allocation2 + $0x50] sm:$0xff] %v4711_v47  ;;  %1127 = vst.msk [vmem:[#allocation2 + $0x58] sm:$0xff] %vm5809_vm5, %v4712_v40  ;;  %v766_v48 = vadd.f32 %v765_v43, %v5790_v33  ;;  %v839_v49 = vadd.f32 %v838_v46, %v5793_v34  ;;  %v886_v54 = vmax.f32 %v762_v41, 0.0  ;;  %v888_v52 = vmax.f32 %v835_v42, 0.0 }
 0x1a0   : > { %v767_v57 = vpop.f32.mrf.mxu0  ;;  %v840_v58 = vpop.f32.mrf.mxu1 }
 0x1a1   : > { %v768_v59 = vadd.f32 %v767_v57, %v5798_v44  ;;  %v841_v60 = vadd.f32 %v840_v58, %v5801_v45  ;;  %v4715_v61 = vpack.c.bf16 %v886_v54, %v885_v51  ;;  %v4716_v50 = vpack.c.bf16 %v888_v52, %v887_v53 }
 0x1a2   : > { %v769_v55 = vpop.f32.mrf.mxu0  ;;  %v842_v56 = vpop.f32.mrf.mxu1  ;;  %v893_v62 = vmax.f32 %v766_v48, 0.0  ;;  %v895_v63 = vmax.f32 %v839_v49, 0.0 }
 0x1a3   : > { %v894_v0 = vmax.f32 %v768_v59, 0.0  ;;  %v896_v1 = vmax.f32 %v841_v60, 0.0  ;;  %1130 = vst [vmem:[#allocation2 + $0x70] sm:$0xff] %v4715_v61  ;;  %1131 = vst.msk [vmem:[#allocation2 + $0x78] sm:$0xff] %vm5809_vm5, %v4716_v50  ;;  %v770_v2 = vadd.f32 %v769_v55, %v5790_v33  ;;  %v843_v3 = vadd.f32 %v842_v56, %v5793_v34 }
 0x1a4   : > { %v771_v4 = vpop.f32.mrf.mxu0  ;;  %v844_v6 = vpop.f32.mrf.mxu1 }
 0x1a5   : > { %v4719_v7 = vpack.c.bf16 %v894_v0, %v893_v62  ;;  %v4720_v8 = vpack.c.bf16 %v896_v1, %v895_v63  ;;  %v772_v9 = vadd.f32 %v771_v4, %v5798_v44  ;;  %v845_v10 = vadd.f32 %v844_v6, %v5801_v45 }
 0x1a6   : > { %v775_v11 = vpop.f32.mrf.mxu0  ;;  %v848_v12 = vpop.f32.mrf.mxu1  ;;  %v901_v15 = vmax.f32 %v770_v2, 0.0  ;;  %v903_v16 = vmax.f32 %v843_v3, 0.0 }
 0x1a7   : > { %1134 = vst [vmem:[#allocation2 + $0x90] sm:$0xff] %v4719_v7  ;;  %1135 = vst.msk [vmem:[#allocation2 + $0x98] sm:$0xff] %vm5809_vm5, %v4720_v8  ;;  %v776_v13 = vadd.f32 %v775_v11, %v5790_v33  ;;  %v849_v14 = vadd.f32 %v848_v12, %v5793_v34  ;;  %v902_v17 = vmax.f32 %v772_v9, 0.0  ;;  %v904_v18 = vmax.f32 %v845_v10, 0.0 }
 0x1a8   : > { %v777_v19 = vpop.f32.mrf.mxu0  ;;  %v850_v20 = vpop.f32.mrf.mxu1 }
 0x1a9   : > { %v778_v21 = vadd.f32 %v777_v19, %v5798_v44  ;;  %v851_v22 = vadd.f32 %v850_v20, %v5801_v45  ;;  %v4723_v23 = vpack.c.bf16 %v902_v17, %v901_v15  ;;  %v4724_v24 = vpack.c.bf16 %v904_v18, %v903_v16 }
 0x1aa   : > { %v779_v25 = vpop.f32.mrf.mxu0  ;;  %v852_v26 = vpop.f32.mrf.mxu1  ;;  %v909_v27 = vmax.f32 %v776_v13, 0.0  ;;  %v911_v28 = vmax.f32 %v849_v14, 0.0 }
 0x1ab   : > { %v910_v29 = vmax.f32 %v778_v21, 0.0  ;;  %v912_v30 = vmax.f32 %v851_v22, 0.0  ;;  %1138 = vst [vmem:[#allocation2 + $0xb0] sm:$0xff] %v4723_v23  ;;  %1139 = vst.msk [vmem:[#allocation2 + $0xb8] sm:$0xff] %vm5809_vm5, %v4724_v24  ;;  %v780_v31 = vadd.f32 %v779_v25, %v5790_v33  ;;  %v853_v32 = vadd.f32 %v852_v26, %v5793_v34 }
 0x1ac   : > { %v781_v35 = vpop.f32.mrf.mxu0  ;;  %v854_v36 = vpop.f32.mrf.mxu1 }
 0x1ad   : > { %v4727_v37 = vpack.c.bf16 %v910_v29, %v909_v27  ;;  %v4728_v38 = vpack.c.bf16 %v912_v30, %v911_v28  ;;  %v782_v39 = vadd.f32 %v781_v35, %v5798_v44  ;;  %v855_v47 = vadd.f32 %v854_v36, %v5801_v45 }
 0x1ae   : > { %v917_v40 = vmax.f32 %v780_v31, 0.0  ;;  %v919_v41 = vmax.f32 %v853_v32, 0.0 }
 0x1af   : > { %1142 = vst [vmem:[#allocation2 + $0xd0] sm:$0xff] %v4727_v37  ;;  %1143 = vst.msk [vmem:[#allocation2 + $0xd8] sm:$0xff] %vm5809_vm5, %v4728_v38  ;;  %v918_v42 = vmax.f32 %v782_v39, 0.0  ;;  %v920_v43 = vmax.f32 %v855_v47, 0.0 }
 0x1b1   : > { %v4731_v46 = vpack.c.bf16 %v918_v42, %v917_v40  ;;  %v4732_v33 = vpack.c.bf16 %v920_v43, %v919_v41 }
 0x1b3   : > { %1146 = vst [vmem:[#allocation2 + $0xf0] sm:$0xff] %v4731_v46  ;;  %1147 = vst.msk [vmem:[#allocation2 + $0xf8] sm:$0xff] %vm5809_vm5, %v4732_v33 }
 0x1b4 PF: > { %v4830_v34 = vld [vmem:[%s5673_s8 + $0xe4] ss:$16 sps:$4 sm:$0xff]   ;;  %v4834_v45 = vld [vmem:[%s5673_s8 + $0xe0] ss:$16 sps:$4 sm:$0xff]   ;;  %v1157_v29 = vld [vmem:[#allocation2] sm:$0xff]  ;;  %vm2867_vm6 = vcmask 850944  }
 0x1b5   : > { %v4832_v44 = vld [vmem:[%s5673_s8 + $0x2e4] ss:$16 sps:$4 sm:$0xff]   ;;  %2893 = vmatprep.subr.bf16.mxu0 %v4830_v34  ;;  %v4835_v48 = vld [vmem:[%s5673_s8 + $0x2e0] ss:$16 sps:$4 sm:$0xff]   ;;  %v1161_v30 = vld [vmem:[#allocation2 + $0x20] sm:$0xff]  ;;  %vm2880_vm7 = vcmask 1043456  }
 0x1b6   : > { %2966 = vmatprep.subr.bf16.mxu1 %v4832_v44  ;;  %v4836_v5 = vld [vmem:[%s5673_s8 + $0xc4] ss:$16 sps:$4 sm:$0xff]   ;;  %2894 = vmatpush1.bf16.msra.mxu0 %v4834_v45  ;;  %v4840_v51 = vld [vmem:[%s5673_s8 + $0xc0] ss:$16 sps:$4 sm:$0xff]   ;;  %v5906_v36 = vcombine.high %v1157_v29, %v1161_v30  ;;  %s4641_s12 = sshll.u32 %s5494_s28, 9  ;;  %p4694_p2 = scmp.ne.s32.totalorder %s5494_s28, 3 }
 0x1b7   : > { %2967 = vmatpush1.bf16.msra.mxu1 %v4835_v48  ;;  %v4838_v49 = vld [vmem:[%s5673_s8 + $0x2c4] ss:$16 sps:$4 sm:$0xff]   ;;  %2895 = vmatprep.subr.bf16.mxu0 %v4836_v5  ;;  %v4841_v53 = vld [vmem:[%s5673_s8 + $0x2c0] ss:$16 sps:$4 sm:$0xff]  }
 0x1b8   : > { %2968 = vmatprep.subr.bf16.mxu1 %v4838_v49  ;;  %v4842_v54 = vld [vmem:[%s5673_s8 + $0xa4] ss:$16 sps:$4 sm:$0xff]   ;;  %v4846_v57 = vld [vmem:[%s5673_s8 + $0xa0] ss:$16 sps:$4 sm:$0xff]   ;;  %2925 = vmatprep.mubr.bf16.mxu0 %v5906_v36 }
 0x1b9   : > { %v4844_v52 = vld [vmem:[%s5673_s8 + $0x2a4] ss:$16 sps:$4 sm:$0xff]   ;;  %v4847_v58 = vld [vmem:[%s5673_s8 + $0x2a0] ss:$16 sps:$4 sm:$0xff]  }
 0x1ba   : > { %2896 = vmatpush1.bf16.msra.mxu0 %v4840_v51  ;;  %v4848_v59 = vld [vmem:[%s5673_s8 + $0x84] ss:$16 sps:$4 sm:$0xff]   ;;  %v4852_v61 = vld [vmem:[%s5673_s8 + $0x80] ss:$16 sps:$4 sm:$0xff]  }
 0x1bb   : > { %2969 = vmatpush1.bf16.msra.mxu1 %v4841_v53  ;;  %2897 = vmatprep.subr.bf16.mxu0 %v4842_v54  ;;  %v4850_v60 = vld [vmem:[%s5673_s8 + $0x284] ss:$16 sps:$4 sm:$0xff]   ;;  %v4853_v50 = vld [vmem:[%s5673_s8 + $0x280] ss:$16 sps:$4 sm:$0xff]   ;;  %v1165_v54 = vld [vmem:[#allocation2 + $0x40] sm:$0xff] }
 0x1bc   : > { %2970 = vmatprep.subr.bf16.mxu1 %v4844_v52  ;;  %v4854_v55 = vld [vmem:[%s5673_s8 + $0x64] ss:$16 sps:$4 sm:$0xff]   ;;  %v4858_v62 = vld [vmem:[%s5673_s8 + $0x60] ss:$16 sps:$4 sm:$0xff]   ;;  %v5929_v52 = vcombine.low %v1157_v29, %v1161_v30 }
 0x1bd   : > { %v4856_v56 = vld [vmem:[%s5673_s8 + $0x264] ss:$16 sps:$4 sm:$0xff]   ;;  %v4859_v63 = vld [vmem:[%s5673_s8 + $0x260] ss:$16 sps:$4 sm:$0xff]  }
 0x1be   : > { %2898 = vmatpush1.bf16.msra.mxu0 %v4846_v57  ;;  %v4860_v0 = vld [vmem:[%s5673_s8 + $0x44] ss:$16 sps:$4 sm:$0xff]   ;;  %v4864_v2 = vld [vmem:[%s5673_s8 + $0x40] ss:$16 sps:$4 sm:$0xff]  }
 0x1bf   : > { %2971 = vmatpush1.bf16.msra.mxu1 %v4847_v58  ;;  %2899 = vmatprep.subr.bf16.mxu0 %v4848_v59  ;;  %v4862_v1 = vld [vmem:[%s5673_s8 + $0x244] ss:$16 sps:$4 sm:$0xff]   ;;  %v4865_v3 = vld [vmem:[%s5673_s8 + $0x240] ss:$16 sps:$4 sm:$0xff]   ;;  %v1169_v58 = vld [vmem:[#allocation2 + $0x60] sm:$0xff] }
 0x1c0   : > { %2972 = vmatprep.subr.bf16.mxu1 %v4850_v60  ;;  %v4866_v4 = vld [vmem:[%s5673_s8 + $0x24] ss:$16 sps:$4 sm:$0xff]   ;;  %v4870_v7 = vld [vmem:[%s5673_s8 + $0x20] ss:$16 sps:$4 sm:$0xff]  }
 0x1c1   : > { %v4868_v6 = vld [vmem:[%s5673_s8 + $0x224] ss:$16 sps:$4 sm:$0xff]   ;;  %v4871_v8 = vld [vmem:[%s5673_s8 + $0x220] ss:$16 sps:$4 sm:$0xff]  }
 0x1c2   : > { %2900 = vmatpush1.bf16.msra.mxu0 %v4852_v61  ;;  %v4872_v9 = vld [vmem:[%s5673_s8 + $0x4] ss:$16 sps:$4 sm:$0xff]   ;;  %v4876_v11 = vld [vmem:[%s5673_s8] ss:$16 sps:$4 sm:$0xff]  }
 0x1c3   : > { %2973 = vmatpush1.bf16.msra.mxu1 %v4853_v50  ;;  %2901 = vmatprep.subr.bf16.mxu0 %v4854_v55  ;;  %v4874_v10 = vld [vmem:[%s5673_s8 + $0x204] ss:$16 sps:$4 sm:$0xff]   ;;  %v4877_v12 = vld [vmem:[%s5673_s8 + $0x200] ss:$16 sps:$4 sm:$0xff]   ;;  %v5937_v55 = vcombine.high %v1165_v54, %v1169_v58 }
 0x1c4   : > { %2974 = vmatprep.subr.bf16.mxu1 %v4856_v56  ;;  %v4878_v13 = vld [vmem:[%s5673_s8 + $0x1e4] ss:$16 sps:$4 sm:$0xff]   ;;  %v4882_v15 = vld [vmem:[%s5673_s8 + $0x1e0] ss:$16 sps:$4 sm:$0xff]  }
 0x1c5   : > { %v4880_v14 = vld [vmem:[%s5673_s8 + $0x3e4] ss:$16 sps:$4 sm:$0xff]   ;;  %v4883_v16 = vld [vmem:[%s5673_s8 + $0x3e0] ss:$16 sps:$4 sm:$0xff]  }
 0x1c6   : > { %2902 = vmatpush1.bf16.msra.mxu0 %v4858_v62  ;;  %v4884_v17 = vld [vmem:[%s5673_s8 + $0x1c4] ss:$16 sps:$4 sm:$0xff]   ;;  %v4888_v19 = vld [vmem:[%s5673_s8 + $0x1c0] ss:$16 sps:$4 sm:$0xff]  }
 0x1c7   : > { %2975 = vmatpush1.bf16.msra.mxu1 %v4859_v63  ;;  %2903 = vmatprep.subr.bf16.mxu0 %v4860_v0  ;;  %v4886_v18 = vld [vmem:[%s5673_s8 + $0x3c4] ss:$16 sps:$4 sm:$0xff]   ;;  %v4889_v20 = vld [vmem:[%s5673_s8 + $0x3c0] ss:$16 sps:$4 sm:$0xff]  }
 0x1c8   : > { %2976 = vmatprep.subr.bf16.mxu1 %v4862_v1  ;;  %v4890_v21 = vld [vmem:[%s5673_s8 + $0x1a4] ss:$16 sps:$4 sm:$0xff]   ;;  %v4894_v23 = vld [vmem:[%s5673_s8 + $0x1a0] ss:$16 sps:$4 sm:$0xff]  }
 0x1c9   : > { %v4892_v22 = vld [vmem:[%s5673_s8 + $0x3a4] ss:$16 sps:$4 sm:$0xff]   ;;  %v4895_v24 = vld [vmem:[%s5673_s8 + $0x3a0] ss:$16 sps:$4 sm:$0xff]  }
 0x1ca   : > { %2904 = vmatpush1.bf16.msra.mxu0 %v4864_v2  ;;  %v4896_v25 = vld [vmem:[%s5673_s8 + $0x184] ss:$16 sps:$4 sm:$0xff]   ;;  %v4900_v27 = vld [vmem:[%s5673_s8 + $0x180] ss:$16 sps:$4 sm:$0xff]  }
 0x1cb   : > { %2977 = vmatpush1.bf16.msra.mxu1 %v4865_v3  ;;  %2905 = vmatprep.subr.bf16.mxu0 %v4866_v4  ;;  %v4898_v26 = vld [vmem:[%s5673_s8 + $0x384] ss:$16 sps:$4 sm:$0xff]   ;;  %v4901_v28 = vld [vmem:[%s5673_s8 + $0x380] ss:$16 sps:$4 sm:$0xff]  }
 0x1cc   : > { %2978 = vmatprep.subr.bf16.mxu1 %v4868_v6  ;;  %v1158_v31 = vld [vmem:[#allocation2 + $0x8] sm:$0xff] }
 0x1cd   : > { %v1162_v32 = vld [vmem:[#allocation2 + $0x28] sm:$0xff] }
 0x1ce   : > { %2906 = vmatpush1.bf16.msra.mxu0 %v4870_v7  ;;  %v4902_v35 = vld [vmem:[%s5673_s8 + $0x164] ss:$16 sps:$4 sm:$0xff]   ;;  %v5909_v38 = vcombine.high %v1158_v31, %v1162_v32  ;;  %v4906_v39 = vld [vmem:[%s5673_s8 + $0x160] ss:$16 sps:$4 sm:$0xff]   ;;  %v5931_v57 = vcombine.low %v1158_v31, %v1162_v32  ;;  %v5951_v7 = vcombine.low %v1165_v54, %v1169_v58 }
 0x1cf   : > { %2979 = vmatpush1.bf16.msra.mxu1 %v4871_v8  ;;  %2907 = vmatprep.subr.bf16.mxu0 %v4872_v9  ;;  %v4904_v37 = vld [vmem:[%s5673_s8 + $0x364] ss:$16 sps:$4 sm:$0xff]   ;;  %v4907_v47 = vld [vmem:[%s5673_s8 + $0x360] ss:$16 sps:$4 sm:$0xff]   ;;  %v1173_v9 = vld [vmem:[#allocation2 + $0x80] sm:$0xff] }
 0x1d0   : > { %2980 = vmatprep.subr.bf16.mxu1 %v4874_v10  ;;  %2998 = vmatprep.mubr.bf16.mxu1 %v5909_v38  ;;  %v4908_v40 = vld [vmem:[%s5673_s8 + $0x144] ss:$16 sps:$4 sm:$0xff]   ;;  %v4912_v42 = vld [vmem:[%s5673_s8 + $0x140] ss:$16 sps:$4 sm:$0xff]   ;;  %v1177_v10 = vld [vmem:[#allocation2 + $0xa0] sm:$0xff] }
 0x1d1   : > { %v4910_v41 = vld [vmem:[%s5673_s8 + $0x344] ss:$16 sps:$4 sm:$0xff]   ;;  %v4913_v43 = vld [vmem:[%s5673_s8 + $0x340] ss:$16 sps:$4 sm:$0xff]  }
 0x1d2   : > { %2908 = vmatpush1.bf16.msra.mxu0 %v4876_v11  ;;  %v4914_v46 = vld [vmem:[%s5673_s8 + $0x124] ss:$16 sps:$4 sm:$0xff]   ;;  %v4918_v34 = vld [vmem:[%s5673_s8 + $0x120] ss:$16 sps:$4 sm:$0xff]  }
 0x1d3   : > { %2981 = vmatpush1.bf16.msra.mxu1 %v4877_v12  ;;  %2909 = vmatprep.subr.bf16.mxu0 %v4878_v13  ;;  %v4916_v33 = vld [vmem:[%s5673_s8 + $0x324] ss:$16 sps:$4 sm:$0xff]   ;;  %v4919_v44 = vld [vmem:[%s5673_s8 + $0x320] ss:$16 sps:$4 sm:$0xff]  }
 0x1d4   : > { %2982 = vmatprep.subr.bf16.mxu1 %v4880_v14  ;;  %v4920_v45 = vld [vmem:[%s5673_s8 + $0x104] ss:$16 sps:$4 sm:$0xff]   ;;  %v4924_v5 = vld [vmem:[%s5673_s8 + $0x100] ss:$16 sps:$4 sm:$0xff]  }
 0x1d5   : > { %v4922_v48 = vld [vmem:[%s5673_s8 + $0x304] ss:$16 sps:$4 sm:$0xff]   ;;  %v4925_v49 = vld [vmem:[%s5673_s8 + $0x300] ss:$16 sps:$4 sm:$0xff]  }
 0x1d6   : > { %2910 = vmatpush2.bf16.msra.mxu0 %v4882_v15  ;;  %v4928_v51 = vld [vmem:[%s5673_s8 + $0x4e4] ss:$16 sps:$4 sm:$0xff]   ;;  %v4926_v59 = vld [vmem:[%s5673_s8 + $0x4e0] ss:$16 sps:$4 sm:$0xff]   ;;  %v5957_v15 = vcombine.high %v1173_v9, %v1177_v10 }
 0x1d7   : > { %2983 = vmatpush2.bf16.msra.mxu1 %v4883_v16  ;;  %2911 = vmatprep.subr.bf16.mxu0 %v4884_v17  ;;  %v4931_v53 = vld [vmem:[%s5673_s8 + $0x6e4] ss:$16 sps:$4 sm:$0xff]   ;;  %v4929_v60 = vld [vmem:[%s5673_s8 + $0x6e0] ss:$16 sps:$4 sm:$0xff]  }
 0x1d8   : > { %2984 = vmatprep.subr.bf16.mxu1 %v4886_v18  ;;  %v4934_v61 = vld [vmem:[%s5673_s8 + $0x4c4] ss:$16 sps:$4 sm:$0xff]   ;;  %v4932_v0 = vld [vmem:[%s5673_s8 + $0x4c0] ss:$16 sps:$4 sm:$0xff]  }
 0x1d9   : > { %v4937_v50 = vld [vmem:[%s5673_s8 + $0x6c4] ss:$16 sps:$4 sm:$0xff]   ;;  %v4935_v1 = vld [vmem:[%s5673_s8 + $0x6c0] ss:$16 sps:$4 sm:$0xff]  }
 0x1da   : > { %2912 = vmatpush2.bf16.msra.mxu0 %v4888_v19  ;;  %v1166_v56 = vld [vmem:[#allocation2 + $0x48] sm:$0xff] }
 0x1db   : > { %2985 = vmatpush2.bf16.msra.mxu1 %v4889_v20  ;;  %2913 = vmatprep.subr.bf16.mxu0 %v4890_v21  ;;  %v1170_v62 = vld [vmem:[#allocation2 + $0x68] sm:$0xff] }
 0x1dc   : > { %2986 = vmatprep.subr.bf16.mxu1 %v4892_v22  ;;  %v5941_v63 = vcombine.high %v1166_v56, %v1170_v62  ;;  %v4940_v2 = vld [vmem:[%s5673_s8 + $0x4a4] ss:$16 sps:$4 sm:$0xff]   ;;  %v4938_v4 = vld [vmem:[%s5673_s8 + $0x4a0] ss:$16 sps:$4 sm:$0xff]   ;;  %v5953_v8 = vcombine.low %v1166_v56, %v1170_v62  ;;  %v1181_v22 = vld [vmem:[#allocation2 + $0xc0] sm:$0xff] }
 0x1dd   : > { %v4943_v3 = vld [vmem:[%s5673_s8 + $0x6a4] ss:$16 sps:$4 sm:$0xff]   ;;  %v4941_v6 = vld [vmem:[%s5673_s8 + $0x6a0] ss:$16 sps:$4 sm:$0xff]  }
 0x1de   : > { %2914 = vmatpush2.bf16.msra.mxu0 %v4894_v23  ;;  %v1174_v11 = vld [vmem:[#allocation2 + $0x88] sm:$0xff]  ;;  %v1185_v23 = vld [vmem:[#allocation2 + $0xe0] sm:$0xff] }
 0x1df   : > { %2987 = vmatpush2.bf16.msra.mxu1 %v4895_v24  ;;  %2915 = vmatprep.subr.bf16.mxu0 %v4896_v25  ;;  %v1178_v12 = vld [vmem:[#allocation2 + $0xa8] sm:$0xff]  ;;  %v5970_v25 = vcombine.low %v1173_v9, %v1177_v10  ;;  %v5977_v31 = vcombine.high %v1181_v22, %v1185_v23 }
 0x1e0   : > { %2988 = vmatprep.subr.bf16.mxu1 %v4898_v26  ;;  %v4946_v13 = vld [vmem:[%s5673_s8 + $0x484] ss:$16 sps:$4 sm:$0xff]   ;;  %v5959_v16 = vcombine.high %v1174_v11, %v1178_v12  ;;  %v4944_v17 = vld [vmem:[%s5673_s8 + $0x480] ss:$16 sps:$4 sm:$0xff]   ;;  %v5972_v26 = vcombine.low %v1174_v11, %v1178_v12 }
 0x1e1   : > { %v4949_v14 = vld [vmem:[%s5673_s8 + $0x684] ss:$16 sps:$4 sm:$0xff]   ;;  %v4947_v18 = vld [vmem:[%s5673_s8 + $0x680] ss:$16 sps:$4 sm:$0xff]  }
 0x1e2   : > { %2916 = vmatpush2.bf16.msra.mxu0 %v4900_v27  ;;  %v4952_v19 = vld [vmem:[%s5673_s8 + $0x464] ss:$16 sps:$4 sm:$0xff]   ;;  %v4950_v21 = vld [vmem:[%s5673_s8 + $0x460] ss:$16 sps:$4 sm:$0xff]  }
 0x1e3   : > { %2989 = vmatpush2.bf16.msra.mxu1 %v4901_v28  ;;  %2917 = vmatprep.subr.bf16.mxu0 %v4902_v35  ;;  %v4955_v20 = vld [vmem:[%s5673_s8 + $0x664] ss:$16 sps:$4 sm:$0xff]   ;;  %v4953_v28 = vld [vmem:[%s5673_s8 + $0x660] ss:$16 sps:$4 sm:$0xff]  }
 0x1e4   : > { %2990 = vmatprep.subr.bf16.mxu1 %v4904_v37  ;;  %v1182_v24 = vld [vmem:[#allocation2 + $0xc8] sm:$0xff] }
 0x1e5   : > { %v1186_v27 = vld [vmem:[#allocation2 + $0xe8] sm:$0xff] }
 0x1e6   : > { %2918 = vmatpush2.bf16.msra.mxu0 %v4906_v39  ;;  %v4958_v29 = vld [vmem:[%s5673_s8 + $0x444] ss:$16 sps:$4 sm:$0xff]   ;;  %v5979_v32 = vcombine.high %v1182_v24, %v1186_v27  ;;  %v4956_v35 = vld [vmem:[%s5673_s8 + $0x440] ss:$16 sps:$4 sm:$0xff]  }
 0x1e7   : > { %2991 = vmatpush2.bf16.msra.mxu1 %v4907_v47  ;;  %2919 = vmatprep.subr.bf16.mxu0 %v4908_v40  ;;  %v4961_v30 = vld [vmem:[%s5673_s8 + $0x644] ss:$16 sps:$4 sm:$0xff]   ;;  %v4959_v37 = vld [vmem:[%s5673_s8 + $0x640] ss:$16 sps:$4 sm:$0xff]  }
 0x1e8   : > { %2992 = vmatprep.subr.bf16.mxu1 %v4910_v41  ;;  %v4964_v39 = vld [vmem:[%s5673_s8 + $0x424] ss:$16 sps:$4 sm:$0xff]   ;;  %v4962_v40 = vld [vmem:[%s5673_s8 + $0x420] ss:$16 sps:$4 sm:$0xff]   ;;  %v5990_v41 = vcombine.low %v1181_v22, %v1185_v23 }
 0x1e9   : > { %v4967_v47 = vld [vmem:[%s5673_s8 + $0x624] ss:$16 sps:$4 sm:$0xff]   ;;  %v4971_v54 = vld [vmem:[%s5673_s8 + $0x600] ss:$16 sps:$4 sm:$0xff]  }
 0x1ea   : > { %2920 = vmatpush2.bf16.msra.mxu0 %v4912_v42  ;;  %v5992_v42 = vcombine.low %v1182_v24, %v1186_v27  ;;  %v4976_v58 = vld [vmem:[%s5673_s8 + $0x5e4] ss:$16 sps:$4 sm:$0xff]   ;;  %v4991_v11 = vld [vmem:[%s5673_s8 + $0x580] ss:$16 sps:$4 sm:$0xff]  }
 0x1eb   : > { %2993 = vmatpush2.bf16.msra.mxu1 %v4913_v43  ;;  %2921 = vmatprep.subr.bf16.mxu0 %v4914_v46  ;;  %v5994_v43 = vld [vmem:[#allocation2 + $0x18] sm:$0xff] }
 0x1ec   : > { %2994 = vmatprep.subr.bf16.mxu1 %v4916_v33  ;;  %v5996_v46 = vld [vmem:[#allocation2 + $0x38] sm:$0xff] }
 0x1ed   : > { %v4965_v33 = vld [vmem:[%s5673_s8 + $0x620] ss:$16 sps:$4 sm:$0xff]   ;;  %v4984_v62 = vld [vmem:[%s5673_s8 + $0x7a4] ss:$16 sps:$4 sm:$0xff]  }
 0x1ee   : > { %2922 = vmatpush2.bf16.msra.mxu0 %v4918_v34  ;;  %v4970_v34 = vld [vmem:[%s5673_s8 + $0x404] ss:$16 sps:$4 sm:$0xff]   ;;  %v4994_v12 = vld [vmem:[%s5673_s8 + $0x760] ss:$16 sps:$4 sm:$0xff]  }
 0x1ef   : > { %2995 = vmatpush2.bf16.msra.mxu1 %v4919_v44  ;;  %2923 = vmatprep.subr.bf16.mxu0 %v4920_v45  ;;  %v4973_v44 = vld [vmem:[%s5673_s8 + $0x604] ss:$16 sps:$4 sm:$0xff]   ;;  %v5006_v22 = vld [vmem:[%s5673_s8 + $0x720] ss:$16 sps:$4 sm:$0xff]  }
 0x1f0   : > { %2996 = vmatprep.subr.bf16.mxu1 %v4922_v48  ;;  %v1437_v45 = vld [vmem:[%s5673_s8 + $0x7c0] sm:$0xff]  ;;  %v6004_v48 = vcombine.high %v5994_v43, %v5996_v46 }
 0x1f1   : > { %v4993_v9 = vld [vmem:[%s5673_s8 + $0x584] ss:$16 sps:$4 sm:$0xff]   ;;  %v5009_v27 = vld [vmem:[%s5673_s8 + $0x520] ss:$16 sps:$4 sm:$0xff]  }
 0x1f2   : > { %2924 = vmatpush2.bf16.msra.mxu0 %v4924_v5  ;;  %v6006_v5 = vld [vmem:[#allocation2 + $0x10] sm:$0xff]  ;;  %v4996_v10 = vld [vmem:[%s5673_s8 + $0x764] ss:$16 sps:$4 sm:$0xff]  }
 0x1f3   : > { %2997 = vmatpush2.bf16.msra.mxu1 %v4925_v49  ;;  %3039 = vmatprep.subr.bf16.mxu0 %v4928_v51  ;;  %v6008_v49 = vld [vmem:[#allocation2 + $0x30] sm:$0xff]  ;;  %v4968_v51 = vld [vmem:[%s5673_s8 + $0x400] ss:$16 sps:$4 sm:$0xff]   ;;  %v5011_v23 = vld [vmem:[%s5673_s8 + $0x524] ss:$16 sps:$4 sm:$0xff]  }
 0x1f4   : > { %3112 = vmatprep.subr.bf16.mxu1 %v4931_v53  ;;  %v6015_v53 = vcombine.high %v6006_v5, %v6008_v49  ;;  %v5014_v24 = vld [vmem:[%s5673_s8 + $0x704] ss:$16 sps:$4 sm:$0xff]  }
 0x1f5   : > { %2926 = vmatmul.mubr.bf16.vlgmr.msra.gmra.mxu0 %v5929_v52 }
 0x1f6   : > { %2999 = vmatmul.mubr.bf16.vlgmr.msra.gmra.mxu1 %v5931_v57  ;;  %3040 = vmatpush1.bf16.msra.mxu0 %v4926_v59  ;;  %v4628_v59 = vcombine.high %v1437_v45, %v1437_v45 }
 0x1f7   : > { %3113 = vmatpush1.bf16.msra.mxu1 %v4929_v60  ;;  %3041 = vmatprep.subr.bf16.mxu0 %v4934_v61  ;;  %v4627_v60 = vcombine.low %v1437_v45, %v1437_v45  ;;  %v4974_v61 = vld [vmem:[%s5673_s8 + $0x5e0] ss:$16 sps:$4 sm:$0xff]   ;;  %v1167_v45 = vld [vmem:[#allocation2 + $0x50] sm:$0xff] }
 0x1f8   : > { %3114 = vmatprep.subr.bf16.mxu1 %v4937_v50  ;;  %2935 = vmatprep.mubr.bf16.mxu0 %v5937_v55  ;;  %v4981_v50 = vld [vmem:[%s5673_s8 + $0x5c4] ss:$16 sps:$4 sm:$0xff]  }
 0x1f9   : > { %3008 = vmatprep.mubr.bf16.mxu1 %v5941_v63  ;;  %v2882_v56 = vsel %vm2880_vm7, %v4627_v60, 0  ;;  %v5027_v60 = vld [vmem:[%s5673_s8 + $0xa8] ss:$16 sps:$4 sm:$0xff]  }
 0x1fa   : > { %3042 = vmatpush1.bf16.msra.mxu0 %v4932_v0  ;;  %v4979_v0 = vld [vmem:[%s5673_s8 + $0x5c0] ss:$16 sps:$4 sm:$0xff]  }
 0x1fb   : > { %3115 = vmatpush1.bf16.msra.mxu1 %v4935_v1  ;;  %3043 = vmatprep.subr.bf16.mxu0 %v4940_v2  ;;  %v4982_v1 = vld [vmem:[%s5673_s8 + $0x7a0] ss:$16 sps:$4 sm:$0xff]   ;;  %v4987_v2 = vld [vmem:[%s5673_s8 + $0x5a4] ss:$16 sps:$4 sm:$0xff]  }
 0x1fc   : > { %3116 = vmatprep.subr.bf16.mxu1 %v4943_v3  ;;  %v4990_v3 = vld [vmem:[%s5673_s8 + $0x784] ss:$16 sps:$4 sm:$0xff]  }
 0x1fd   : > { %2936 = vmatmul.mubr.bf16.gmra.mxu0 %v5951_v7 }
 0x1fe   : > { %3009 = vmatmul.mubr.bf16.gmra.mxu1 %v5953_v8  ;;  %3044 = vmatpush1.bf16.msra.mxu0 %v4938_v4  ;;  %v4985_v4 = vld [vmem:[%s5673_s8 + $0x5a0] ss:$16 sps:$4 sm:$0xff]  }
 0x1ff   : > { %3117 = vmatpush1.bf16.msra.mxu1 %v4941_v6  ;;  %3045 = vmatprep.subr.bf16.mxu0 %v4946_v13  ;;  %v4988_v6 = vld [vmem:[%s5673_s8 + $0x780] ss:$16 sps:$4 sm:$0xff]   ;;  %v4999_v13 = vld [vmem:[%s5673_s8 + $0x564] ss:$16 sps:$4 sm:$0xff]  }
 0x200   : > { %3118 = vmatprep.subr.bf16.mxu1 %v4949_v14  ;;  %2945 = vmatprep.mubr.bf16.mxu0 %v5957_v15  ;;  %v5002_v14 = vld [vmem:[%s5673_s8 + $0x744] ss:$16 sps:$4 sm:$0xff]  }
 0x201   : > { %3018 = vmatprep.mubr.bf16.mxu1 %v5959_v16 }
 0x202   : > { %3046 = vmatpush1.bf16.msra.mxu0 %v4944_v17  ;;  %v4997_v17 = vld [vmem:[%s5673_s8 + $0x560] ss:$16 sps:$4 sm:$0xff]  }
 0x203   : > { %3119 = vmatpush1.bf16.msra.mxu1 %v4947_v18  ;;  %3047 = vmatprep.subr.bf16.mxu0 %v4952_v19  ;;  %v5000_v18 = vld [vmem:[%s5673_s8 + $0x740] ss:$16 sps:$4 sm:$0xff]   ;;  %v5005_v19 = vld [vmem:[%s5673_s8 + $0x544] ss:$16 sps:$4 sm:$0xff]  }
 0x204   : > { %3120 = vmatprep.subr.bf16.mxu1 %v4955_v20  ;;  %v5008_v20 = vld [vmem:[%s5673_s8 + $0x724] ss:$16 sps:$4 sm:$0xff]  }
 0x205   : > { %2946 = vmatmul.mubr.bf16.gmra.mxu0 %v5970_v25 }
 0x206   : > { %3019 = vmatmul.mubr.bf16.gmra.mxu1 %v5972_v26  ;;  %3048 = vmatpush1.bf16.msra.mxu0 %v4950_v21  ;;  %v5003_v21 = vld [vmem:[%s5673_s8 + $0x540] ss:$16 sps:$4 sm:$0xff]  }
 0x207   : > { %3121 = vmatpush1.bf16.msra.mxu1 %v4953_v28  ;;  %3049 = vmatprep.subr.bf16.mxu0 %v4958_v29  ;;  %v5012_v28 = vld [vmem:[%s5673_s8 + $0x700] ss:$16 sps:$4 sm:$0xff]   ;;  %v5017_v29 = vld [vmem:[%s5673_s8 + $0x504] ss:$16 sps:$4 sm:$0xff]  }
 0x208   : > { %3122 = vmatprep.subr.bf16.mxu1 %v4961_v30  ;;  %2955 = vmatprep.mubr.bf16.mxu0 %v5977_v31  ;;  %v5020_v30 = vld [vmem:[%s5673_s8 + $0xec] ss:$16 sps:$4 sm:$0xff]  }
 0x209   : > { %3028 = vmatprep.mubr.bf16.mxu1 %v5979_v32 }
 0x20a   : > { %3050 = vmatpush1.bf16.msra.mxu0 %v4956_v35  ;;  %v5015_v35 = vld [vmem:[%s5673_s8 + $0x500] ss:$16 sps:$4 sm:$0xff]  }
 0x20b   : > { %3123 = vmatpush1.bf16.msra.mxu1 %v4959_v37  ;;  %3051 = vmatprep.subr.bf16.mxu0 %v4964_v39  ;;  %v1168_v37 = vld [vmem:[#allocation2 + $0x58] sm:$0xff]  ;;  %v6054_v39 = vcombine.low %v5994_v43, %v5996_v46  ;;  %v6065_v43 = vcombine.low %v6006_v5, %v6008_v49  ;;  %v1171_v46 = vld [vmem:[#allocation2 + $0x70] sm:$0xff] }
 0x20c   : > { %3124 = vmatprep.subr.bf16.mxu1 %v4967_v47  ;;  %v1172_v47 = vld [vmem:[#allocation2 + $0x78] sm:$0xff] }
 0x20d   : > { %2956 = vmatmul.mubr.bf16.gmra.mxu0 %v5990_v41  ;;  %v1176_v5 = vld [vmem:[#allocation2 + $0x98] sm:$0xff]  ;;  %v6076_v49 = vcombine.low %v1168_v37, %v1172_v47 }
 0x20e   : > { %3029 = vmatmul.mubr.bf16.gmra.mxu1 %v5992_v42  ;;  %3052 = vmatpush1.bf16.msra.mxu0 %v4962_v40  ;;  %v5018_v40 = vld [vmem:[%s5673_s8 + $0xe8] ss:$16 sps:$4 sm:$0xff]  }
 0x20f   : > { %3125 = vmatpush1.bf16.msra.mxu1 %v4965_v33  ;;  %3053 = vmatprep.subr.bf16.mxu0 %v4970_v34  ;;  %v5023_v33 = vld [vmem:[%s5673_s8 + $0xcc] ss:$16 sps:$4 sm:$0xff]  }
 0x210   : > { %3126 = vmatprep.subr.bf16.mxu1 %v4973_v44  ;;  %4632 = vmatprep.mubr.msk.bf16.mxu1 %vm2867_vm6, %v6004_v48  ;;  %v5026_v34 = vld [vmem:[%s5673_s8 + $0x2ec] ss:$16 sps:$4 sm:$0xff]   ;;  %v5021_v44 = vld [vmem:[%s5673_s8 + $0xc8] ss:$16 sps:$4 sm:$0xff]  }
 0x211   : > { %3071 = vmatprep.mubr.bf16.mxu0 %v6015_v53 }
 0x212   : > { %3054 = vmatpush1.bf16.msra.mxu0 %v4968_v51  ;;  %v6060_v51 = vcombine.high %v1168_v37, %v1172_v47  ;;  %v5051_v47 = vld [vmem:[%s5673_s8 + $0x28] ss:$16 sps:$4 sm:$0xff]  }
 0x213   : > { %3127 = vmatpush1.bf16.msra.mxu1 %v4971_v54  ;;  %3055 = vmatprep.subr.bf16.mxu0 %v4976_v58  ;;  %v5024_v54 = vld [vmem:[%s5673_s8 + $0x2e8] ss:$16 sps:$4 sm:$0xff]   ;;  %v5029_v58 = vld [vmem:[%s5673_s8 + $0xac] ss:$16 sps:$4 sm:$0xff]  }
 0x214   : > { %4631 = vmatprep.subr.msk.bf16.mxu1 %vm2880_vm7, %v4628_v59  ;;  %v5032_v59 = vld [vmem:[%s5673_s8 + $0x2cc] ss:$16 sps:$4 sm:$0xff]  }
 0x216   : > { %3056 = vmatpush2.bf16.msra.mxu0 %v4974_v61  ;;  %v6071_v61 = vcombine.high %v1167_v45, %v1171_v46 }
 0x217   : > { %3131 = vmatpush2.bf16.msra.mxu1 %v2882_v56  ;;  %3057 = vmatprep.subr.bf16.mxu0 %v4981_v50  ;;  %v1180_v50 = vld [vmem:[#allocation2 + $0xb8] sm:$0xff]  ;;  %v5030_v56 = vld [vmem:[%s5673_s8 + $0x2c8] ss:$16 sps:$4 sm:$0xff]  }
 0x218   : > { %3132 = vmatprep.subr.bf16.mxu1 %v4984_v62  ;;  %v5035_v62 = vld [vmem:[%s5673_s8 + $0x8c] ss:$16 sps:$4 sm:$0xff]  }
 0x21a   : > { %3058 = vmatpush2.bf16.msra.mxu0 %v4979_v0  ;;  %v5038_v0 = vld [vmem:[%s5673_s8 + $0x2ac] ss:$16 sps:$4 sm:$0xff]  }
 0x21b   : > { %3133 = vmatpush2.bf16.msra.mxu1 %v4982_v1  ;;  %3059 = vmatprep.subr.bf16.mxu0 %v4987_v2  ;;  %v5033_v1 = vld [vmem:[%s5673_s8 + $0x88] ss:$16 sps:$4 sm:$0xff]  }
 0x21c   : > { %3134 = vmatprep.subr.bf16.mxu1 %v4990_v3  ;;  %v1175_v2 = vld [vmem:[#allocation2 + $0x90] sm:$0xff]  ;;  %v6083_v3 = vcombine.high %v1176_v5, %v1180_v50 }
 0x21e   : > { %3060 = vmatpush2.bf16.msra.mxu0 %v4985_v4  ;;  %v6085_v4 = vcombine.low %v1167_v45, %v1171_v46  ;;  %v5057_v46 = vld [vmem:[%s5673_s8 + $0x8] ss:$16 sps:$4 sm:$0xff]  }
 0x21f   : > { %3135 = vmatpush2.bf16.msra.mxu1 %v4988_v6  ;;  %3061 = vmatprep.subr.bf16.mxu0 %v4993_v9  ;;  %v1179_v6 = vld [vmem:[#allocation2 + $0xb0] sm:$0xff] }
 0x220   : > { %3136 = vmatprep.subr.bf16.mxu1 %v4996_v10  ;;  %v5036_v9 = vld [vmem:[%s5673_s8 + $0x2a8] ss:$16 sps:$4 sm:$0xff]   ;;  %v5041_v10 = vld [vmem:[%s5673_s8 + $0x6c] ss:$16 sps:$4 sm:$0xff]  }
 0x222   : > { %3062 = vmatpush2.bf16.msra.mxu0 %v4991_v11  ;;  %v5044_v11 = vld [vmem:[%s5673_s8 + $0x28c] ss:$16 sps:$4 sm:$0xff]  }
 0x223   : > { %3137 = vmatpush2.bf16.msra.mxu1 %v4994_v12  ;;  %3063 = vmatprep.subr.bf16.mxu0 %v4999_v13  ;;  %v5039_v12 = vld [vmem:[%s5673_s8 + $0x68] ss:$16 sps:$4 sm:$0xff]   ;;  %v6092_v13 = vcombine.high %v1175_v2, %v1179_v6 }
 0x224   : > { %3138 = vmatprep.subr.bf16.mxu1 %v5002_v14  ;;  %v1184_v14 = vld [vmem:[#allocation2 + $0xd8] sm:$0xff] }
 0x226   : > { %3064 = vmatpush2.bf16.msra.mxu0 %v4997_v17  ;;  %v6097_v17 = vcombine.low %v1176_v5, %v1180_v50  ;;  %v5066_v5 = vld [vmem:[%s5673_s8 + $0x208] ss:$16 sps:$4 sm:$0xff]   ;;  %v5071_v50 = vld [vmem:[%s5673_s8 + $0x1cc] ss:$16 sps:$4 sm:$0xff]  }
 0x227   : > { %3139 = vmatpush2.bf16.msra.mxu1 %v5000_v18  ;;  %3065 = vmatprep.subr.bf16.mxu0 %v5005_v19  ;;  %v1188_v18 = vld [vmem:[#allocation2 + $0xf8] sm:$0xff]  ;;  %v5042_v19 = vld [vmem:[%s5673_s8 + $0x288] ss:$16 sps:$4 sm:$0xff]  }
 0x228   : > { %3140 = vmatprep.subr.bf16.mxu1 %v5008_v20  ;;  %v5047_v20 = vld [vmem:[%s5673_s8 + $0x4c] ss:$16 sps:$4 sm:$0xff]  }
 0x22a   : > { %3066 = vmatpush2.bf16.msra.mxu0 %v5003_v21  ;;  %v5050_v21 = vld [vmem:[%s5673_s8 + $0x26c] ss:$16 sps:$4 sm:$0xff]  }
 0x22b   : > { %3141 = vmatpush2.bf16.msra.mxu1 %v5006_v22  ;;  %3067 = vmatprep.subr.bf16.mxu0 %v5011_v23  ;;  %v5045_v22 = vld [vmem:[%s5673_s8 + $0x48] ss:$16 sps:$4 sm:$0xff]  }
 0x22c   : > { %3142 = vmatprep.subr.bf16.mxu1 %v5014_v24  ;;  %v1183_v23 = vld [vmem:[#allocation2 + $0xd0] sm:$0xff]  ;;  %v6104_v24 = vcombine.high %v1184_v14, %v1188_v18 }
 0x22e   : > { %3068 = vmatpush2.bf16.msra.mxu0 %v5009_v27  ;;  %v6106_v27 = vcombine.low %v1175_v2, %v1179_v6  ;;  %v5075_v2 = vld [vmem:[%s5673_s8 + $0x1a8] ss:$16 sps:$4 sm:$0xff]  }
 0x22f   : > { %3143 = vmatpush2.bf16.msra.mxu1 %v5012_v28  ;;  %3069 = vmatprep.subr.bf16.mxu0 %v5017_v29  ;;  %v1187_v28 = vld [vmem:[#allocation2 + $0xf0] sm:$0xff] }
 0x230   : > { %3185 = vmatprep.subr.bf16.mxu1 %v5020_v30  ;;  %v5048_v29 = vld [vmem:[%s5673_s8 + $0x268] ss:$16 sps:$4 sm:$0xff]   ;;  %v5053_v30 = vld [vmem:[%s5673_s8 + $0x2c] ss:$16 sps:$4 sm:$0xff]   ;;  %v6112_v37 = vcombine.high %v1183_v23, %v1187_v28  ;;  %v6124_v45 = vcombine.low %v1183_v23, %v1187_v28 }
 0x231   : > { %v5078_v6 = vld [vmem:[%s5673_s8 + $0x3c8] ss:$16 sps:$4 sm:$0xff]   ;;  %v5101_v28 = vld [vmem:[%s5673_s8 + $0x12c] ss:$16 sps:$4 sm:$0xff]  }
 0x232   : > { %3145 = vmatmul.mubr.bf16.vlgmr.msra.gmra.mxu1 %v6054_v39  ;;  %3070 = vmatpush2.bf16.msra.mxu0 %v5015_v35  ;;  %v5056_v35 = vld [vmem:[%s5673_s8 + $0x24c] ss:$16 sps:$4 sm:$0xff]   ;;  %v5096_v23 = vld [vmem:[%s5673_s8 + $0x368] ss:$16 sps:$4 sm:$0xff]  }
 0x233   : > { %3186 = vmatpush1.bf16.msra.mxu1 %v5018_v40  ;;  %3258 = vmatprep.subr.bf16.mxu0 %v5026_v34  ;;  %v6118_v40 = vcombine.low %v1184_v14, %v1188_v18  ;;  %v5059_v34 = vld [vmem:[%s5673_s8 + $0xc] ss:$16 sps:$4 sm:$0xff]   ;;  %v5087_v18 = vld [vmem:[%s5673_s8 + $0x168] ss:$16 sps:$4 sm:$0xff]  }
 0x234   : > { %3187 = vmatprep.subr.bf16.mxu1 %v5023_v33  ;;  %4633 = vmatprep.mubr.msk.bf16.mxu1 %vm2867_vm6, %v6060_v51  ;;  %v5054_v33 = vld [vmem:[%s5673_s8 + $0x248] ss:$16 sps:$4 sm:$0xff]   ;;  %v5092_v14 = vld [vmem:[%s5673_s8 + $0x38c] ss:$16 sps:$4 sm:$0xff]  }
 0x235   : > { %3072 = vmatmul.mubr.bf16.vlgmr.msra.gmra.mxu0 %v6065_v43 }
 0x236   : > { %3259 = vmatpush1.bf16.msra.mxu0 %v5024_v54  ;;  %3081 = vmatprep.mubr.bf16.mxu0 %v6071_v61  ;;  %v5060_v54 = vld [vmem:[%s5673_s8 + $0x228] ss:$16 sps:$4 sm:$0xff]  }
 0x237   : > { %3188 = vmatpush1.bf16.msra.mxu1 %v5021_v44  ;;  %3260 = vmatprep.subr.bf16.mxu0 %v5032_v59  ;;  %v5062_v44 = vld [vmem:[%s5673_s8 + $0x22c] ss:$16 sps:$4 sm:$0xff]  }
 0x238   : > { %3189 = vmatprep.subr.bf16.mxu1 %v5029_v58  ;;  %v5065_v58 = vld [vmem:[%s5673_s8 + $0x1ec] ss:$16 sps:$4 sm:$0xff]  }
 0x239   : > { %v5068_v59 = vld [vmem:[%s5673_s8 + $0x20c] ss:$16 sps:$4 sm:$0xff]  }
 0x23a   : > { %3155 = vmatmul.mubr.bf16.gmra.mxu1 %v6076_v49  ;;  %3261 = vmatpush1.bf16.msra.mxu0 %v5030_v56  ;;  %v5074_v56 = vld [vmem:[%s5673_s8 + $0x3ec] ss:$16 sps:$4 sm:$0xff]  }
 0x23b   : > { %3190 = vmatpush1.bf16.msra.mxu1 %v5027_v60  ;;  %3262 = vmatprep.subr.bf16.mxu0 %v5038_v0  ;;  %v5063_v60 = vld [vmem:[%s5673_s8 + $0x1e8] ss:$16 sps:$4 sm:$0xff]   ;;  %v5077_v0 = vld [vmem:[%s5673_s8 + $0x1ac] ss:$16 sps:$4 sm:$0xff]  }
 0x23c   : > { %3191 = vmatprep.subr.bf16.mxu1 %v5035_v62  ;;  %4634 = vmatprep.mubr.msk.bf16.mxu1 %vm2867_vm6, %v6083_v3  ;;  %v5072_v62 = vld [vmem:[%s5673_s8 + $0x3e8] ss:$16 sps:$4 sm:$0xff]  }
 0x23d   : > { %3082 = vmatmul.mubr.bf16.gmra.mxu0 %v6085_v4 }
 0x23e   : > { %3263 = vmatpush1.bf16.msra.mxu0 %v5036_v9  ;;  %3091 = vmatprep.mubr.bf16.mxu0 %v6092_v13  ;;  %v5086_v9 = vld [vmem:[%s5673_s8 + $0x3ac] ss:$16 sps:$4 sm:$0xff]  }
 0x23f   : > { %3192 = vmatpush1.bf16.msra.mxu1 %v5033_v1  ;;  %3264 = vmatprep.subr.bf16.mxu0 %v5044_v11  ;;  %v5080_v1 = vld [vmem:[%s5673_s8 + $0x3cc] ss:$16 sps:$4 sm:$0xff]   ;;  %v5084_v11 = vld [vmem:[%s5673_s8 + $0x3a8] ss:$16 sps:$4 sm:$0xff]  }
 0x240   : > { %3193 = vmatprep.subr.bf16.mxu1 %v5041_v10  ;;  %v5081_v10 = vld [vmem:[%s5673_s8 + $0x188] ss:$16 sps:$4 sm:$0xff]  }
 0x242   : > { %3165 = vmatmul.mubr.bf16.gmra.mxu1 %v6097_v17  ;;  %3265 = vmatpush1.bf16.msra.mxu0 %v5042_v19  ;;  %v5090_v19 = vld [vmem:[%s5673_s8 + $0x388] ss:$16 sps:$4 sm:$0xff]  }
 0x243   : > { %3194 = vmatpush1.bf16.msra.mxu1 %v5039_v12  ;;  %3266 = vmatprep.subr.bf16.mxu0 %v5050_v21  ;;  %v5089_v12 = vld [vmem:[%s5673_s8 + $0x16c] ss:$16 sps:$4 sm:$0xff]  }
 0x244   : > { %3195 = vmatprep.subr.bf16.mxu1 %v5047_v20  ;;  %4635 = vmatprep.mubr.msk.bf16.mxu1 %vm2867_vm6, %v6104_v24  ;;  %v5095_v20 = vld [vmem:[%s5673_s8 + $0x14c] ss:$16 sps:$4 sm:$0xff]  }
 0x245   : > { %3092 = vmatmul.mubr.bf16.gmra.mxu0 %v6106_v27  ;;  %v5098_v21 = vld [vmem:[%s5673_s8 + $0x36c] ss:$16 sps:$4 sm:$0xff]  }
 0x246   : > { %3267 = vmatpush1.bf16.msra.mxu0 %v5048_v29  ;;  %3101 = vmatprep.mubr.bf16.mxu0 %v6112_v37  ;;  %v5104_v29 = vld [vmem:[%s5673_s8 + $0x34c] ss:$16 sps:$4 sm:$0xff]  }
 0x247   : > { %3196 = vmatpush1.bf16.msra.mxu1 %v5045_v22  ;;  %3268 = vmatprep.subr.bf16.mxu0 %v5056_v35  ;;  %v5093_v22 = vld [vmem:[%s5673_s8 + $0x148] ss:$16 sps:$4 sm:$0xff]  }
 0x248   : > { %3197 = vmatprep.subr.bf16.mxu1 %v5053_v30  ;;  %v5099_v30 = vld [vmem:[%s5673_s8 + $0x128] ss:$16 sps:$4 sm:$0xff]  }
 0x249   : > { %v5102_v35 = vld [vmem:[%s5673_s8 + $0x348] ss:$16 sps:$4 sm:$0xff]  }
 0x24a   : > { %3175 = vmatmul.mubr.bf16.gmra.mxu1 %v6118_v40  ;;  %3269 = vmatpush1.bf16.msra.mxu0 %v5054_v33  ;;  %v5110_v33 = vld [vmem:[%s5673_s8 + $0x32c] ss:$16 sps:$4 sm:$0xff]  }
 0x24b   : > { %3198 = vmatpush1.bf16.msra.mxu1 %v5051_v47  ;;  %3270 = vmatprep.subr.bf16.mxu0 %v5062_v44  ;;  %v5107_v47 = vld [vmem:[%s5673_s8 + $0x10c] ss:$16 sps:$4 sm:$0xff]   ;;  %v5108_v44 = vld [vmem:[%s5673_s8 + $0x328] ss:$16 sps:$4 sm:$0xff]  }
 0x24c   : > { %3199 = vmatprep.subr.bf16.mxu1 %v5059_v34  ;;  %3217 = vmatprep.mubr.bf16.mxu1 %v5906_v36  ;;  %v5069_v36 = vld [vmem:[%s5673_s8 + $0x1c8] ss:$16 sps:$4 sm:$0xff]  }
 0x24d   : > { %3102 = vmatmul.mubr.bf16.gmra.mxu0 %v6124_v45  ;;  %v5105_v34 = vld [vmem:[%s5673_s8 + $0x108] ss:$16 sps:$4 sm:$0xff]  }
 0x24e   : > { %3271 = vmatpush1.bf16.msra.mxu0 %v5060_v54  ;;  %3290 = vmatprep.mubr.bf16.mxu0 %v5909_v38  ;;  %v5083_v38 = vld [vmem:[%s5673_s8 + $0x18c] ss:$16 sps:$4 sm:$0xff]  }
 0x24f   : > { %3200 = vmatpush1.bf16.msra.mxu1 %v5057_v46  ;;  %3272 = vmatprep.subr.bf16.mxu0 %v5068_v59  ;;  %v5113_v46 = vld [vmem:[%s5673_s8 + $0x30c] ss:$16 sps:$4 sm:$0xff]   ;;  %v5114_v59 = vld [vmem:[%s5673_s8 + $0x4e8] ss:$16 sps:$4 sm:$0xff]  }
 0x250   : > { %3201 = vmatprep.subr.bf16.mxu1 %v5065_v58  ;;  %v5116_v54 = vld [vmem:[%s5673_s8 + $0x4ec] ss:$16 sps:$4 sm:$0xff]   ;;  %v5111_v58 = vld [vmem:[%s5673_s8 + $0x308] ss:$16 sps:$4 sm:$0xff]  }
 0x252   : > { %3273 = vmatpush1.bf16.msra.mxu0 %v5066_v5  ;;  %v5122_v5 = vld [vmem:[%s5673_s8 + $0x6ec] ss:$16 sps:$4 sm:$0xff]  }
 0x253   : > { %3202 = vmatpush2.bf16.msra.mxu1 %v5063_v60  ;;  %3274 = vmatprep.subr.bf16.mxu0 %v5074_v56  ;;  %v5119_v60 = vld [vmem:[%s5673_s8 + $0x4cc] ss:$16 sps:$4 sm:$0xff]   ;;  %v5120_v56 = vld [vmem:[%s5673_s8 + $0x6e8] ss:$16 sps:$4 sm:$0xff]  }
 0x254   : > { %3203 = vmatprep.subr.bf16.mxu1 %v5071_v50  ;;  %v5117_v50 = vld [vmem:[%s5673_s8 + $0x4c8] ss:$16 sps:$4 sm:$0xff]  }
 0x256   : > { %3275 = vmatpush2.bf16.msra.mxu0 %v5072_v62  ;;  %v5128_v62 = vld [vmem:[%s5673_s8 + $0x6cc] ss:$16 sps:$4 sm:$0xff]  }
 0x257   : > { %3204 = vmatpush2.bf16.msra.mxu1 %v5069_v36  ;;  %3276 = vmatprep.subr.bf16.mxu0 %v5080_v1  ;;  %v5125_v36 = vld [vmem:[%s5673_s8 + $0x4ac] ss:$16 sps:$4 sm:$0xff]  }
 0x258   : > { %3205 = vmatprep.subr.bf16.mxu1 %v5077_v0  ;;  %v5126_v0 = vld [vmem:[%s5673_s8 + $0x6c8] ss:$16 sps:$4 sm:$0xff]   ;;  %v5131_v1 = vld [vmem:[%s5673_s8 + $0x48c] ss:$16 sps:$4 sm:$0xff]  }
 0x25a   : > { %3277 = vmatpush2.bf16.msra.mxu0 %v5078_v6  ;;  %v5137_v6 = vld [vmem:[%s5673_s8 + $0x46c] ss:$16 sps:$4 sm:$0xff]  }
 0x25b   : > { %3206 = vmatpush2.bf16.msra.mxu1 %v5075_v2  ;;  %3278 = vmatprep.subr.bf16.mxu0 %v5086_v9  ;;  %v5134_v2 = vld [vmem:[%s5673_s8 + $0x6ac] ss:$16 sps:$4 sm:$0xff]  }
 0x25c   : > { %3207 = vmatprep.subr.bf16.mxu1 %v5083_v38  ;;  %v5140_v38 = vld [vmem:[%s5673_s8 + $0x68c] ss:$16 sps:$4 sm:$0xff]  }
 0x25d   : > { %v5143_v9 = vld [vmem:[%s5673_s8 + $0x44c] ss:$16 sps:$4 sm:$0xff]  }
 0x25e   : > { %3279 = vmatpush2.bf16.msra.mxu0 %v5084_v11  ;;  %v5149_v11 = vld [vmem:[%s5673_s8 + $0x42c] ss:$16 sps:$4 sm:$0xff]  }
 0x25f   : > { %3208 = vmatpush2.bf16.msra.mxu1 %v5081_v10  ;;  %3280 = vmatprep.subr.bf16.mxu0 %v5092_v14  ;;  %v5146_v10 = vld [vmem:[%s5673_s8 + $0x66c] ss:$16 sps:$4 sm:$0xff]  }
 0x260   : > { %3209 = vmatprep.subr.bf16.mxu1 %v5089_v12  ;;  %v5152_v12 = vld [vmem:[%s5673_s8 + $0x64c] ss:$16 sps:$4 sm:$0xff]  }
 0x261   : > { %v5155_v14 = vld [vmem:[%s5673_s8 + $0x40c] ss:$16 sps:$4 sm:$0xff]  }
 0x262   : > { %3281 = vmatpush2.bf16.msra.mxu0 %v5090_v19  ;;  %v5161_v19 = vld [vmem:[%s5673_s8 + $0x5ec] ss:$16 sps:$4 sm:$0xff]  }
 0x263   : > { %3210 = vmatpush2.bf16.msra.mxu1 %v5087_v18  ;;  %3282 = vmatprep.subr.bf16.mxu0 %v5098_v21  ;;  %v5158_v18 = vld [vmem:[%s5673_s8 + $0x62c] ss:$16 sps:$4 sm:$0xff]  }
 0x264   : > { %3211 = vmatprep.subr.bf16.mxu1 %v5095_v20  ;;  %v5164_v20 = vld [vmem:[%s5673_s8 + $0x60c] ss:$16 sps:$4 sm:$0xff]  }
 0x265   : > { %v1438_v21 = vld [vmem:[%s5673_s8 + $0x7c8] sm:$0xff] }
 0x266   : > { %3283 = vmatpush2.bf16.msra.mxu0 %v5096_v23  ;;  %v4630_v23 = vcombine.high %v1438_v21, %v1438_v21 }
 0x267   : > { %3212 = vmatpush2.bf16.msra.mxu1 %v5093_v22  ;;  %3284 = vmatprep.subr.bf16.mxu0 %v5104_v29  ;;  %v5167_v22 = vld [vmem:[%s5673_s8 + $0x5cc] ss:$16 sps:$4 sm:$0xff]  }
 0x268   : > { %3213 = vmatprep.subr.bf16.mxu1 %v5101_v28  ;;  %v4629_v28 = vcombine.low %v1438_v21, %v1438_v21  ;;  %v5172_v29 = vld [vmem:[%s5673_s8 + $0x5ac] ss:$16 sps:$4 sm:$0xff]  }
 0x26a   : > { %3285 = vmatpush2.bf16.msra.mxu0 %v5102_v35  ;;  %v5170_v35 = vld [vmem:[%s5673_s8 + $0x5a8] ss:$16 sps:$4 sm:$0xff]  }
 0x26b   : > { %3214 = vmatpush2.bf16.msra.mxu1 %v5099_v30  ;;  %3286 = vmatprep.subr.bf16.mxu0 %v5110_v33  ;;  %v5175_v30 = vld [vmem:[%s5673_s8 + $0x7ac] ss:$16 sps:$4 sm:$0xff]  }
 0x26c   : > { %3215 = vmatprep.subr.bf16.mxu1 %v5107_v47  ;;  %v5178_v47 = vld [vmem:[%s5673_s8 + $0x58c] ss:$16 sps:$4 sm:$0xff]  }
 0x26d   : > { %v5181_v33 = vld [vmem:[%s5673_s8 + $0x78c] ss:$16 sps:$4 sm:$0xff]  }
 0x26e   : > { %3287 = vmatpush2.bf16.msra.mxu0 %v5108_v44  ;;  %v5179_v44 = vld [vmem:[%s5673_s8 + $0x788] ss:$16 sps:$4 sm:$0xff]  }
 0x26f   : > { %3216 = vmatpush2.bf16.msra.mxu1 %v5105_v34  ;;  %3288 = vmatprep.subr.bf16.mxu0 %v5113_v46  ;;  %v5176_v34 = vld [vmem:[%s5673_s8 + $0x588] ss:$16 sps:$4 sm:$0xff]   ;;  %v5184_v46 = vld [vmem:[%s5673_s8 + $0x56c] ss:$16 sps:$4 sm:$0xff]  }
 0x270   : > { %3331 = vmatprep.subr.bf16.mxu1 %v5116_v54  ;;  %v5187_v54 = vld [vmem:[%s5673_s8 + $0x76c] ss:$16 sps:$4 sm:$0xff]  }
 0x272   : > { %3218 = vmatmul.mubr.bf16.vlgmr.msra.gmra.mxu1 %v5929_v52  ;;  %3289 = vmatpush2.bf16.msra.mxu0 %v5111_v58  ;;  %v5123_v52 = vld [vmem:[%s5673_s8 + $0x4a8] ss:$16 sps:$4 sm:$0xff]  }
 0x273   : > { %3332 = vmatpush1.bf16.msra.mxu1 %v5114_v59  ;;  %3404 = vmatprep.subr.bf16.mxu0 %v5122_v5  ;;  %v5182_v58 = vld [vmem:[%s5673_s8 + $0x568] ss:$16 sps:$4 sm:$0xff]   ;;  %v5193_v5 = vld [vmem:[%s5673_s8 + $0x74c] ss:$16 sps:$4 sm:$0xff]  }
 0x274   : > { %3333 = vmatprep.subr.bf16.mxu1 %v5119_v60  ;;  %3227 = vmatprep.mubr.bf16.mxu1 %v5937_v55  ;;  %v5132_v55 = vld [vmem:[%s5673_s8 + $0x6a8] ss:$16 sps:$4 sm:$0xff]   ;;  %v5190_v60 = vld [vmem:[%s5673_s8 + $0x54c] ss:$16 sps:$4 sm:$0xff]  }
 0x275   : > { %3291 = vmatmul.mubr.bf16.vlgmr.msra.gmra.mxu0 %v5931_v57  ;;  %v5129_v57 = vld [vmem:[%s5673_s8 + $0x488] ss:$16 sps:$4 sm:$0xff]  }
 0x276   : > { %3405 = vmatpush1.bf16.msra.mxu0 %v5120_v56  ;;  %3300 = vmatprep.mubr.bf16.mxu0 %v5941_v63  ;;  %v5135_v63 = vld [vmem:[%s5673_s8 + $0x468] ss:$16 sps:$4 sm:$0xff]  }
 0x277   : > { %3334 = vmatpush1.bf16.msra.mxu1 %v5117_v50  ;;  %3406 = vmatprep.subr.bf16.mxu0 %v5128_v62  ;;  %v5185_v59 = vld [vmem:[%s5673_s8 + $0x768] ss:$16 sps:$4 sm:$0xff]   ;;  %v5199_v62 = vld [vmem:[%s5673_s8 + $0x72c] ss:$16 sps:$4 sm:$0xff]  }
 0x278   : > { %3335 = vmatprep.subr.bf16.mxu1 %v5125_v36  ;;  %v5188_v50 = vld [vmem:[%s5673_s8 + $0x548] ss:$16 sps:$4 sm:$0xff]   ;;  %v5196_v36 = vld [vmem:[%s5673_s8 + $0x52c] ss:$16 sps:$4 sm:$0xff]  }
 0x279   : > { %v5191_v56 = vld [vmem:[%s5673_s8 + $0x748] ss:$16 sps:$4 sm:$0xff]  }
 0x27a   : > { %3228 = vmatmul.mubr.bf16.gmra.mxu1 %v5951_v7  ;;  %3407 = vmatpush1.bf16.msra.mxu0 %v5126_v0  ;;  %v5138_v7 = vld [vmem:[%s5673_s8 + $0x688] ss:$16 sps:$4 sm:$0xff]  }
 0x27b   : > { %3336 = vmatpush1.bf16.msra.mxu1 %v5123_v52  ;;  %3408 = vmatprep.subr.bf16.mxu0 %v5134_v2  ;;  %v5194_v52 = vld [vmem:[%s5673_s8 + $0x528] ss:$16 sps:$4 sm:$0xff]   ;;  %v5205_v2 = vld [vmem:[%s5673_s8 + $0x70c] ss:$16 sps:$4 sm:$0xff]  }
 0x27c   : > { %3337 = vmatprep.subr.bf16.mxu1 %v5131_v1  ;;  %3237 = vmatprep.mubr.bf16.mxu1 %v5957_v15  ;;  %v5144_v15 = vld [vmem:[%s5673_s8 + $0x668] ss:$16 sps:$4 sm:$0xff]   ;;  %v5202_v1 = vld [vmem:[%s5673_s8 + $0x50c] ss:$16 sps:$4 sm:$0xff]  }
 0x27d   : > { %3301 = vmatmul.mubr.bf16.gmra.mxu0 %v5953_v8  ;;  %v5141_v8 = vld [vmem:[%s5673_s8 + $0x448] ss:$16 sps:$4 sm:$0xff]  }
 0x27e   : > { %3409 = vmatpush1.bf16.msra.mxu0 %v5132_v55  ;;  %3310 = vmatprep.mubr.bf16.mxu0 %v5959_v16  ;;  %v5147_v16 = vld [vmem:[%s5673_s8 + $0x428] ss:$16 sps:$4 sm:$0xff]  }
 0x27f   : > { %3338 = vmatpush1.bf16.msra.mxu1 %v5129_v57  ;;  %3410 = vmatprep.subr.bf16.mxu0 %v5140_v38  ;;  %v5197_v0 = vld [vmem:[%s5673_s8 + $0x728] ss:$16 sps:$4 sm:$0xff]  }
 0x280   : > { %3339 = vmatprep.subr.bf16.mxu1 %v5137_v6  ;;  %v5200_v57 = vld [vmem:[%s5673_s8 + $0x508] ss:$16 sps:$4 sm:$0xff]   ;;  %v5208_v6 = vld [vmem:[%s5681_s23 + $0x4] ss:$16 sps:$4 sm:$0x1f]  }
 0x281   : > { %v5203_v55 = vld [vmem:[%s5673_s8 + $0x708] ss:$16 sps:$4 sm:$0xff]  }
 0x282   : > { %3238 = vmatmul.mubr.bf16.gmra.mxu1 %v5970_v25  ;;  %3411 = vmatpush1.bf16.msra.mxu0 %v5138_v7  ;;  %v5150_v25 = vld [vmem:[%s5673_s8 + $0x648] ss:$16 sps:$4 sm:$0xff]  }
 0x283   : > { %3340 = vmatpush1.bf16.msra.mxu1 %v5135_v63  ;;  %3412 = vmatprep.subr.bf16.mxu0 %v5146_v10  ;;  %v5206_v38 = vld [vmem:[%s5681_s23] ss:$16 sps:$4 sm:$0x1f]  }
 0x284   : > { %3341 = vmatprep.subr.bf16.mxu1 %v5143_v9  ;;  %3247 = vmatprep.mubr.bf16.mxu1 %v5977_v31  ;;  %v5156_v31 = vld [vmem:[%s5673_s8 + $0x628] ss:$16 sps:$4 sm:$0xff]  }
 0x285   : > { %3311 = vmatmul.mubr.bf16.gmra.mxu0 %v5972_v26  ;;  %v5153_v26 = vld [vmem:[%s5673_s8 + $0x408] ss:$16 sps:$4 sm:$0xff]  }
 0x286   : > { %3413 = vmatpush1.bf16.msra.mxu0 %v5144_v15  ;;  %3320 = vmatprep.mubr.bf16.mxu0 %v5979_v32  ;;  %v5159_v32 = vld [vmem:[%s5673_s8 + $0x5e8] ss:$16 sps:$4 sm:$0xff]   ;;  %v6286_v15 = vstv %s4641_s12 }
 0x287   : > { %3342 = vmatpush1.bf16.msra.mxu1 %v5141_v8  ;;  %3414 = vmatprep.subr.bf16.mxu0 %v5152_v12  ;;  %7013 = vst [vmem:[#allocation21_spill] sm:$0xff] %v6286_v15 }
 0x288   : > { %3343 = vmatprep.subr.bf16.mxu1 %v5149_v11 }
 0x28a   : > { %3248 = vmatmul.mubr.bf16.gmra.mxu1 %v5990_v41  ;;  %3415 = vmatpush1.bf16.msra.mxu0 %v5150_v25  ;;  %v5162_v41 = vld [vmem:[%s5673_s8 + $0x608] ss:$16 sps:$4 sm:$0xff]  }
 0x28b   : > { %3344 = vmatpush1.bf16.msra.mxu1 %v5147_v16  ;;  %3416 = vmatprep.subr.bf16.mxu0 %v5158_v18  ;;  %v5211_v18 = vld [vmem:[%s5681_s23 + $0xc] ss:$16 sps:$4 sm:$0x1f]  }
 0x28c   : > { %3345 = vmatprep.subr.bf16.mxu1 %v5155_v14  ;;  %3363 = vmatprep.mubr.bf16.mxu1 %v6015_v53  ;;  %v2888_v53 = vsel %vm2880_vm7, %v4629_v28, 0  ;;  %v5209_v14 = vld [vmem:[%s5681_s23 + $0x8] ss:$16 sps:$4 sm:$0x1f]  }
 0x28d   : > { %3321 = vmatmul.mubr.bf16.gmra.mxu0 %v5992_v42  ;;  %v5165_v42 = vld [vmem:[%s5673_s8 + $0x5c8] ss:$16 sps:$4 sm:$0xff]  }
 0x28e   : > { %3417 = vmatpush1.bf16.msra.mxu0 %v5156_v31  ;;  %4637 = vmatprep.mubr.msk.bf16.mxu0 %vm2867_vm6, %v6004_v48  ;;  %v5173_v48 = vld [vmem:[%s5673_s8 + $0x7a8] ss:$16 sps:$4 sm:$0xff]  }
 0x28f   : > { %3346 = vmatpush1.bf16.msra.mxu1 %v5153_v26  ;;  %3418 = vmatprep.subr.bf16.mxu0 %v5164_v20 }
 0x290   : > { %3347 = vmatprep.subr.bf16.mxu1 %v5161_v19 }
 0x292   : > { %3419 = vmatpush1.bf16.msra.mxu0 %v5162_v41 }
 0x293   : > { %3348 = vmatpush2.bf16.msra.mxu1 %v5159_v32  ;;  %4636 = vmatprep.subr.msk.bf16.mxu0 %vm2880_vm7, %v4630_v23 }
 0x294   : > { %3349 = vmatprep.subr.bf16.mxu1 %v5167_v22 }
 0x296   : > { %3423 = vmatpush2.bf16.msra.mxu0 %v2888_v53 }
 0x297   : > { %3350 = vmatpush2.bf16.msra.mxu1 %v5165_v42  ;;  %3424 = vmatprep.subr.bf16.mxu0 %v5175_v30 }
 0x298   : > { %3351 = vmatprep.subr.bf16.mxu1 %v5172_v29 }
 0x29a   : > { %3425 = vmatpush2.bf16.msra.mxu0 %v5173_v48 }
 0x29b   : > { %3352 = vmatpush2.bf16.msra.mxu1 %v5170_v35  ;;  %3426 = vmatprep.subr.bf16.mxu0 %v5181_v33 }
 0x29c   : > { %3353 = vmatprep.subr.bf16.mxu1 %v5178_v47 }
 0x29e   : > { %3427 = vmatpush2.bf16.msra.mxu0 %v5179_v44 }
 0x29f   : > { %3354 = vmatpush2.bf16.msra.mxu1 %v5176_v34  ;;  %3428 = vmatprep.subr.bf16.mxu0 %v5187_v54 }
 0x2a0   : > { %3355 = vmatprep.subr.bf16.mxu1 %v5184_v46 }
 0x2a2   : > { %3429 = vmatpush2.bf16.msra.mxu0 %v5185_v59 }
 0x2a3   : > { %3356 = vmatpush2.bf16.msra.mxu1 %v5182_v58  ;;  %3430 = vmatprep.subr.bf16.mxu0 %v5193_v5 }
 0x2a4   : > { %3357 = vmatprep.subr.bf16.mxu1 %v5190_v60 }
 0x2a6   : > { %3431 = vmatpush2.bf16.msra.mxu0 %v5191_v56 }
 0x2a7   : > { %3358 = vmatpush2.bf16.msra.mxu1 %v5188_v50  ;;  %3432 = vmatprep.subr.bf16.mxu0 %v5199_v62 }
 0x2a8   : > { %3359 = vmatprep.subr.bf16.mxu1 %v5196_v36 }
 0x2aa   : > { %3433 = vmatpush2.bf16.msra.mxu0 %v5197_v0 }
 0x2ab   : > { %3360 = vmatpush2.bf16.msra.mxu1 %v5194_v52  ;;  %3434 = vmatprep.subr.bf16.mxu0 %v5205_v2 }
 0x2ac   : > { %3361 = vmatprep.subr.bf16.mxu1 %v5202_v1 }
 0x2ae   : > { %3435 = vmatpush2.bf16.msra.mxu0 %v5203_v55 }
 0x2af   : > { %3362 = vmatpush2.bf16.msra.mxu1 %v5200_v57  ;;  %3975 = vmatprep.subr.bf16.mxu0 %v5208_v6 }
 0x2b0   : > { %4040 = vmatprep.subr.bf16.mxu1 %v5211_v18 }
 0x2b1   : > { %3437 = vmatmul.mubr.bf16.vlgmr.msra.gmra.mxu0 %v6054_v39  ;;  %v1441_v39 = vlaneseq }
 0x2b2   : > { %3364 = vmatmul.mubr.bf16.vlgmr.msra.gmra.mxu1 %v6065_v43  ;;  %4638 = vmatprep.mubr.msk.bf16.mxu0 %vm2867_vm6, %v6060_v51 }
 0x2b3   : > { %3373 = vmatprep.mubr.bf16.mxu1 %v6071_v61  ;;  %3976 = vmatpush1.bf16.xpose.msra.mxu0 %v5206_v38  ;;  %v6268_v61 = vand.u32 127, %v1441_v39  ;;  %v6271_v10 = vshrl.u32 %v1441_v39, 7 }
 0x2b4   : > { %4041 = vmatpush1.bf16.xpose.msra.mxu1 %v5209_v14 }
 0x2b5   : > { %v6255_v7 = vpop.f32.mrf.mxu0  ;;  %7011 = vst [vmem:[#allocation19_spill] sm:$0xff] %v6268_v61  ;;  %7012 = vst [vmem:[#allocation20_spill] sm:$0xff] %v6271_v10  ;;  %v3480_v16 = vadd.s32 16, %v6271_v10  ;;  %v6305_v25 = vadd.s32 %v6286_v15, %v6268_v61  ;;  %v3481_v26 = vadd.s32 24, %v6271_v10  ;;  %v3482_v35 = vadd.s32 32, %v6271_v10 }
 0x2b6   : > { %v6253_v63 = vpop.f32.mrf.mxu1  ;;  %v3483_v5 = vadd.s32 40, %v6271_v10 }
 0x2b7   : > { %v6264_v43 = vpop.f32.mrf.mxu0  ;;  %v6346_v50 = vmul.u32 2048, %v3482_v35 }
 0x2b8   : > { %v6257_v9 = vpop.f32.mrf.mxu1  ;;  %v6352_v38 = vmul.u32 2048, %v3483_v5 }
 0x2b9   : > { %3447 = vmatmul.mubr.bf16.gmra.mxu0 %v6076_v49  ;;  %v6273_v8 = vpop.f32.mrf.mxu0  ;;  %v3488_v49 = vadd.s32 128, %v6268_v61  ;;  %7018 = vst [vmem:[#allocation26_spill] sm:$0xff] %v6346_v50 }
 0x2ba   : > { %3374 = vmatmul.mubr.bf16.gmra.mxu1 %v6085_v4  ;;  %4639 = vmatprep.mubr.msk.bf16.mxu0 %vm2867_vm6, %v6083_v3  ;;  %v6266_v51 = vpop.f32.mrf.mxu1  ;;  %7019 = vst [vmem:[#allocation27_spill] sm:$0xff] %v6352_v38 }
 0x2bb   : > { %3383 = vmatprep.mubr.bf16.mxu1 %v6092_v13  ;;  %v3479_v13 = vadd.s32 8, %v6271_v10  ;;  %v6288_v11 = vpop.f32.mrf.mxu0 }
 0x2bc   : > { %v6275_v4 = vpop.f32.mrf.mxu1 }
 0x2be   : > { %v6283_v3 = vpop.f32.mrf.mxu1 }
 0x2c0   : > { %v6298_v12 = vpop.f32.mrf.mxu1 }
 0x2c1   : > { %3457 = vmatmul.mubr.bf16.gmra.mxu0 %v6097_v17  ;;  %v6294_v17 = vmul.u32 2048, %v6271_v10 }
 0x2c2   : > { %3384 = vmatmul.mubr.bf16.gmra.mxu1 %v6106_v27  ;;  %4640 = vmatprep.mubr.msk.bf16.mxu0 %vm2867_vm6, %v6104_v24  ;;  %v6291_v27 = vadd.s32 %v6286_v15, %v3488_v49  ;;  %v6300_v24 = vmul.u32 2048, %v3479_v13  ;;  %v6316_v20 = vpop.f32.mrf.mxu1 }
 0x2c3   : > { %3393 = vmatprep.mubr.bf16.mxu1 %v6112_v37  ;;  %7014 = vst [vmem:[#allocation22_spill] sm:$0xff] %v6294_v17  ;;  %v6296_v37 = vpop.f32.mrf.mxu0  ;;  %v3505_v32 = vadd.s32 %v6294_v17, %v6305_v25 }
 0x2c4   : > { %7015 = vst [vmem:[#allocation23_spill] sm:$0xff] %v6300_v24  ;;  %v3506_v31 = vadd.s32 %v6294_v17, %v6291_v27  ;;  %v3510_v21 = vadd.s32 %v6300_v24, %v6291_v27  ;;  %v3509_v22 = vadd.s32 %v6300_v24, %v6305_v25  ;;  %v6330_v28 = vpop.f32.mrf.mxu1  ;;  %v3522_v39 = vadd.s32 %v6346_v50, %v6291_v27 }
 0x2c5   : > { %v6314_v19 = vpop.f32.mrf.mxu0  ;;  %v3537_v53 = vmul.u32 2654435769, %v3505_v32 }
 0x2c6   : > { %v3538_v41 = vmul.u32 2654435769, %v3506_v31  ;;  %v3542_v42 = vmul.u32 2654435769, %v3510_v21  ;;  %v6341_v44 = vpop.f32.mrf.mxu1  ;;  %v3521_v31 = vadd.s32 %v6346_v50, %v6305_v25 }
 0x2c7   : > { %v6328_v23 = vpop.f32.mrf.mxu0  ;;  %v3541_v47 = vmul.u32 2654435769, %v3509_v22  ;;  %v3569_v54 = vshrl.u32 %v3537_v53, 16 }
 0x2c8   : > { %v3570_v48 = vshrl.u32 %v3538_v41, 16  ;;  %v3574_v46 = vshrl.u32 %v3542_v42, 16  ;;  %v6350_v0 = vpop.f32.mrf.mxu1 }
 0x2c9   : > { %3467 = vmatmul.mubr.bf16.gmra.mxu0 %v6118_v40  ;;  %v6324_v40 = vmul.u32 2048, %v3481_v26  ;;  %v6339_v34 = vpop.f32.mrf.mxu0  ;;  %v3573_v36 = vshrl.u32 %v3541_v47, 16  ;;  %v3601_v2 = vxor.u32 %v3569_v54, %v3537_v53  ;;  %v3554_v53 = vmul.u32 2654435769, %v3522_v39 }
 0x2ca   : > { %3394 = vmatmul.mubr.bf16.gmra.mxu1 %v6124_v45  ;;  %v6322_v45 = vmul.u32 2048, %v3480_v16  ;;  %v3602_v56 = vxor.u32 %v3570_v48, %v3538_v41  ;;  %v3606_v1 = vxor.u32 %v3574_v46, %v3542_v42  ;;  %v6358_v18 = vpop.f32.mrf.mxu1  ;;  %v3526_v42 = vadd.s32 %v6352_v38, %v6291_v27 }
 0x2cb   : > { %7017 = vst [vmem:[#allocation25_spill] sm:$0xff] %v6324_v40  ;;  %v3518_v30 = vadd.s32 %v6324_v40, %v6291_v27  ;;  %v3517_v59 = vadd.s32 %v6324_v40, %v6305_v25  ;;  %v6348_v52 = vpop.f32.mrf.mxu0  ;;  %v3605_v13 = vxor.u32 %v3573_v36, %v3541_v47  ;;  %v3633_v21 = vmul.u32 2246822507, %v3601_v2 }
 0x2cc   : > { %7016 = vst [vmem:[#allocation24_spill] sm:$0xff] %v6322_v45  ;;  %v3514_v29 = vadd.s32 %v6322_v45, %v6291_v27  ;;  %v3513_v33 = vadd.s32 %v6322_v45, %v6305_v25  ;;  %v3634_v49 = vmul.u32 2246822507, %v3602_v56  ;;  %v3638_v26 = vmul.u32 2246822507, %v3606_v1  ;;  %v6366_v47 = vpop.f32.mrf.mxu1 }
 0x2cd   : > { %v3550_v60 = vmul.u32 2654435769, %v3518_v30  ;;  %v3549_v55 = vmul.u32 2654435769, %v3517_v59  ;;  %v6356_v14 = vpop.f32.mrf.mxu0  ;;  %v3525_v46 = vadd.s32 %v6352_v38, %v6305_v25  ;;  %v3665_v59 = vshrl.u32 %v3633_v21, 13 }
 0x2ce   : > { %v3546_v58 = vmul.u32 2654435769, %v3514_v29  ;;  %v3545_v62 = vmul.u32 2654435769, %v3513_v33  ;;  %v3666_v29 = vshrl.u32 %v3634_v49, 13  ;;  %v3670_v33 = vshrl.u32 %v3638_v26, 13 }
 0x2cf   : > { %v3582_v6 = vshrl.u32 %v3550_v60, 16  ;;  %v3581_v41 = vshrl.u32 %v3549_v55, 16  ;;  %v3637_v30 = vmul.u32 2246822507, %v3605_v13  ;;  %v6364_v48 = vpop.f32.mrf.mxu0  ;;  %v3553_v54 = vmul.u32 2654435769, %v3521_v31  ;;  %v6374_v13 = vpop.f32.mrf.mxu1 }
 0x2d0   : > { %v3578_v57 = vshrl.u32 %v3546_v58, 16  ;;  %v3577_v16 = vshrl.u32 %v3545_v62, 16  ;;  %v3558_v36 = vmul.u32 2654435769, %v3526_v42  ;;  %v3586_v1 = vshrl.u32 %v3554_v53, 16  ;;  %7020 = vst [vmem:[#allocation28_spill] sm:$0xff] %v6374_v13 }
 0x2d1   : > { %v3614_v22 = vxor.u32 %v3582_v6, %v3550_v60  ;;  %v3613_v5 = vxor.u32 %v3581_v41, %v3549_v55  ;;  %v3484_v60 = vadd.s32 48, %v6271_v10  ;;  %v3698_v2 = vxor.u32 %v3666_v29, %v3634_v49  ;;  %v6372_v39 = vpop.f32.mrf.mxu0 }
 0x2d2   : > { %v3610_v32 = vxor.u32 %v3578_v57, %v3546_v58  ;;  %v3609_v35 = vxor.u32 %v3577_v16, %v3545_v62  ;;  %v3669_v57 = vshrl.u32 %v3637_v30, 13  ;;  %v3485_v6 = vadd.s32 56, %v6271_v10 }
 0x2d3   : > { %v3646_v56 = vmul.u32 2246822507, %v3614_v22  ;;  %v3702_v16 = vxor.u32 %v3670_v33, %v3638_v26  ;;  %v3557_v31 = vmul.u32 2654435769, %v3525_v46  ;;  %v3585_v38 = vshrl.u32 %v3553_v54, 16  ;;  %v6385_v33 = vpop.f32.mrf.mxu0 }
 0x2d4   : > { %v3642_v58 = vmul.u32 2246822507, %v3610_v32  ;;  %v3641_v62 = vmul.u32 2246822507, %v3609_v35  ;;  %v3697_v32 = vxor.u32 %v3665_v59, %v3633_v21  ;;  %v1443_v22 = vsub.s32 0, %v6271_v10  ;;  %7024 = vst [vmem:[#allocation32_spill] sm:$0xff] %v6385_v33  ;;  %v6387_v21 = vpop.f32.mrf.mxu1 }
 0x2d5   : > { %v3645_v41 = vmul.u32 2246822507, %v3613_v5  ;;  %v6376_v50 = vmul.u32 2048, %v3484_v60  ;;  %v3678_v49 = vshrl.u32 %v3646_v56, 13  ;;  %v3590_v42 = vshrl.u32 %v3558_v36, 16  ;;  %7025 = vst [vmem:[#allocation33_spill] sm:$0xff] %v6387_v21 }
 0x2d6   : > { %v3674_v55 = vshrl.u32 %v3642_v58, 13  ;;  %v3618_v29 = vxor.u32 %v3586_v1, %v3554_v53  ;;  %v6380_v35 = vld [vmem:[%s5679_s19] sm:$0xf]  ;;  %v3730_v40 = vmul.u32 3266489909, %v3698_v2  ;;  %v3701_v45 = vxor.u32 %v3669_v57, %v3637_v30 }
 0x2d7   : > { %7021 = vst [vmem:[#allocation29_spill] sm:$0xff] %v6376_v50  ;;  %7022 = vst [vmem:[#allocation30_spill] sm:$0xff] %v6380_v35  ;;  %v3673_v24 = vshrl.u32 %v3641_v62, 13  ;;  %v6382_v17 = vmul.u32 2048, %v3485_v6  ;;  %v1447_v26 = vsub.s32 1, %v6271_v10  ;;  %v3589_v59 = vshrl.u32 %v3557_v31, 16 }
 0x2d8   : > { %v3734_v46 = vmul.u32 3266489909, %v3702_v16  ;;  %v3617_v5 = vxor.u32 %v3585_v38, %v3553_v54  ;;  %v3729_v60 = vmul.u32 3266489909, %v3697_v32  ;;  %v3706_v15 = vxor.u32 %v3674_v55, %v3642_v58  ;;  %v6399_v54 = vpop.f32.mrf.mxu0  ;;  %v6401_v58 = vpop.f32.mrf.mxu1 }
 0x2d9   : > { %7023 = vst [vmem:[#allocation31_spill] sm:$0xff] %v6382_v17  ;;  %v3677_v61 = vshrl.u32 %v3645_v41, 13  ;;  %v3530_v53 = vadd.s32 %v6376_v50, %v6291_v27  ;;  %v6392_v30 = vrot.slane %v6380_v35, %v1443_v22  ;;  %v3710_v1 = vxor.u32 %v3678_v49, %v3646_v56  ;;  %7026 = vst [vmem:[#allocation34_spill] sm:$0xff] %v6401_v58 }
 0x2da   : > { %v3622_v2 = vxor.u32 %v3590_v42, %v3558_v36  ;;  %v3650_v57 = vmul.u32 2246822507, %v3618_v29  ;;  %v3762_v6 = vshrl.u32 %v3730_v40, 16  ;;  %v3733_v10 = vmul.u32 3266489909, %v3701_v45  ;;  %v6409_v58 = vpop.f32.mrf.mxu0 }
 0x2db   : > { %v3705_v13 = vxor.u32 %v3673_v24, %v3641_v62  ;;  %v3534_v16 = vadd.s32 %v6382_v17, %v6291_v27  ;;  %v6397_v38 = vrot.slane %v6380_v35, %v1447_v26  ;;  %v3766_v32 = vshrl.u32 %v3734_v46, 16  ;;  %7027 = vst [vmem:[#allocation35_spill] sm:$0xff] %v6409_v58 }
 0x2dc   : > { %v3621_v55 = vxor.u32 %v3589_v59, %v3557_v31  ;;  %v3649_v22 = vmul.u32 2246822507, %v3617_v5  ;;  %v3761_v21 = vshrl.u32 %v3729_v60, 16  ;;  %v3738_v56 = vmul.u32 3266489909, %v3706_v15  ;;  %v6411_v31 = vpop.f32.mrf.mxu1 }
 0x2dd   : > { %v3709_v36 = vxor.u32 %v3677_v61, %v3645_v41  ;;  %v3562_v49 = vmul.u32 2654435769, %v3530_v53  ;;  %v3742_v42 = vmul.u32 3266489909, %v3710_v1  ;;  %v3682_v24 = vshrl.u32 %v3650_v57, 13  ;;  %7028 = vst [vmem:[#allocation36_spill] sm:$0xff] %v6411_v31 }
 0x2de   : > { %v3654_v45 = vmul.u32 2246822507, %v3622_v2  ;;  %v6405_v27 = vadd.s32 %v6376_v50, %v6305_v25  ;;  %v6407_v62 = vxor.u32 %v3762_v6, %v3730_v40  ;;  %v3765_v29 = vshrl.u32 %v3733_v10, 16 }
 0x2df   : > { %v3737_v26 = vmul.u32 3266489909, %v3705_v13  ;;  %v3566_v35 = vmul.u32 2654435769, %v3534_v16  ;;  %v6413_v59 = vxor.u32 %v3766_v32, %v3734_v46  ;;  %v3681_v15 = vshrl.u32 %v3649_v22, 13 }
 0x2e0   : > { %v3653_v61 = vmul.u32 2246822507, %v3621_v55  ;;  %v6417_v41 = vadd.s32 %v6382_v17, %v6305_v25  ;;  %v6419_v5 = vxor.u32 %v3761_v21, %v3729_v60  ;;  %v3770_v53 = vshrl.u32 %v3738_v56, 16  ;;  %v6432_v60 = vpop.f32.mrf.mxu0 }
 0x2e1   : > { %v3741_v40 = vmul.u32 3266489909, %v3709_v36  ;;  %v3594_v1 = vshrl.u32 %v3562_v49, 16  ;;  %v3774_v13 = vshrl.u32 %v3742_v42, 16  ;;  %v3686_v6 = vshrl.u32 %v3654_v45, 13  ;;  %7029 = vst [vmem:[#allocation37_spill] sm:$0xff] %v6432_v60 }
 0x2e2   : > { %v6423_v16 = vxor.u32 %v3682_v24, %v3650_v57  ;;  %v3561_v46 = vmul.u32 2654435769, %v6405_v27  ;;  %v2930_v32 = vadd.f32 %v6264_v43, %v6397_v38  ;;  %v6428_v55 = vxor.u32 %v3765_v29, %v3733_v10 }
 0x2e3   : > { %v3769_v25 = vshrl.u32 %v3737_v26, 16  ;;  %v3598_v17 = vshrl.u32 %v3566_v35, 16  ;;  %v2928_v21 = vadd.f32 %v6255_v7, %v6392_v30  ;;  %v3685_v50 = vshrl.u32 %v3653_v61, 13 }
 0x2e4   : > { %v6434_v31 = vxor.u32 %v3681_v15, %v3649_v22  ;;  %v3565_v57 = vmul.u32 2654435769, %v6417_v41  ;;  %v2932_v24 = vadd.f32 %v6273_v8, %v6392_v30  ;;  %v6439_v27 = vxor.u32 %v3770_v53, %v3738_v56 }
 0x2e5   : > { %v3773_v43 = vshrl.u32 %v3741_v40, 16  ;;  %v6441_v10 = vxor.u32 %v3594_v1, %v3562_v49  ;;  %v6443_v33 = vxor.u32 %v3774_v13, %v3742_v42  ;;  %v6445_v7 = vxor.u32 %v3686_v6, %v3654_v45 }
 0x2e6   : > { %v3746_v60 = vmul.u32 3266489909, %v6423_v16  ;;  %v3593_v22 = vshrl.u32 %v3561_v46, 16  ;;  %v3003_v15 = vadd.f32 %v6257_v9, %v2930_v32  ;;  %v2934_v41 = vadd.f32 %v6288_v11, %v6397_v38 }
 0x2e7   : > { %vm3826_vm8 = vcmp.ge.s32.totalorder %v6407_v62, 0  ;;  %vm3830_vm9 = vcmp.ge.s32.totalorder %v6413_v59, 0  ;;  %v6453_v8 = vxor.u32 %v3769_v25, %v3737_v26  ;;  %v6455_v56 = vxor.u32 %v3598_v17, %v3566_v35 }
 0x2e8   : > { %v3001_v49 = vadd.f32 %v6253_v63, %v2928_v21  ;;  %vm3825_vm10 = vcmp.ge.s32.totalorder %v6419_v5, 0  ;;  %vm3829_vm11 = vcmp.ge.s32.totalorder %v6428_v55, 0  ;;  %v6460_v9 = vxor.u32 %v3685_v50, %v3653_v61  ;;  %vm6507_vm0 = vmpackc.low %vm3830_vm9, %vm3826_vm8 }
 0x2e9   : > { %v3745_v11 = vmul.u32 3266489909, %v6434_v31  ;;  %v3597_v53 = vshrl.u32 %v3565_v57, 16  ;;  %v3005_v1 = vadd.f32 %v6266_v51, %v2932_v24  ;;  %v6464_v26 = vxor.u32 %v3773_v43, %v3741_v40  ;;  %vm4649_vm1 = vmpackc.low %vm3829_vm11, %vm3825_vm10 }
 0x2ea   : > { %v3658_v17 = vmul.u32 2246822507, %v6441_v10  ;;  %v3750_v16 = vmul.u32 3266489909, %v6445_v7  ;;  %v3778_v32 = vshrl.u32 %v3746_v60, 16  ;;  %v6470_v25 = vxor.u32 %v3593_v22, %v3561_v46 }
 0x2eb   : > { %v3007_v50 = vadd.f32 %v6275_v4, %v2934_v41  ;;  %v2940_v31 = vadd.f32 %v6314_v19, %v6397_v38  ;;  %v3662_v61 = vmul.u32 2246822507, %v6455_v56  ;;  %v2938_v40 = vadd.f32 %v6296_v37, %v6392_v30 }
 0x2ec   : > { %v3749_v43 = vmul.u32 3266489909, %v6460_v9  ;;  %v2942_v46 = vadd.f32 %v6328_v23, %v6392_v30  ;;  %v3782_v37 = vshrl.u32 %v3750_v16, 16  ;;  %v2944_v23 = vadd.f32 %v6339_v34, %v6397_v38 }
 0x2ed   : > { %vm3834_vm12 = vcmp.ge.s32.totalorder %v6439_v27, 0  ;;  %vm3838_vm13 = vcmp.ge.s32.totalorder %v6443_v33, 0  ;;  %vm3833_vm14 = vcmp.ge.s32.totalorder %v6453_v8, 0  ;;  %vm3837_vm15 = vcmp.ge.s32.totalorder %v6464_v26, 0  ;;  %v7034_v33 = vld [vmem:[#allocation32_spill] sm:$0xff] }
 0x2ee   : > { %v2948_v59 = vadd.f32 %v6348_v52, %v6392_v30  ;;  %v6533_v52 = vxor.u32 %v3782_v37, %v3750_v16  ;;  %vm6562_vm4 = vmpackc.low %vm3838_vm13, %vm3834_vm12  ;;  %v2958_v27 = vadd.f32 %v7034_v33, %v6392_v30  ;;  %v7041_v33 = vld [vmem:[#allocation19_spill] sm:$0xff] }
 0x2ef   : > { %vm4655_vm5 = vmpackc.low %vm3837_vm15, %vm3833_vm14 }
 0x2f0   : > { %v3021_v10 = vadd.f32 %v6341_v44, %v2948_v59  ;;  %vm3846_vm6 = vcmp.ge.s32.totalorder %v6533_v52, 0 }
 0x2f2   : > { %v6421_v2 = vpop.f32.mrf.mxu1 }
 0x2f4   : > { %v3148_v36 = vpop.f32.mrf.mxu1 }
 0x2f5   : > { %v3073_v29 = vpop.f32.mrf.mxu0 }
 0x2f6   : > { %v3150_v58 = vpop.f32.mrf.mxu1  ;;  %v3074_v35 = vadd.f32 %v3073_v29, %v3001_v49  ;;  %v3777_v29 = vshrl.u32 %v3745_v11, 16 }
 0x2f7   : > { %v3075_v42 = vpop.f32.mrf.mxu0 }
 0x2f8   : > { %v3152_v45 = vpop.f32.mrf.mxu1  ;;  %v3076_v13 = vadd.f32 %v3075_v42, %v3003_v15  ;;  %v6479_v15 = vxor.u32 %v3597_v53, %v3565_v57  ;;  %v3147_v19 = vadd.f32 %v6421_v2, %v3074_v35  ;;  %v3013_v57 = vadd.f32 %v6298_v12, %v2940_v31 }
 0x2f9   : > { %v3077_v63 = vpop.f32.mrf.mxu0  ;;  %v3011_v2 = vadd.f32 %v6283_v3, %v2938_v40  ;;  %v3694_v12 = vshrl.u32 %v3662_v61, 13 }
 0x2fa   : > { %v6467_v6 = vpop.f32.mrf.mxu1  ;;  %v3078_v51 = vadd.f32 %v3077_v63, %v3005_v1  ;;  %v3149_v4 = vadd.f32 %v3148_v36, %v3076_v13  ;;  %v3690_v1 = vshrl.u32 %v3658_v17, 13  ;;  %v3657_v63 = vmul.u32 2246822507, %v6470_v25 }
 0x2fb   : > { %v3079_v21 = vpop.f32.mrf.mxu0  ;;  %v3661_v34 = vmul.u32 2246822507, %v6479_v15  ;;  %v3017_v15 = vadd.f32 %v6330_v28, %v2944_v23  ;;  %v2952_v28 = vadd.f32 %v6364_v48, %v6392_v30  ;;  %v6541_v48 = vxor.u32 %v3694_v12, %v3662_v61 }
 0x2fc   : > { %v3158_v24 = vpop.f32.mrf.mxu1  ;;  %v3151_v22 = vadd.f32 %v3150_v58, %v3078_v51  ;;  %v3080_v41 = vadd.f32 %v3079_v21, %v3007_v50  ;;  %v6494_v58 = vxor.u32 %v3778_v32, %v3746_v60  ;;  %v3858_v25 = vmul.f32 2.0, %v3149_v4 }
 0x2fd   : > { %v3083_v49 = vpop.f32.mrf.mxu0  ;;  %v3857_v32 = vmul.f32 2.0, %v3147_v19  ;;  %v3781_v21 = vshrl.u32 %v3749_v43, 16  ;;  %v2960_v12 = vadd.f32 %v6399_v54, %v6397_v38 }
 0x2fe   : > { %v3160_v42 = vpop.f32.mrf.mxu1  ;;  %v3153_v36 = vadd.f32 %v3152_v45, %v3080_v41  ;;  %v3861_v53 = vmul.f32 2.0, %v3151_v22  ;;  %v3015_v45 = vadd.f32 %v6316_v20, %v2942_v46  ;;  %v3084_v31 = vadd.f32 %v3083_v49, %v3011_v2 }
 0x2ff   : > { %v3085_v13 = vpop.f32.mrf.mxu0  ;;  %v6515_v20 = vxor.u32 %v3777_v29, %v3745_v11  ;;  %v2950_v46 = vadd.f32 %v6356_v14, %v6397_v38  ;;  %v3689_v11 = vshrl.u32 %v3657_v63, 13  ;;  %v3693_v29 = vshrl.u32 %v3661_v34, 13 }
 0x300   : > { %v3162_v35 = vpop.f32.mrf.mxu1  ;;  %v3862_v50 = vmul.f32 2.0, %v3153_v36  ;;  %v3086_v60 = vadd.f32 %v3085_v13, %v3013_v57  ;;  %v4650_v22 = vpack.c.bf16 %v3861_v53, %v3857_v32  ;;  %v3157_v5 = vadd.f32 %v6467_v6, %v3084_v31  ;;  %v7035_v31 = vld [vmem:[#allocation35_spill] sm:$0xff] }
 0x301   : > { %v3087_v3 = vpop.f32.mrf.mxu0  ;;  %v6537_v36 = vxor.u32 %v3690_v1, %v3658_v17  ;;  %v2954_v6 = vadd.f32 %v6372_v39, %v6397_v38  ;;  %vm3842_vm2 = vcmp.ge.s32.totalorder %v6494_v58, 0  ;;  %v6549_v7 = vxor.u32 %v3781_v21, %v3749_v43 }
 0x302   : > { %v6511_v40 = vpop.f32.mrf.mxu1  ;;  %v4647_v4 = vpack.c.bf16 %v3862_v50, %v3858_v25  ;;  %v3088_v62 = vadd.f32 %v3087_v3, %v3015_v45  ;;  %v3159_v49 = vadd.f32 %v3158_v24, %v3086_v60  ;;  %v3023_v24 = vadd.f32 %v6350_v0, %v2950_v46  ;;  %v7036_v46 = vld [vmem:[#allocation33_spill] sm:$0xff]  ;;  %vm4658_vm8 = vmpackc.low %vm3846_vm6, %vm3842_vm2 }
 0x303   : > { %v3089_v41 = vpop.f32.mrf.mxu0  ;;  %vm3841_vm3 = vcmp.ge.s32.totalorder %v6515_v20, 0  ;;  %v6553_v56 = vxor.u32 %v3689_v11, %v3657_v63  ;;  %v6555_v0 = vxor.u32 %v3693_v29, %v3661_v34  ;;  %v3025_v39 = vadd.f32 %v6358_v18, %v2952_v28 }
 0x304   : > { %v3168_v19 = vpop.f32.mrf.mxu1  ;;  %v3090_v14 = vadd.f32 %v3089_v41, %v3017_v15  ;;  %v3161_v57 = vadd.f32 %v3160_v42, %v3088_v62  ;;  %4648 = vmatprep.mubr.msk.bf16.mxu0 %vm6507_vm0, %v4647_v4  ;;  %v3866_v61 = vmul.f32 2.0, %v3159_v49  ;;  %v3865_v53 = vmul.f32 2.0, %v3157_v5  ;;  %v7037_v62 = vld [vmem:[#allocation37_spill] sm:$0xff]  ;;  %v7038_v41 = vld [vmem:[#allocation28_spill] sm:$0xff] }
 0x305   : > { %v3093_v55 = vpop.f32.mrf.mxu0  ;;  %4651 = vmatmul.mubr.msk.bf16.vlgmr.msra.gmra.mxu0 %vm4649_vm1, %v4650_v22  ;;  %v3754_v13 = vmul.u32 3266489909, %v6537_v36  ;;  %v3027_v18 = vadd.f32 %v6366_v47, %v2954_v6  ;;  %v3753_v32 = vmul.u32 3266489909, %v6553_v56  ;;  %v2962_v54 = vadd.f32 %v7035_v31, %v6392_v30  ;;  %v7040_v6 = vld [vmem:[#allocation36_spill] sm:$0xff]  ;;  %v7042_v31 = vld [vmem:[#allocation21_spill] sm:$0xff] }
 0x306   : > { %v3170_v23 = vpop.f32.mrf.mxu1  ;;  %v3163_v42 = vadd.f32 %v3162_v35, %v3090_v14  ;;  %v3869_v17 = vmul.f32 2.0, %v3161_v57  ;;  %v3094_v9 = vadd.f32 %v3093_v55, %v3021_v10  ;;  %v3758_v35 = vmul.u32 3266489909, %v6541_v48  ;;  %v7039_v14 = vld [vmem:[#allocation34_spill] sm:$0xff] }
 0x307   : > { %v3095_v16 = vpop.f32.mrf.mxu0  ;;  %v3757_v47 = vmul.u32 3266489909, %v6555_v0  ;;  %vm3845_vm7 = vcmp.ge.s32.totalorder %v6549_v7, 0  ;;  %v3786_v15 = vshrl.u32 %v3754_v13, 16  ;;  %v3033_v4 = vadd.f32 %v7036_v46, %v2960_v12 }
 0x308   : > { %v3172_v37 = vpop.f32.mrf.mxu1  ;;  %v3870_v1 = vmul.f32 2.0, %v3163_v42  ;;  %v3096_v2 = vadd.f32 %v3095_v16, %v3023_v24  ;;  %v4656_v25 = vpack.c.bf16 %v3869_v17, %v3865_v53  ;;  %v3167_v8 = vadd.f32 %v6511_v40, %v3094_v9  ;;  %vm4661_vm9 = vmpackc.low %vm3845_vm7, %vm3841_vm3 }
 0x309   : > { %v3097_v43 = vpop.f32.mrf.mxu0  ;;  %v2964_v30 = vadd.f32 %v7037_v62, %v6397_v38  ;;  %v3790_v22 = vshrl.u32 %v3758_v35, 16  ;;  %v3785_v40 = vshrl.u32 %v3753_v32, 16  ;;  %v3789_v49 = vshrl.u32 %v3757_v47, 16 }
 0x30a   : > { %v3176_v63 = vpop.f32.mrf.mxu1  ;;  %v4653_v34 = vpack.c.bf16 %v3870_v1, %v3866_v61  ;;  %v3098_v45 = vadd.f32 %v3097_v43, %v3025_v39  ;;  %v3169_v3 = vadd.f32 %v3168_v19, %v3096_v2  ;;  %v3031_v19 = vadd.f32 %v7038_v41, %v2958_v27 }
 0x30b   : > { %v3099_v50 = vpop.f32.mrf.mxu0  ;;  %v3035_v57 = vadd.f32 %v7039_v14, %v2962_v54  ;;  %v3873_v36 = vmul.f32 2.0, %v3167_v8  ;;  %v3818_v38 = vxor.u32 %v3786_v15, %v3754_v13  ;;  %v3037_v42 = vadd.f32 %v7040_v6, %v2964_v30  ;;  %v7043_v8 = vld [vmem:[#allocation22_spill] sm:$0xff]  ;;  %v7044_v15 = vld [vmem:[#allocation23_spill] sm:$0xff] }
 0x30c   : > { %v3178_v60 = vpop.f32.mrf.mxu1  ;;  %v3100_v51 = vadd.f32 %v3099_v50, %v3027_v18  ;;  %v3171_v21 = vadd.f32 %v3170_v23, %v3098_v45  ;;  %4654 = vmatprep.mubr.msk.bf16.mxu0 %vm6562_vm4, %v4653_v34  ;;  %v3874_v5 = vmul.f32 2.0, %v3169_v3  ;;  %v3822_v16 = vxor.u32 %v3790_v22, %v3758_v35 }
 0x30d   : > { %v3103_v26 = vpop.f32.mrf.mxu0  ;;  %4657 = vmatmul.mubr.msk.bf16.gmra.mxu0 %vm4655_vm5, %v4656_v25  ;;  %v3817_v39 = vxor.u32 %v3785_v40, %v3753_v32  ;;  %v3821_v61 = vxor.u32 %v3789_v49, %v3757_v47  ;;  %vm3850_vm10 = vcmp.ge.s32.totalorder %v3818_v38, 0  ;;  %v3490_v27 = vadd.s32 384, %v7041_v33  ;;  %v7047_v38 = vld [vmem:[#allocation26_spill] sm:$0xff] }
 0x30e   : > { %v3173_v59 = vadd.f32 %v3172_v37, %v3100_v51  ;;  %v3877_v11 = vmul.f32 2.0, %v3171_v21  ;;  %v3180_v28 = vpop.f32.mrf.mxu1  ;;  %v3104_v48 = vadd.f32 %v3103_v26, %v3031_v19  ;;  %vm3854_vm11 = vcmp.ge.s32.totalorder %v3822_v16, 0  ;;  %v7045_v19 = vld [vmem:[#allocation24_spill] sm:$0xff]  ;;  %v7048_v16 = vld [vmem:[#allocation27_spill] sm:$0xff] }
 0x30f   : > { %v3105_v29 = vpop.f32.mrf.mxu0  ;;  %vm3849_vm12 = vcmp.ge.s32.totalorder %v3817_v39, 0  ;;  %vm3853_vm13 = vcmp.ge.s32.totalorder %v3821_v61, 0  ;;  %vm4664_vm14 = vmpackc.low %vm3854_vm11, %vm3850_vm10  ;;  %v6623_v54 = vadd.s32 %v7042_v31, %v3490_v27 }
 0x310   : > { %v3878_v55 = vmul.f32 2.0, %v3173_v59  ;;  %v3106_v23 = vadd.f32 %v3105_v29, %v3033_v4  ;;  %v4662_v37 = vpack.c.bf16 %v3877_v11, %v3873_v36  ;;  %v3182_v0 = vpop.f32.mrf.mxu1  ;;  %v3177_v2 = vadd.f32 %v3176_v63, %v3104_v48  ;;  %vm4667_vm15 = vmpackc.low %vm3853_vm13, %vm3849_vm12  ;;  %v7046_v29 = vld [vmem:[#allocation25_spill] sm:$0xff] }
 0x311   : > { %v3107_v24 = vpop.f32.mrf.mxu0  ;;  %v3508_v26 = vadd.s32 %v7043_v8, %v6623_v54  ;;  %v3512_v46 = vadd.s32 %v7044_v15, %v6623_v54  ;;  %v3516_v11 = vadd.s32 %v7045_v19, %v6623_v54  ;;  %v3524_v6 = vadd.s32 %v7047_v38, %v6623_v54 }
 0x312   : > { %v4659_v10 = vpack.c.bf16 %v3878_v55, %v3874_v5  ;;  %v3108_v17 = vadd.f32 %v3107_v24, %v3035_v57  ;;  %v3179_v58 = vadd.f32 %v3178_v60, %v3106_v23  ;;  %v3881_v43 = vmul.f32 2.0, %v3177_v2 }
 0x313   : > { %v3109_v56 = vpop.f32.mrf.mxu0  ;;  %v3489_v60 = vadd.s32 256, %v7041_v33  ;;  %v3540_v59 = vmul.u32 2654435769, %v3508_v26  ;;  %v3544_v41 = vmul.u32 2654435769, %v3512_v46 }
 0x314   : > { %v3110_v1 = vadd.f32 %v3109_v56, %v3037_v42  ;;  %v3181_v52 = vadd.f32 %v3180_v28, %v3108_v17  ;;  %4660 = vmatprep.mubr.msk.bf16.mxu0 %vm4658_vm8, %v4659_v10  ;;  %v3882_v20 = vmul.f32 2.0, %v3179_v58  ;;  %v3520_v28 = vadd.s32 %v7046_v29, %v6623_v54 }
 0x315   : > { %4663 = vmatmul.mubr.msk.bf16.gmra.mxu0 %vm4661_vm9, %v4662_v37  ;;  %v6626_v3 = vadd.s32 %v7042_v31, %v3489_v60  ;;  %v3572_v55 = vshrl.u32 %v3540_v59, 16  ;;  %v3576_v36 = vshrl.u32 %v3544_v41, 16  ;;  %v3548_v48 = vmul.u32 2654435769, %v3516_v11 }
 0x316   : > { %v3183_v53 = vadd.f32 %v3182_v0, %v3110_v1  ;;  %v3885_v9 = vmul.f32 2.0, %v3181_v52  ;;  %v3552_v24 = vmul.u32 2654435769, %v3520_v28  ;;  %v3528_v37 = vadd.s32 %v7048_v16, %v6623_v54 }
 0x317   : > { %v3507_v4 = vadd.s32 %v7043_v8, %v6626_v3  ;;  %v3511_v22 = vadd.s32 %v7044_v15, %v6626_v3  ;;  %v3515_v40 = vadd.s32 %v7045_v19, %v6626_v3  ;;  %v3519_v14 = vadd.s32 %v7046_v29, %v6626_v3 }
 0x318   : > { %v3886_v7 = vmul.f32 2.0, %v3183_v53  ;;  %v4668_v13 = vpack.c.bf16 %v3885_v9, %v3881_v43  ;;  %v3604_v39 = vxor.u32 %v3572_v55, %v3540_v59  ;;  %v3608_v58 = vxor.u32 %v3576_v36, %v3544_v41 }
 0x319   : > { %v3539_v49 = vmul.u32 2654435769, %v3507_v4  ;;  %v3543_v23 = vmul.u32 2654435769, %v3511_v22  ;;  %v3580_v1 = vshrl.u32 %v3548_v48, 16  ;;  %v3584_v52 = vshrl.u32 %v3552_v24, 16 }
 0x31a   : > { %v4665_v44 = vpack.c.bf16 %v3886_v7, %v3882_v20  ;;  %v3547_v42 = vmul.u32 2654435769, %v3515_v40  ;;  %v3551_v17 = vmul.u32 2654435769, %v3519_v14  ;;  %v3523_v59 = vadd.s32 %v7047_v38, %v6626_v3 }
 0x31b   : > { %v3571_v10 = vshrl.u32 %v3539_v49, 16  ;;  %v3575_v61 = vshrl.u32 %v3543_v23, 16  ;;  %v3556_v2 = vmul.u32 2654435769, %v3524_v6  ;;  %v3560_v7 = vmul.u32 2654435769, %v3528_v37 }
 0x31c   : > { %4666 = vmatprep.mubr.msk.bf16.mxu0 %vm4664_vm14, %v4665_v44  ;;  %v3579_v53 = vshrl.u32 %v3547_v42, 16  ;;  %v3583_v20 = vshrl.u32 %v3551_v17, 16  ;;  %v3640_v27 = vmul.u32 2246822507, %v3608_v58  ;;  %v3612_v60 = vxor.u32 %v3580_v1, %v3548_v48 }
 0x31d   : > { %4669 = vmatmul.mubr.msk.bf16.gmra.mxu0 %vm4667_vm15, %v4668_v13  ;;  %v3603_v9 = vxor.u32 %v3571_v10, %v3539_v49  ;;  %v3636_v13 = vmul.u32 2246822507, %v3604_v39  ;;  %v3607_v33 = vxor.u32 %v3575_v61, %v3543_v23  ;;  %v3616_v31 = vxor.u32 %v3584_v52, %v3552_v24 }
 0x31e   : > { %v3588_v8 = vshrl.u32 %v3556_v2, 16  ;;  %v3611_v26 = vxor.u32 %v3579_v53, %v3547_v42  ;;  %v3615_v46 = vxor.u32 %v3583_v20, %v3551_v17  ;;  %v3592_v4 = vshrl.u32 %v3560_v7, 16 }
 0x31f   : > { %v3635_v15 = vmul.u32 2246822507, %v3603_v9  ;;  %v3668_v19 = vshrl.u32 %v3636_v13, 13  ;;  %v3639_v11 = vmul.u32 2246822507, %v3607_v33  ;;  %v3672_v29 = vshrl.u32 %v3640_v27, 13 }
 0x320   : > { %v3644_v28 = vmul.u32 2246822507, %v3612_v60  ;;  %v3648_v40 = vmul.u32 2246822507, %v3616_v31  ;;  %v3620_v49 = vxor.u32 %v3588_v8, %v3556_v2  ;;  %v3527_v55 = vadd.s32 %v7048_v16, %v6626_v3  ;;  %v7049_v9 = vld [vmem:[#allocation20_spill] sm:$0xff] }
 0x321   : > { %v3643_v14 = vmul.u32 2246822507, %v3611_v26  ;;  %v3667_v23 = vshrl.u32 %v3635_v15, 13  ;;  %v3647_v36 = vmul.u32 2246822507, %v3615_v46  ;;  %v3624_v48 = vxor.u32 %v3592_v4, %v3560_v7 }
 0x322   : > { %v3555_v24 = vmul.u32 2654435769, %v3523_v59  ;;  %v3700_v42 = vxor.u32 %v3668_v19, %v3636_v13  ;;  %v3671_v10 = vshrl.u32 %v3639_v11, 13  ;;  %v3704_v17 = vxor.u32 %v3672_v29, %v3640_v27 }
 0x323   : > { %v3676_v37 = vshrl.u32 %v3644_v28, 13  ;;  %v3680_v39 = vshrl.u32 %v3648_v40, 13  ;;  %v3652_v61 = vmul.u32 2246822507, %v3620_v49  ;;  %v3675_v58 = vshrl.u32 %v3643_v14, 13 }
 0x324   : > { %v3559_v1 = vmul.u32 2654435769, %v3527_v55  ;;  %v3699_v52 = vxor.u32 %v3667_v23, %v3635_v15  ;;  %v3679_v2 = vshrl.u32 %v3647_v36, 13  ;;  %v3656_v53 = vmul.u32 2246822507, %v3624_v48  ;;  %v7051_v15 = vld [vmem:[#allocation29_spill] sm:$0xff] }
 0x325   : > { %v3587_v16 = vshrl.u32 %v3555_v24, 16  ;;  %v1451_v20 = vsub.s32 2, %v7049_v9  ;;  %v1455_v7 = vsub.s32 3, %v7049_v9  ;;  %v3732_v13 = vmul.u32 3266489909, %v3700_v42  ;;  %v7052_v48 = vld [vmem:[#allocation30_spill] sm:$0xff] }
 0x326   : > { %v3703_v31 = vxor.u32 %v3671_v10, %v3639_v11  ;;  %v3736_v27 = vmul.u32 3266489909, %v3704_v17  ;;  %v3708_v8 = vxor.u32 %v3676_v37, %v3644_v28  ;;  %v3712_v26 = vxor.u32 %v3680_v39, %v3648_v40 }
 0x327   : > { %v3684_v46 = vshrl.u32 %v3652_v61, 13  ;;  %v3707_v4 = vxor.u32 %v3675_v58, %v3643_v14  ;;  %v3591_v59 = vshrl.u32 %v3559_v1, 16  ;;  %v3532_v19 = vadd.s32 %v7051_v15, %v6623_v54 }
 0x328   : > { %v3731_v29 = vmul.u32 3266489909, %v3699_v52  ;;  %v3711_v49 = vxor.u32 %v3679_v2, %v3647_v36  ;;  %v3688_v55 = vshrl.u32 %v3656_v53, 13  ;;  %v3619_v23 = vxor.u32 %v3587_v16, %v3555_v24  ;;  %v7054_v24 = vld [vmem:[#allocation31_spill] sm:$0xff] }
 0x329   : > { %v6689_v9 = vrot.slane %v7052_v48, %v1451_v20  ;;  %v3764_v40 = vshrl.u32 %v3732_v13, 16  ;;  %v3735_v14 = vmul.u32 3266489909, %v3703_v31  ;;  %v3768_v42 = vshrl.u32 %v3736_v27, 16 }
 0x32a   : > { %v3740_v10 = vmul.u32 3266489909, %v3708_v8  ;;  %v3744_v17 = vmul.u32 3266489909, %v3712_v26  ;;  %v3716_v37 = vxor.u32 %v3684_v46, %v3652_v61  ;;  %v6698_v36 = vxor.u32 %v3591_v59, %v3559_v1 }
 0x32b   : > { %v3739_v39 = vmul.u32 3266489909, %v3707_v4  ;;  %v6702_v58 = vadd.s32 %v7054_v24, %v6623_v54  ;;  %v3564_v52 = vmul.u32 2654435769, %v3532_v19  ;;  %v3763_v2 = vshrl.u32 %v3731_v29, 16 }
 0x32c   : > { %v3743_v16 = vmul.u32 3266489909, %v3711_v49  ;;  %v6704_v20 = vxor.u32 %v3688_v55, %v3656_v53  ;;  %v6710_v8 = vxor.u32 %v3764_v40, %v3732_v13  ;;  %v3767_v61 = vshrl.u32 %v3735_v14, 16 }
 0x32d   : > { %v6714_v1 = vadd.s32 %v7051_v15, %v6626_v3  ;;  %v6718_v54 = vadd.s32 %v7054_v24, %v6626_v3  ;;  %v6720_v26 = vxor.u32 %v3768_v42, %v3736_v27  ;;  %v3772_v53 = vshrl.u32 %v3740_v10, 16 }
 0x32e   : > { %v3776_v46 = vshrl.u32 %v3744_v17, 16  ;;  %v3748_v4 = vmul.u32 3266489909, %v3716_v37  ;;  %v3771_v59 = vshrl.u32 %v3739_v39, 16  ;;  %v3655_v19 = vmul.u32 2246822507, %v6698_v36 }
 0x32f   : > { %v3568_v13 = vmul.u32 2654435769, %v6702_v58  ;;  %v3596_v49 = vshrl.u32 %v3564_v52, 16  ;;  %v6724_v55 = vxor.u32 %v3763_v2, %v3731_v29  ;;  %v3752_v15 = vmul.u32 3266489909, %v6704_v20 }
 0x330   : > { %v6733_v37 = vxor.u32 %v3767_v61, %v3735_v14  ;;  %v3563_v36 = vmul.u32 2654435769, %v6714_v1  ;;  %v3567_v24 = vmul.u32 2654435769, %v6718_v54  ;;  %v6739_v58 = vxor.u32 %v3772_v53, %v3740_v10 }
 0x331   : > { %v6741_v2 = vxor.u32 %v3776_v46, %v3744_v17  ;;  %v3780_v20 = vshrl.u32 %v3748_v4, 16  ;;  %v6745_v14 = vxor.u32 %v3596_v49, %v3564_v52  ;;  %vm3828_vm0 = vcmp.ge.s32.totalorder %v6710_v8, 0 }
 0x332   : > { %v6600_v35 = vpop.f32.mrf.mxu1  ;;  %vm3832_vm1 = vcmp.ge.s32.totalorder %v6720_v26, 0  ;;  %vm3827_vm2 = vcmp.ge.s32.totalorder %v6724_v55, 0  ;;  %vm3831_vm3 = vcmp.ge.s32.totalorder %v6733_v37, 0  ;;  %v3784_v52 = vshrl.u32 %v3752_v15, 16 }
 0x333   : > { %v3220_v3 = vadd.f32 %v6600_v35, %v6689_v9  ;;  %v3599_v53 = vshrl.u32 %v3567_v24, 16  ;;  %vm3836_vm4 = vcmp.ge.s32.totalorder %v6739_v58, 0  ;;  %vm3840_vm5 = vcmp.ge.s32.totalorder %v6741_v2, 0  ;;  %vm6802_vm8 = vmpackc.low %vm3832_vm1, %vm3828_vm0 }
 0x334   : > { %v6604_v63 = vpop.f32.mrf.mxu1  ;;  %vm4673_vm9 = vmpackc.low %vm3831_vm3, %vm3827_vm2 }
 0x335   : > { %v6602_v18 = vpop.f32.mrf.mxu0  ;;  %vm6845_vm12 = vmpackc.low %vm3840_vm5, %vm3836_vm4 }
 0x336   : > { %v6608_v34 = vpop.f32.mrf.mxu1  ;;  %v3293_v17 = vadd.f32 %v6602_v18, %v3220_v3  ;;  %v3660_v3 = vmul.u32 2246822507, %v6745_v14 }
 0x337   : > { %v6606_v12 = vpop.f32.mrf.mxu0  ;;  %v3224_v61 = vadd.f32 %v6608_v34, %v6689_v9  ;;  %v3595_v34 = vshrl.u32 %v3563_v36, 16 }
 0x338   : > { %v6613_v25 = vpop.f32.mrf.mxu1 }
 0x339   : > { %v6610_v45 = vpop.f32.mrf.mxu0 }
 0x33a   : > { %v6618_v32 = vpop.f32.mrf.mxu1  ;;  %v3297_v46 = vadd.f32 %v6610_v45, %v3224_v61  ;;  %v6775_v61 = vxor.u32 %v3784_v52, %v3752_v15 }
 0x33b   : > { %v6615_v50 = vpop.f32.mrf.mxu0 }
 0x33c   : > { %v6628_v51 = vpop.f32.mrf.mxu1  ;;  %vm3848_vm11 = vcmp.ge.s32.totalorder %v6775_v61, 0 }
 0x33d   : > { %v6620_v47 = vpop.f32.mrf.mxu0 }
 0x33e   : > { %v6638_v62 = vpop.f32.mrf.mxu1 }
 0x33f   : > { %v6630_v21 = vpop.f32.mrf.mxu0 }
 0x340   : > { %v6652_v57 = vpop.f32.mrf.mxu1 }
 0x341   : > { %v6640_v30 = vpop.f32.mrf.mxu0 }
 0x342   : > { %v6660_v56 = vpop.f32.mrf.mxu1 }
 0x343   : > { %v6654_v5 = vpop.f32.mrf.mxu0  ;;  %v3240_v8 = vadd.f32 %v6660_v56, %v6689_v9 }
 0x344   : > { %v6664_v43 = vpop.f32.mrf.mxu1 }
 0x345   : > { %v6662_v0 = vpop.f32.mrf.mxu0 }
 0x346   : > { %v6670_v22 = vpop.f32.mrf.mxu1 }
 0x347   : > { %v6666_v44 = vpop.f32.mrf.mxu0 }
 0x348   : > { %v6676_v6 = vpop.f32.mrf.mxu1 }
 0x349   : > { %v6672_v41 = vpop.f32.mrf.mxu0 }
 0x34a   : > { %v6682_v33 = vpop.f32.mrf.mxu1 }
 0x34b   : > { %v6678_v38 = vpop.f32.mrf.mxu0  ;;  %v3250_v58 = vadd.f32 %v6682_v33, %v6689_v9 }
 0x34c   : > { %v6694_v11 = vpop.f32.mrf.mxu1 }
 0x34d   : > { %v6684_v60 = vpop.f32.mrf.mxu0 }
 0x34e   : > { %7050 = vst [vmem:[#allocation32_spill] sm:$0xff] %v6684_v60  ;;  %v6692_v60 = vrot.slane %v7052_v48, %v1455_v7  ;;  %v3651_v7 = vmul.u32 2246822507, %v3619_v23  ;;  %v6706_v48 = vpop.f32.mrf.mxu1  ;;  %v3775_v23 = vshrl.u32 %v3743_v16, 16 }
 0x34f   : > { %v6696_v28 = vpop.f32.mrf.mxu0  ;;  %7055 = vst [vmem:[#allocation33_spill] sm:$0xff] %v6706_v48 }
 0x350   : > { %7053 = vst [vmem:[#allocation35_spill] sm:$0xff] %v6696_v28  ;;  %v3683_v40 = vshrl.u32 %v3651_v7, 13  ;;  %v6729_v27 = vpop.f32.mrf.mxu1  ;;  %v3222_v29 = vadd.f32 %v6604_v63, %v6692_v60  ;;  %v6743_v28 = vxor.u32 %v3771_v59, %v3739_v39  ;;  %v6752_v63 = vxor.u32 %v3775_v23, %v3743_v16 }
 0x351   : > { %v6708_v31 = vpop.f32.mrf.mxu0  ;;  %7057 = vst [vmem:[#allocation28_spill] sm:$0xff] %v6729_v27  ;;  %v3687_v27 = vshrl.u32 %v3655_v19, 13  ;;  %v6762_v59 = vxor.u32 %v3780_v20, %v3748_v4  ;;  %v3232_v48 = vadd.f32 %v6628_v51, %v6692_v60  ;;  %v3230_v4 = vadd.f32 %v6618_v32, %v6689_v9 }
 0x352   : > { %7056 = vst [vmem:[#allocation37_spill] sm:$0xff] %v6708_v31  ;;  %v3295_v1 = vadd.f32 %v6606_v12, %v3222_v29  ;;  %v6754_v10 = vxor.u32 %v3683_v40, %v3651_v7  ;;  %v3226_v12 = vadd.f32 %v6613_v25, %v6692_v60  ;;  %vm3835_vm6 = vcmp.ge.s32.totalorder %v6743_v28, 0 }
 0x353   : > { %v6731_v42 = vpop.f32.mrf.mxu0  ;;  %v6764_v23 = vxor.u32 %v3687_v27, %v3655_v19  ;;  %v6777_v19 = vxor.u32 %v3595_v34, %v3563_v36  ;;  %v3305_v15 = vadd.f32 %v6630_v21, %v3232_v48  ;;  %v3236_v36 = vadd.f32 %v6652_v57, %v6692_v60 }
 0x354   : > { %7058 = vst [vmem:[#allocation34_spill] sm:$0xff] %v6731_v42  ;;  %v3600_v42 = vshrl.u32 %v3568_v13, 16  ;;  %v3299_v29 = vadd.f32 %v6615_v50, %v3226_v12  ;;  %v3747_v45 = vmul.u32 3266489909, %v6754_v10  ;;  %v3234_v50 = vadd.f32 %v6638_v62, %v6689_v9 }
 0x355   : > { %v3692_v12 = vshrl.u32 %v3660_v3, 13  ;;  %vm3839_vm7 = vcmp.ge.s32.totalorder %v6752_v63, 0  ;;  %v3659_v21 = vmul.u32 2246822507, %v6777_v19  ;;  %vm3844_vm10 = vcmp.ge.s32.totalorder %v6762_v59, 0 }
 0x356   : > { %v6766_v40 = vxor.u32 %v3600_v42, %v3568_v13  ;;  %v6779_v13 = vxor.u32 %v3599_v53, %v3567_v24  ;;  %v3779_v62 = vshrl.u32 %v3747_v45, 16  ;;  %v3307_v48 = vadd.f32 %v6640_v30, %v3234_v50  ;;  %vm4679_vm13 = vmpackc.low %vm3839_vm7, %vm3835_vm6 }
 0x357   : > { %v3309_v30 = vadd.f32 %v6654_v5, %v3236_v36  ;;  %v3244_v5 = vadd.f32 %v6670_v22, %v6689_v9  ;;  %v3313_v36 = vadd.f32 %v6662_v0, %v3240_v8  ;;  %vm4682_vm0 = vmpackc.low %vm3848_vm11, %vm3844_vm10 }
 0x358   : > { %v3664_v32 = vmul.u32 2246822507, %v6766_v40  ;;  %v3663_v57 = vmul.u32 2246822507, %v6779_v13 }
 0x35a   : > { %v3695_v50 = vshrl.u32 %v3663_v57, 13 }
 0x371   : > { %v3438_v35 = vpop.f32.mrf.mxu0 }
 0x372   : > { %v3365_v31 = vpop.f32.mrf.mxu1 }
 0x373   : > { %v3440_v54 = vpop.f32.mrf.mxu0  ;;  %v3366_v7 = vadd.f32 %v3365_v31, %v3293_v17 }
 0x374   : > { %v3367_v39 = vpop.f32.mrf.mxu1 }
 0x375   : > { %v3368_v16 = vadd.f32 %v3367_v39, %v3295_v1  ;;  %v3442_v18 = vpop.f32.mrf.mxu0  ;;  %v3439_v14 = vadd.f32 %v3438_v35, %v3366_v7  ;;  %v3751_v39 = vmul.u32 3266489909, %v6764_v23  ;;  %v3303_v35 = vadd.f32 %v6620_v47, %v3230_v4 }
 0x376   : > { %v3369_v49 = vpop.f32.mrf.mxu1  ;;  %v3242_v4 = vadd.f32 %v6664_v43, %v6692_v60 }
 0x377   : > { %v3370_v25 = vadd.f32 %v3369_v49, %v3297_v46  ;;  %v3444_v20 = vpop.f32.mrf.mxu0  ;;  %v3441_v27 = vadd.f32 %v3440_v54, %v3368_v16  ;;  %v3859_v7 = vmul.f32 2.0, %v3439_v14  ;;  %v3783_v56 = vshrl.u32 %v3751_v39, 16 }
 0x378   : > { %v3371_v31 = vpop.f32.mrf.mxu1  ;;  %v6825_v14 = vxor.u32 %v3779_v62, %v3747_v45  ;;  %v3315_v22 = vadd.f32 %v6666_v44, %v3242_v4  ;;  %v3317_v44 = vadd.f32 %v6672_v41, %v3244_v5 }
 0x379   : > { %v3443_v42 = vadd.f32 %v3442_v18, %v3370_v25  ;;  %v3372_v51 = vadd.f32 %v3371_v31, %v3299_v29  ;;  %v3448_v17 = vpop.f32.mrf.mxu0  ;;  %v3860_v53 = vmul.f32 2.0, %v3441_v27  ;;  %v3696_v29 = vshrl.u32 %v3664_v32, 13 }
 0x37a   : > { %v3375_v1 = vpop.f32.mrf.mxu1  ;;  %v6806_v25 = vxor.u32 %v3692_v12, %v3660_v3  ;;  %v3691_v3 = vshrl.u32 %v3659_v21, 13  ;;  %v3246_v12 = vadd.f32 %v6676_v6, %v6692_v60  ;;  %vm3843_vm14 = vcmp.ge.s32.totalorder %v6825_v14, 0 }
 0x37b   : > { %v3445_v24 = vadd.f32 %v3444_v20, %v3372_v51  ;;  %v3863_v54 = vmul.f32 2.0, %v3443_v42  ;;  %v3450_v34 = vpop.f32.mrf.mxu0  ;;  %v3376_v49 = vadd.f32 %v3375_v1, %v3303_v35  ;;  %v6827_v1 = vxor.u32 %v3696_v29, %v3664_v32 }
 0x37c   : > { %v3377_v52 = vpop.f32.mrf.mxu1  ;;  %v6836_v62 = vxor.u32 %v3691_v3, %v3659_v21  ;;  %v6838_v32 = vxor.u32 %v3695_v50, %v3663_v57  ;;  %v3815_v21 = vxor.u32 %v3783_v56, %v3751_v39  ;;  %v3319_v57 = vadd.f32 %v6678_v38, %v3246_v12 }
 0x37d   : > { %v3864_v46 = vmul.f32 2.0, %v3445_v24  ;;  %v3378_v16 = vadd.f32 %v3377_v52, %v3305_v15  ;;  %v3452_v47 = vpop.f32.mrf.mxu0  ;;  %v4674_v26 = vpack.c.bf16 %v3863_v54, %v3859_v7  ;;  %v3449_v55 = vadd.f32 %v3448_v17, %v3376_v49 }
 0x37e   : > { %v3379_v18 = vpop.f32.mrf.mxu1  ;;  %v3756_v17 = vmul.u32 3266489909, %v6806_v25  ;;  %v3760_v41 = vmul.u32 3266489909, %v6827_v1  ;;  %vm3847_vm15 = vcmp.ge.s32.totalorder %v3815_v21, 0 }
 0x37f   : > { %v4671_v31 = vpack.c.bf16 %v3864_v46, %v3860_v53  ;;  %v3380_v20 = vadd.f32 %v3379_v18, %v3307_v48  ;;  %v3454_v13 = vpop.f32.mrf.mxu0  ;;  %v3451_v27 = vadd.f32 %v3450_v34, %v3378_v16  ;;  %v3867_v52 = vmul.f32 2.0, %v3449_v55  ;;  %v7063_v18 = vld [vmem:[#allocation33_spill] sm:$0xff]  ;;  %vm4685_vm1 = vmpackc.low %vm3847_vm15, %vm3843_vm14 }
 0x380   : > { %v3381_v19 = vpop.f32.mrf.mxu1  ;;  %v3252_v46 = vadd.f32 %v6694_v11, %v6692_v60  ;;  %v3755_v49 = vmul.u32 3266489909, %v6836_v62  ;;  %v3759_v38 = vmul.u32 3266489909, %v6838_v32  ;;  %v3254_v11 = vadd.f32 %v7063_v18, %v6689_v9 }
 0x381   : > { %v3453_v43 = vadd.f32 %v3452_v47, %v3380_v20  ;;  %v3382_v42 = vadd.f32 %v3381_v19, %v3309_v30  ;;  %4672 = vmatprep.mubr.msk.bf16.mxu1 %vm6802_vm8, %v4671_v31  ;;  %v3458_v51 = vpop.f32.mrf.mxu0  ;;  %v3868_v35 = vmul.f32 2.0, %v3451_v27  ;;  %v3788_v33 = vshrl.u32 %v3756_v17, 16  ;;  %v7064_v30 = vld [vmem:[#allocation35_spill] sm:$0xff]  ;;  %v7065_v31 = vld [vmem:[#allocation28_spill] sm:$0xff] }
 0x382   : > { %v3385_v37 = vpop.f32.mrf.mxu1  ;;  %4675 = vmatmul.mubr.msk.bf16.vlgmr.msra.gmra.mxu1 %vm4673_vm9, %v4674_v26  ;;  %v3325_v4 = vadd.f32 %v7064_v30, %v3252_v46  ;;  %v3256_v20 = vadd.f32 %v7065_v31, %v6692_v60  ;;  %v3792_v8 = vshrl.u32 %v3760_v41, 16  ;;  %v7066_v26 = vld [vmem:[#allocation32_spill] sm:$0xff]  ;;  %v3787_v5 = vshrl.u32 %v3755_v49, 16  ;;  %v4092_v31 = vld [vmem:[#allocation3 + $0x8] sm:$0xff] }
 0x383   : > { %v3455_v15 = vadd.f32 %v3454_v13, %v3382_v42  ;;  %v3871_v24 = vmul.f32 2.0, %v3453_v43  ;;  %v3460_v45 = vpop.f32.mrf.mxu0  ;;  %v3386_v34 = vadd.f32 %v3385_v37, %v3313_v36  ;;  %v3323_v19 = vadd.f32 %v7066_v26, %v3250_v58  ;;  %v7067_v43 = vld [vmem:[#allocation37_spill] sm:$0xff] }
 0x384   : > { %v3387_v10 = vpop.f32.mrf.mxu1  ;;  %v3791_v27 = vshrl.u32 %v3759_v38, 16  ;;  %v3327_v42 = vadd.f32 %v7067_v43, %v3254_v11  ;;  %v3820_v60 = vxor.u32 %v3788_v33, %v3756_v17  ;;  %vm4107_vm8 = vcmask 80896  }
 0x385   : > { %v3872_v6 = vmul.f32 2.0, %v3455_v15  ;;  %v3388_v54 = vadd.f32 %v3387_v10, %v3315_v22  ;;  %v3462_v53 = vpop.f32.mrf.mxu0  ;;  %v4680_v2 = vpack.c.bf16 %v3871_v24, %v3867_v52  ;;  %v3459_v28 = vadd.f32 %v3458_v51, %v3386_v34  ;;  %v7068_v15 = vld [vmem:[#allocation34_spill] sm:$0xff] }
 0x386   : > { %v3389_v48 = vpop.f32.mrf.mxu1  ;;  %v3329_v36 = vadd.f32 %v7068_v15, %v3256_v20  ;;  %vm3852_vm2 = vcmp.ge.s32.totalorder %v3820_v60, 0  ;;  %v4096_v60 = vld [vmem:[#allocation3 + $0x28] sm:$0xff] }
 0x387   : > { %v4677_v16 = vpack.c.bf16 %v3872_v6, %v3868_v35  ;;  %v3390_v7 = vadd.f32 %v3389_v48, %v3317_v44  ;;  %v3464_v39 = vpop.f32.mrf.mxu0  ;;  %v3461_v47 = vadd.f32 %v3460_v45, %v3388_v54  ;;  %v3875_v56 = vmul.f32 2.0, %v3459_v28 }
 0x388   : > { %v3391_v23 = vpop.f32.mrf.mxu1  ;;  %v3824_v45 = vxor.u32 %v3792_v8, %v3760_v41  ;;  %v3819_v44 = vxor.u32 %v3787_v5, %v3755_v49  ;;  %v3823_v35 = vxor.u32 %v3791_v27, %v3759_v38  ;;  %v4094_v27 = vld [vmem:[#allocation3 + $0x18] sm:$0xff] }
 0x389   : > { %v3463_v40 = vadd.f32 %v3462_v53, %v3390_v7  ;;  %v3392_v29 = vadd.f32 %v3391_v23, %v3319_v57  ;;  %4678 = vmatprep.mubr.msk.bf16.mxu1 %vm6845_vm12, %v4677_v16  ;;  %v3468_v25 = vpop.f32.mrf.mxu0  ;;  %v3876_v55 = vmul.f32 2.0, %v3461_v47 }
 0x38a   : > { %v3395_v63 = vpop.f32.mrf.mxu1  ;;  %4681 = vmatmul.mubr.msk.bf16.gmra.mxu1 %vm4679_vm13, %v4680_v2  ;;  %vm3856_vm3 = vcmp.ge.s32.totalorder %v3824_v45, 0  ;;  %vm3851_vm4 = vcmp.ge.s32.totalorder %v3819_v44, 0  ;;  %vm3855_vm5 = vcmp.ge.s32.totalorder %v3823_v35, 0  ;;  %v4097_v45 = vld [vmem:[#allocation3 + $0x30] sm:$0xff] }
 0x38b   : > { %v3465_v9 = vadd.f32 %v3464_v39, %v3392_v29  ;;  %v3879_v13 = vmul.f32 2.0, %v3463_v40  ;;  %v3470_v50 = vpop.f32.mrf.mxu0  ;;  %v3396_v1 = vadd.f32 %v3395_v63, %v3323_v19  ;;  %vm4688_vm6 = vmpackc.low %vm3856_vm3, %vm3852_vm2  ;;  %v4091_v63 = vld [vmem:[#allocation3] sm:$0xff]  ;;  %v4093_v19 = vld [vmem:[#allocation3 + $0x10] sm:$0xff] }
 0x38c   : > { %v3397_v3 = vpop.f32.mrf.mxu1  ;;  %vm4691_vm7 = vmpackc.low %vm3855_vm5, %vm3851_vm4 }
 0x38d   : > { %v3880_v37 = vmul.f32 2.0, %v3465_v9  ;;  %v3398_v51 = vadd.f32 %v3397_v3, %v3325_v4  ;;  %v3472_v12 = vpop.f32.mrf.mxu0  ;;  %v4686_v62 = vpack.c.bf16 %v3879_v13, %v3875_v56  ;;  %v3469_v61 = vadd.f32 %v3468_v25, %v3396_v1 }
 0x38e   : > { %v3399_v22 = vpop.f32.mrf.mxu1 }
 0x38f   : > { %v4683_v24 = vpack.c.bf16 %v3880_v37, %v3876_v55  ;;  %v3400_v10 = vadd.f32 %v3399_v22, %v3327_v42  ;;  %v3471_v6 = vadd.f32 %v3470_v50, %v3398_v51  ;;  %v3474_v52 = vpop.f32.mrf.mxu0  ;;  %v3883_v53 = vmul.f32 2.0, %v3469_v61  ;;  %v4095_v51 = vld [vmem:[#allocation3 + $0x20] sm:$0xff] }
 0x390   : > { %v3401_v32 = vpop.f32.mrf.mxu1 }
 0x391   : > { %v3473_v54 = vadd.f32 %v3472_v12, %v3400_v10  ;;  %v3402_v59 = vadd.f32 %v3401_v32, %v3329_v36  ;;  %4684 = vmatprep.mubr.msk.bf16.mxu1 %vm4682_vm0, %v4683_v24  ;;  %v3884_v14 = vmul.f32 2.0, %v3471_v6  ;;  %v4098_v6 = vld [vmem:[#allocation3 + $0x38] sm:$0xff] }
 0x392   : > { %4687 = vmatmul.mubr.msk.bf16.gmra.mxu1 %vm4685_vm1, %v4686_v62 }
 0x393   : > { %v3475_v17 = vadd.f32 %v3474_v52, %v3402_v59  ;;  %v3887_v34 = vmul.f32 2.0, %v3473_v54 }
 0x395   : > { %v3888_v48 = vmul.f32 2.0, %v3475_v17  ;;  %v4692_v21 = vpack.c.bf16 %v3887_v34, %v3883_v53 }
 0x397   : > { %v4689_v0 = vpack.c.bf16 %v3888_v48, %v3884_v14 }
 0x399   : > { %4690 = vmatprep.mubr.msk.bf16.mxu1 %vm4688_vm6, %v4689_v0 }
 0x39a   : > { %4693 = vmatmul.mubr.msk.bf16.gmra.mxu1 %vm4691_vm7, %v4692_v21 }
 0x3c5   : > { %v3995_v41 = vpop.f32.mrf.mxu0 }
 0x3c7   : > { %v3997_v57 = vpop.f32.mrf.mxu0 }
 0x3c9   : > { %v3998_v46 = vpop.f32.mrf.mxu0 }
 0x3cb   : > { %v4000_v16 = vpop.f32.mrf.mxu0 }
 0x3cd   : > { %v4003_v7 = vpop.f32.mrf.mxu0 }
 0x3cf   : > { %v4005_v58 = vpop.f32.mrf.mxu0 }
 0x3d1   : > { %v4006_v2 = vpop.f32.mrf.mxu0 }
 0x3d3   : > { %v4008_v23 = vpop.f32.mrf.mxu0 }
 0x3d5   : > { %v4011_v39 = vpop.f32.mrf.mxu0 }
 0x3d7   : > { %v4013_v49 = vpop.f32.mrf.mxu0 }
 0x3d9   : > { %v4014_v38 = vpop.f32.mrf.mxu0 }
 0x3db   : > { %v4016_v18 = vpop.f32.mrf.mxu0 }
 0x3dd   : > { %v4019_v11 = vpop.f32.mrf.mxu0 }
 0x3df   : > { %v4021_v47 = vpop.f32.mrf.mxu0 }
 0x3e1   : > { %v4022_v40 = vpop.f32.mrf.mxu0 }
 0x3e3   : > { %v4024_v29 = vpop.f32.mrf.mxu0 }
 0x442   : > { %v4060_v28 = vpop.f32.mrf.mxu1 }
 0x443   : > { %v4061_v25 = vadd.f32 %v4060_v28, %v3995_v41 }
 0x444   : > { %v4062_v33 = vpop.f32.mrf.mxu1 }
 0x445   : > { %v4099_v30 = vadd.f32 %v4091_v63, %v4061_v25 }
 0x446   : > { %v4063_v4 = vpop.f32.mrf.mxu1 }
 0x447   : > { %4108 = vst.msk [vmem:[#allocation3] sm:$0xff] %vm4107_vm8, %v4099_v30  ;;  %v4064_v20 = vadd.f32 %v4063_v4, %v3998_v46 }
 0x448   : > { %v4065_v9 = vpop.f32.mrf.mxu1 }
 0x449   : > { %v4100_v8 = vadd.f32 %v4092_v31, %v4064_v20 }
 0x44a   : > { %v4068_v26 = vpop.f32.mrf.mxu1 }
 0x44b   : > { %4109 = vst.msk [vmem:[#allocation3 + $0x8] sm:$0xff] %vm4107_vm8, %v4100_v8  ;;  %v4069_v13 = vadd.f32 %v4068_v26, %v4003_v7 }
 0x44c   : > { %v4070_v3 = vpop.f32.mrf.mxu1 }
 0x44d   : > { %v4101_v50 = vadd.f32 %v4093_v19, %v4069_v13 }
 0x44e   : > { %v4071_v5 = vpop.f32.mrf.mxu1 }
 0x44f   : > { %4110 = vst.msk [vmem:[#allocation3 + $0x10] sm:$0xff] %vm4107_vm8, %v4101_v50  ;;  %v4072_v43 = vadd.f32 %v4071_v5, %v4006_v2 }
 0x450   : > { %v4073_v42 = vpop.f32.mrf.mxu1 }
 0x451   : > { %v4102_v55 = vadd.f32 %v4094_v27, %v4072_v43 }
 0x452   : > { %v4076_v37 = vpop.f32.mrf.mxu1 }
 0x453   : > { %4111 = vst.msk [vmem:[#allocation3 + $0x18] sm:$0xff] %vm4107_vm8, %v4102_v55  ;;  %v4077_v56 = vadd.f32 %v4076_v37, %v4011_v39 }
 0x454   : > { %v4078_v1 = vpop.f32.mrf.mxu1 }
 0x455   : > { %v4103_v22 = vadd.f32 %v4095_v51, %v4077_v56 }
 0x456   : > { %v4079_v12 = vpop.f32.mrf.mxu1 }
 0x457   : > { %4112 = vst.msk [vmem:[#allocation3 + $0x20] sm:$0xff] %vm4107_vm8, %v4103_v22  ;;  %v4080_v15 = vadd.f32 %v4079_v12, %v4014_v38 }
 0x458   : > { %v4081_v36 = vpop.f32.mrf.mxu1 }
 0x459   : > { %v4104_v24 = vadd.f32 %v4096_v60, %v4080_v15 }
 0x45a   : > { %v4084_v10 = vpop.f32.mrf.mxu1 }
 0x45b   : > { %4113 = vst.msk [vmem:[#allocation3 + $0x28] sm:$0xff] %vm4107_vm8, %v4104_v24  ;;  %v4085_v62 = vadd.f32 %v4084_v10, %v4019_v11 }
 0x45c   : > { %v4086_v32 = vpop.f32.mrf.mxu1 }
 0x45d   : > { %v4105_v44 = vadd.f32 %v4097_v45, %v4085_v62 }
 0x45e   : > { %v4087_v35 = vpop.f32.mrf.mxu1 }
 0x45f   : > { %4114 = vst.msk [vmem:[#allocation3 + $0x30] sm:$0xff] %vm4107_vm8, %v4105_v44  ;;  %v4088_v54 = vadd.f32 %v4087_v35, %v4022_v40  ;;  %4119 = sbr.rel (%p4694_p2) target bundleno = 1134 (0x46e), region = 80 }
 0x460   : > { %v4089_v59 = vpop.f32.mrf.mxu1 }
 0x461   : > { %v4106_v61 = vadd.f32 %v4098_v6, %v4088_v54 }
 0x463   : > { %4115 = vst.msk [vmem:[#allocation3 + $0x38] sm:$0xff] %vm4107_vm8, %v4106_v61 }
 0x464   : > { %v4120_v52 = vld [vmem:[#allocation3] sm:$0xff]  ;;  %v4695_v17 = vld [vmem:[#allocation11] ss:$0 sm:$0xff]  ;;  %v4121_v34 = vld [vmem:[#allocation3 + $0x8] sm:$0xff] }
 0x465   : > { %v4135_v14 = vadd.f32 %v4695_v17, %v4120_v52  ;;  %v4136_v48 = vadd.f32 %v4695_v17, %v4121_v34  ;;  %v4122_v53 = vld [vmem:[#allocation3 + $0x10] sm:$0xff]  ;;  %v4123_v0 = vld [vmem:[#allocation3 + $0x18] sm:$0xff]  ;;  %v4124_v21 = vld [vmem:[#allocation3 + $0x20] sm:$0xff] }
 0x466   : > { %v4137_v41 = vadd.f32 %v4695_v17, %v4122_v53  ;;  %v4138_v57 = vadd.f32 %v4695_v17, %v4123_v0  ;;  %v4139_v46 = vadd.f32 %v4695_v17, %v4124_v21  ;;  %v4125_v16 = vld [vmem:[#allocation3 + $0x28] sm:$0xff]  ;;  %v4126_v7 = vld [vmem:[#allocation3 + $0x30] sm:$0xff] }
 0x467   : > { %4143 = vst.msk [vmem:[%s6942_s7] sm:$0xff] %vm4107_vm8, %v4135_v14  ;;  %4144 = vst.msk [vmem:[%s6942_s7 + $0x8] sm:$0xff] %vm4107_vm8, %v4136_v48  ;;  %v4140_v2 = vadd.f32 %v4695_v17, %v4125_v16  ;;  %v4141_v23 = vadd.f32 %v4695_v17, %v4126_v7 }
 0x468   : > { %4145 = vst.msk [vmem:[%s6942_s7 + $0x10] sm:$0xff] %vm4107_vm8, %v4137_v41  ;;  %4146 = vst.msk [vmem:[%s6942_s7 + $0x18] sm:$0xff] %vm4107_vm8, %v4138_v57 }
 0x469   : > { %4147 = vst.msk [vmem:[%s6942_s7 + $0x20] sm:$0xff] %vm4107_vm8, %v4139_v46  ;;  %4148 = vst.msk [vmem:[%s6942_s7 + $0x28] sm:$0xff] %vm4107_vm8, %v4140_v2 }
 0x46a   : > { %v4127_v58 = vld [vmem:[#allocation3 + $0x38] sm:$0xff]  ;;  %4149 = vst.msk [vmem:[%s6942_s7 + $0x30] sm:$0xff] %vm4107_vm8, %v4141_v23 }
 0x46b   : > { %v4142_v39 = vadd.f32 %v4695_v17, %v4127_v58 }
 0x46d   : > { %4150 = vst.msk [vmem:[%s6942_s7 + $0x38] sm:$0xff] %vm4107_vm8, %v4142_v39 }
 0x46e PF: > { %s7069_s27 = sld [smem:[#allocation17_spill]]  ;;  %s7072_s24 = smov %s5412_s25 }
 0x46f   : > { %s7070_s10 = sld [smem:[#allocation16_spill]] }
 0x470   : > { %s7071_s26 = sld [smem:[#allocation18_spill]] }
 0x474   : > { %p16_p3 = scmp.ge.s32.totalorder %s7069_s27, 6  }
 0x475   : > { %s7073_s25 = smov %s7070_s10 }
 0x476   :  { %18 = sbr.rel (!%p16_p3) target bundleno = 5 (0x5), region = 125 }
 0x47b   :  { %4162 = vsyncpa [#allocation5], 1 }
 0x47c   :  { %4164 = vsyncpa [#allocation5 + $0x1], 1 }
 0x47d   :  { %4165 = vsyncpa [#allocation7], 1 }

</bundles_post_ra>
